<compile_context>
chip_gen: v7x
topology: tpu7x:2x2x1
jax: 0.10.0
libtpu: 0.0.40
codegen_flags: <defaults>
</compile_context>

<pallas_src>
import functools

import jax
import jax.numpy as jnp
from jax import lax
from jax.experimental import pallas as pl
from jax.experimental.pallas import tpu as pltpu

BN_EPS = 1e-5


# ------------------------------ Pallas kernel ------------------------------ #

def _gemm_shift_act_kernel(w_ref, p_ref, shift_ref, o_ref, *, act):
    # (tr, K) @ (K, tm) on the MXU with f32 accumulation; per-row shift + act.
    acc = jnp.dot(w_ref[...], p_ref[...], preferred_element_type=jnp.float32)
    acc = acc + shift_ref[...]               # (tr, 1) broadcast across lanes
    if act == "relu":
        acc = jnp.maximum(acc, 0.0)
    elif act == "sigmoid":
        acc = jax.nn.sigmoid(acc)
    o_ref[...] = acc.astype(o_ref.dtype)


def _pick_tiles(R, M):
    """Choose (row_tile, lane_tile) for an (R, M) GEMM output."""
    if M > 128:
        # Lane-tile in 128-multiples: aim for >=2 grid steps (dual-TC v7x),
        # at most 512 lanes per step.
        tm = 128
        while tm < 512 and pl.cdiv(M, 2 * tm) >= 2:
            tm *= 2
        tr = R if R <= 256 else 256
        # keep the f32 accumulator tile <= (256,128) == 32 vregs (no spill)
        while tm > 128 and tr * tm > 256 * 128:
            tm //= 2
        return tr, tm
    # Tiny M: keep it whole, split rows instead so v7x still gets 2 steps.
    tm = M
    tr = R if R < 16 else ((R + 1) // 2 + 7) // 8 * 8
    while tr > 256:
        tr = ((tr + 1) // 2 + 7) // 8 * 8
    return tr, tm


def gemm_shift_act(w, p, shift, act):
    """out = act((R,K) @ (K,M) + shift[:,None]); returns (R, M) float32."""
    R, K = w.shape
    _, M = p.shape
    tr, tm = _pick_tiles(R, M)
    grid = (pl.cdiv(R, tr), pl.cdiv(M, tm))
    return pl.pallas_call(
        functools.partial(_gemm_shift_act_kernel, act=act),
        out_shape=jax.ShapeDtypeStruct((R, M), jnp.float32),
        grid_spec=pltpu.PrefetchScalarGridSpec(
            num_scalar_prefetch=0,
            grid=grid,
            in_specs=[
                pl.BlockSpec((tr, K), lambda r, m: (r, 0)),
                pl.BlockSpec((K, tm), lambda r, m: (0, m)),
                pl.BlockSpec((tr, 1), lambda r, m: (r, 0)),
            ],
            out_specs=pl.BlockSpec((tr, tm), lambda r, m: (r, m)),
        ),
        compiler_params=pltpu.CompilerParams(
            dimension_semantics=("parallel", "parallel")),
    )(w, p, shift.reshape(R, 1))


# ------------------------- conv / deconv plumbing -------------------------- #

def conv_bn_act(x_c, w, scale, shift, stride, act):
    """x_c: (Cin, N, H, W); w: (Cout, Cin, kh, kw) PyTorch Conv2d layout."""
    Cout, Cin, kh, kw = w.shape
    # One fused XLA op; output feature dim is channel-major (Cin, kh, kw),
    # matching w.reshape(Cout, Cin*kh*kw).
    patches = lax.conv_general_dilated_patches(
        x_c, (kh, kw), (stride, stride), "VALID",
        dimension_numbers=("CNHW", "OIHW", "CNHW"))
    K, N, Ho, Wo = patches.shape                       # K = Cin*kh*kw
    w2 = w.reshape(Cout, K) * scale[:, None]           # fold BN scale into W
    y = gemm_shift_act(w2, patches.reshape(K, N * Ho * Wo), shift, act)
    return y.reshape(Cout, N, Ho, Wo)


def deconv_bn_act(x_c, w, scale, shift, stride, act):
    """x_c: (Cin, N, H, W); w: (Cin, Cout, kh, kw) PyTorch ConvTranspose2d.

    Lowered as GEMM (Cout*kh*kw, Cin) @ (Cin, N*H*W) + col2im: no stride^2
    dilation zeros ever enter the MXU.
    """
    Cin, Cout, kh, kw = w.shape
    _, N, H, W = x_c.shape
    Hout, Wout = (H - 1) * stride + kh, (W - 1) * stride + kw
    w_mat = jnp.transpose(w, (1, 2, 3, 0)).reshape(Cout * kh * kw, Cin)
    w_mat = w_mat * jnp.repeat(scale, kh * kw)[:, None]       # fold BN scale
    p = x_c.reshape(Cin, N * H * W)

    if stride == kh and stride == kw:
        # Non-overlapping taps: each output pixel gets exactly one
        # contribution, so shift + act stay fused in the kernel and col2im is
        # a pure transpose/reshape of a tiny tensor.
        g = gemm_shift_act(w_mat, p, jnp.repeat(shift, kh * kw), act)
        g = g.reshape(Cout, kh, kw, N, H, W)
        return jnp.transpose(g, (0, 3, 4, 1, 5, 2)).reshape(Cout, N, Hout, Wout)

    # Overlapping taps: pure GEMM in the kernel; col2im (interior-padded adds)
    # + shift + act are cheap XLA elementwise work on the small output tensor.
    g = gemm_shift_act(w_mat, p,
                       jnp.zeros((Cout * kh * kw,), jnp.float32), "none")
    g = g.reshape(Cout, kh, kw, N, H, W)
    zero = jnp.array(0.0, jnp.float32)
    y = jnp.zeros((Cout, N, Hout, Wout), jnp.float32)
    for i in range(kh):
        for j in range(kw):
            hi_h = Hout - 1 - (i + stride * (H - 1))
            hi_w = Wout - 1 - (j + stride * (W - 1))
            y = y + lax.pad(g[:, i, j], zero,
                            ((0, 0, 0), (0, 0, 0),
                             (i, hi_h, stride - 1), (j, hi_w, stride - 1)))
    y = y + shift[:, None, None, None]
    if act == "relu":
        y = jnp.maximum(y, 0.0)
    elif act == "sigmoid":
        y = jax.nn.sigmoid(y)
    return y


# ------------------------------- parameters -------------------------------- #

def init_params(key):
    ks = jax.random.split(key, 16)

    def uni(k, shape, fan_in):
        bound = 1.0 / float(fan_in) ** 0.5
        return jax.random.uniform(k, shape, jnp.float32, -bound, bound)

    def bn(k, c):
        k1, k2, k3, k4 = jax.random.split(k, 4)
        gamma = 1.0 + 0.1 * jax.random.normal(k1, (c,), jnp.float32)
        beta = 0.1 * jax.random.normal(k2, (c,), jnp.float32)
        mean = 0.1 * jax.random.normal(k3, (c,), jnp.float32)
        var = 1.0 + 0.1 * jax.random.uniform(k4, (c,), jnp.float32)
        return gamma, beta, mean, var

    p = {}
    # encoder convs (Cout, Cin, kh, kw)
    p["w1"], p["b1"] = uni(ks[0], (32, 3, 5, 5), 3 * 25), uni(ks[1], (32,), 3 * 25)
    p["w2"], p["b2"] = uni(ks[2], (64, 32, 4, 4), 32 * 16), uni(ks[3], (64,), 32 * 16)
    p["w3"], p["b3"] = uni(ks[4], (128, 64, 3, 3), 64 * 9), uni(ks[5], (128,), 64 * 9)
    # decoder transposed convs (Cin, Cout, kh, kw)
    p["dw1"], p["db1"] = uni(ks[6], (128, 64, 3, 3), 128 * 9), uni(ks[7], (64,), 128 * 9)
    p["dw2"], p["db2"] = uni(ks[8], (64, 32, 4, 4), 64 * 16), uni(ks[9], (32,), 64 * 16)
    p["dw3"], p["db3"] = uni(ks[10], (32, 3, 5, 5), 32 * 25), uni(ks[11], (3,), 32 * 25)
    # batchnorms (eval-mode: gamma, beta, running_mean, running_var)
    p["bn1"], p["bn2"], p["bn3"] = bn(ks[12], 32), bn(ks[13], 64), bn(ks[14], 128)
    k15a, k15b = jax.random.split(ks[15])
    p["dbn1"], p["dbn2"] = bn(k15a, 64), bn(k15b, 32)
    return p


def fuse_bn(bias, bn_params):
    gamma, beta, mean, var = bn_params
    scale = gamma / jnp.sqrt(var + BN_EPS)
    shift = beta + scale * (bias - mean)
    return scale, shift


# ------------------------------ forward pass ------------------------------- #

def ae_cluster_forward(x, p):
    x_c = jnp.transpose(x, (1, 0, 2, 3))                        # (C, N, H, W)
    # encoder
    s, sh = fuse_bn(p["b1"], p["bn1"])
    x_c = conv_bn_act(x_c, p["w1"], s, sh, 1, "relu")            # (32, N, 28, 28)
    s, sh = fuse_bn(p["b2"], p["bn2"])
    x_c = conv_bn_act(x_c, p["w2"], s, sh, 3, "relu")            # (64, N, 9, 9)
    s, sh = fuse_bn(p["b3"], p["bn3"])
    x_c = conv_bn_act(x_c, p["w3"], s, sh, 3, "relu")            # (128, N, 3, 3)
    # decoder
    s, sh = fuse_bn(p["db1"], p["dbn1"])
    x_c = deconv_bn_act(x_c, p["dw1"], s, sh, 3, "relu")         # (64, N, 9, 9)
    s, sh = fuse_bn(p["db2"], p["dbn2"])
    x_c = deconv_bn_act(x_c, p["dw2"], s, sh, 3, "relu")         # (32, N, 28, 28)
    ones = jnp.ones((3,), jnp.float32)                            # no BN on last layer
    x_c = deconv_bn_act(x_c, p["dw3"], ones, p["db3"], 1, "sigmoid")  # (3, N, 32, 32)
    return jnp.transpose(x_c, (1, 0, 2, 3))                      # back to NCHW


# --------------------------- pure-JAX reference ---------------------------- #

def _ref_conv(x, w, b, stride):
    y = lax.conv_general_dilated(x, w, (stride, stride), "VALID",
                                 dimension_numbers=("NCHW", "OIHW", "NCHW"))
    return y + b[None, :, None, None]


def _ref_deconv(x, w, b, stride):
    N, Cin, H, W = x.shape
    _, Cout, kh, kw = w.shape
    Hout, Wout = (H - 1) * stride + kh, (W - 1) * stride + kw
    y = jnp.zeros((N, Cout, Hout, Wout), jnp.float32)
    for i in range(kh):
        for j in range(kw):
            contrib = jnp.einsum("nchw,cd->ndhw", x, w[:, :, i, j])
            y = y.at[:, :,
                     i:i + stride * (H - 1) + 1:stride,
                     j:j + stride * (W - 1) + 1:stride].add(contrib)
    return y + b[None, :, None, None]


def _ref_bn(x, bn_params):
    gamma, beta, mean, var = bn_params
    inv = gamma / jnp.sqrt(var + BN_EPS)
    return (x - mean[None, :, None, None]) * inv[None, :, None, None] \
        + beta[None, :, None, None]


def ref_forward(x, p):
    x = jnp.maximum(_ref_bn(_ref_conv(x, p["w1"], p["b1"], 1), p["bn1"]), 0.0)
    x = jnp.maximum(_ref_bn(_ref_conv(x, p["w2"], p["b2"], 3), p["bn2"]), 0.0)
    x = jnp.maximum(_ref_bn(_ref_conv(x, p["w3"], p["b3"], 3), p["bn3"]), 0.0)
    x = jnp.maximum(_ref_bn(_ref_deconv(x, p["dw1"], p["db1"], 3), p["dbn1"]), 0.0)
    x = jnp.maximum(_ref_bn(_ref_deconv(x, p["dw2"], p["db2"], 3), p["dbn2"]), 0.0)
    x = jax.nn.sigmoid(_ref_deconv(x, p["dw3"], p["db3"], 1))
    return x


# ---------------------------------- main ----------------------------------- #

if __name__ == "__main__":
    key = jax.random.PRNGKey(0)
    kx, kp = jax.random.split(key)
    x = jax.random.uniform(kx, (2, 3, 32, 32), jnp.float32)   # NCHW input
    params = init_params(kp)

    out = jax.jit(ae_cluster_forward)(x, params)
    out = jax.block_until_ready(out)
    assert out.shape == (2, 3, 32, 32), out.shape

    ref = ref_forward(x, params)
    err = float(jnp.max(jnp.abs(out - ref)))
    assert err < 2e-3, f"max abs err vs reference: {err}"

    print("KERNEL_OK")
</pallas_src>

<mosaic_0001>
module attributes {stable_mosaic.version = 11 : i64} {
  func.func @_gemm_shift_act_kernel(%arg0: i32, %arg1: i32, %arg2: memref<32x75xf32, #tpu.memory_space<vmem>>, %arg3: memref<75x512xf32, #tpu.memory_space<vmem>>, %arg4: memref<32x1xf32, #tpu.memory_space<vmem>>, %arg5: memref<32x512xf32, #tpu.memory_space<vmem>>) attributes {dimension_semantics = [#tpu.dimension_semantics<parallel>, #tpu.dimension_semantics<parallel>], iteration_bounds = array<i64: 1, 4>, scalar_prefetch = 0 : i64, scratch_operands = 0 : i64, tpu.core_type = #tpu.core_type<tc>, window_params = [{transform_indices = @transform_0, window_bounds = array<i64: 32, 75>}, {transform_indices = @transform_1, window_bounds = array<i64: 75, 512>}, {transform_indices = @transform_2, window_bounds = array<i64: 32, 1>}, {transform_indices = @transform_3, window_bounds = array<i64: 32, 512>}]} {
    %c0 = arith.constant 0 : index
    %c0_0 = arith.constant 0 : index
    %0 = vector.load %arg2[%c0, %c0_0] : memref<32x75xf32, #tpu.memory_space<vmem>>, vector<32x75xf32>
    %c0_1 = arith.constant 0 : index
    %c0_2 = arith.constant 0 : index
    %1 = vector.load %arg3[%c0_1, %c0_2] : memref<75x512xf32, #tpu.memory_space<vmem>>, vector<75x512xf32>
    %cst = arith.constant dense<0.000000e+00> : vector<32x512xf32>
    %2 = tpu.matmul %0, %1, %cst {dimension_numbers = #tpu.dot_dimension_numbers<[1], [0], [0], [1], [0, 0, 1, 1], [], []>} : vector<32x75xf32>, vector<75x512xf32>, vector<32x512xf32> -> vector<32x512xf32>
    %c0_3 = arith.constant 0 : index
    %c0_4 = arith.constant 0 : index
    %3 = vector.load %arg4[%c0_3, %c0_4] : memref<32x1xf32, #tpu.memory_space<vmem>>, vector<32x1xf32>
    %4 = vector.broadcast %3 : vector<32x1xf32> to vector<32x512xf32>
    %5 = arith.addf %2, %4 : vector<32x512xf32>
    %cst_5 = arith.constant 0.000000e+00 : f32
    %6 = vector.broadcast %cst_5 : f32 to vector<32x512xf32>
    %7 = arith.maximumf %5, %6 : vector<32x512xf32>
    %c0_6 = arith.constant 0 : index
    %c0_7 = arith.constant 0 : index
    %8 = vector.load %arg5[%c0_6, %c0_7] : memref<32x512xf32, #tpu.memory_space<vmem>>, vector<32x512xf32>
    tpu.vector_store %arg5[%c0_6, %c0_7], %7 {strides = array<i32>} : memref<32x512xf32, #tpu.memory_space<vmem>>, vector<32x512xf32>,
    return
  }
  func.func @transform_0(%arg0: i32, %arg1: i32) -> (i32, i32) {
    %c0_i32 = arith.constant 0 : i32
    %c0_i32_0 = arith.constant 0 : i32
    return %arg0, %c0_i32 : i32, i32
  }
  func.func @transform_1(%arg0: i32, %arg1: i32) -> (i32, i32) {
    %c0_i32 = arith.constant 0 : i32
    %c0_i32_0 = arith.constant 0 : i32
    return %c0_i32, %arg1 : i32, i32
  }
  func.func @transform_2(%arg0: i32, %arg1: i32) -> (i32, i32) {
    %c0_i32 = arith.constant 0 : i32
    %c0_i32_0 = arith.constant 0 : i32
    return %arg0, %c0_i32 : i32, i32
  }
  func.func @transform_3(%arg0: i32, %arg1: i32) -> (i32, i32) {
    %c0_i32 = arith.constant 0 : i32
    return %arg0, %arg1 : i32, i32
  }
}

module attributes {stable_mosaic.version = 11 : i64} {
  func.func @_gemm_shift_act_kernel(%arg0: i32, %arg1: i32, %arg2: memref<64x512xf32, #tpu.memory_space<vmem>>, %arg3: memref<512x128xf32, #tpu.memory_space<vmem>>, %arg4: memref<64x1xf32, #tpu.memory_space<vmem>>, %arg5: memref<64x128xf32, #tpu.memory_space<vmem>>) attributes {dimension_semantics = [#tpu.dimension_semantics<parallel>, #tpu.dimension_semantics<parallel>], iteration_bounds = array<i64: 1, 2>, scalar_prefetch = 0 : i64, scratch_operands = 0 : i64, tpu.core_type = #tpu.core_type<tc>, window_params = [{transform_indices = @transform_0, window_bounds = array<i64: 64, 512>}, {transform_indices = @transform_1, window_bounds = array<i64: 512, 128>}, {transform_indices = @transform_2, window_bounds = array<i64: 64, 1>}, {transform_indices = @transform_3, window_bounds = array<i64: 64, 128>}]} {
    %c0 = arith.constant 0 : index
    %c0_0 = arith.constant 0 : index
    %0 = vector.load %arg2[%c0, %c0_0] : memref<64x512xf32, #tpu.memory_space<vmem>>, vector<64x512xf32>
    %c0_1 = arith.constant 0 : index
    %c0_2 = arith.constant 0 : index
    %1 = vector.load %arg3[%c0_1, %c0_2] : memref<512x128xf32, #tpu.memory_space<vmem>>, vector<512x128xf32>
    %cst = arith.constant dense<0.000000e+00> : vector<64x128xf32>
    %2 = tpu.matmul %0, %1, %cst {dimension_numbers = #tpu.dot_dimension_numbers<[1], [0], [0], [1], [0, 0, 1, 1], [], []>} : vector<64x512xf32>, vector<512x128xf32>, vector<64x128xf32> -> vector<64x128xf32>
    %c0_3 = arith.constant 0 : index
    %c0_4 = arith.constant 0 : index
    %3 = vector.load %arg4[%c0_3, %c0_4] : memref<64x1xf32, #tpu.memory_space<vmem>>, vector<64x1xf32>
    %4 = vector.broadcast %3 : vector<64x1xf32> to vector<64x128xf32>
    %5 = arith.addf %2, %4 : vector<64x128xf32>
    %cst_5 = arith.constant 0.000000e+00 : f32
    %6 = vector.broadcast %cst_5 : f32 to vector<64x128xf32>
    %7 = arith.maximumf %5, %6 : vector<64x128xf32>
    %c0_6 = arith.constant 0 : index
    %c0_7 = arith.constant 0 : index
    %8 = vector.load %arg5[%c0_6, %c0_7] : memref<64x128xf32, #tpu.memory_space<vmem>>, vector<64x128xf32>
    tpu.vector_store %arg5[%c0_6, %c0_7], %7 {strides = array<i32>} : memref<64x128xf32, #tpu.memory_space<vmem>>, vector<64x128xf32>,
    return
  }
  func.func @transform_0(%arg0: i32, %arg1: i32) -> (i32, i32) {
    %c0_i32 = arith.constant 0 : i32
    %c0_i32_0 = arith.constant 0 : i32
    return %arg0, %c0_i32 : i32, i32
  }
  func.func @transform_1(%arg0: i32, %arg1: i32) -> (i32, i32) {
    %c0_i32 = arith.constant 0 : i32
    %c0_i32_0 = arith.constant 0 : i32
    return %c0_i32, %arg1 : i32, i32
  }
  func.func @transform_2(%arg0: i32, %arg1: i32) -> (i32, i32) {
    %c0_i32 = arith.constant 0 : i32
    %c0_i32_0 = arith.constant 0 : i32
    return %arg0, %c0_i32 : i32, i32
  }
  func.func @transform_3(%arg0: i32, %arg1: i32) -> (i32, i32) {
    %c0_i32 = arith.constant 0 : i32
    return %arg0, %arg1 : i32, i32
  }
}

module attributes {stable_mosaic.version = 11 : i64} {
  func.func @_gemm_shift_act_kernel(%arg0: i32, %arg1: i32, %arg2: memref<64x576xf32, #tpu.memory_space<vmem>>, %arg3: memref<576x18xf32, #tpu.memory_space<vmem>>, %arg4: memref<64x1xf32, #tpu.memory_space<vmem>>, %arg5: memref<64x18xf32, #tpu.memory_space<vmem>>) attributes {dimension_semantics = [#tpu.dimension_semantics<parallel>, #tpu.dimension_semantics<parallel>], iteration_bounds = array<i64: 2, 1>, scalar_prefetch = 0 : i64, scratch_operands = 0 : i64, tpu.core_type = #tpu.core_type<tc>, window_params = [{transform_indices = @transform_0, window_bounds = array<i64: 64, 576>}, {transform_indices = @transform_1, window_bounds = array<i64: 576, 18>}, {transform_indices = @transform_2, window_bounds = array<i64: 64, 1>}, {transform_indices = @transform_3, window_bounds = array<i64: 64, 18>}]} {
    %c0 = arith.constant 0 : index
    %c0_0 = arith.constant 0 : index
    %0 = vector.load %arg2[%c0, %c0_0] : memref<64x576xf32, #tpu.memory_space<vmem>>, vector<64x576xf32>
    %c0_1 = arith.constant 0 : index
    %c0_2 = arith.constant 0 : index
    %1 = vector.load %arg3[%c0_1, %c0_2] : memref<576x18xf32, #tpu.memory_space<vmem>>, vector<576x18xf32>
    %cst = arith.constant dense<0.000000e+00> : vector<64x18xf32>
    %2 = tpu.matmul %0, %1, %cst {dimension_numbers = #tpu.dot_dimension_numbers<[1], [0], [0], [1], [0, 0, 1, 1], [], []>} : vector<64x576xf32>, vector<576x18xf32>, vector<64x18xf32> -> vector<64x18xf32>
    %c0_3 = arith.constant 0 : index
    %c0_4 = arith.constant 0 : index
    %3 = vector.load %arg4[%c0_3, %c0_4] : memref<64x1xf32, #tpu.memory_space<vmem>>, vector<64x1xf32>
    %4 = vector.broadcast %3 : vector<64x1xf32> to vector<64x18xf32>
    %5 = arith.addf %2, %4 : vector<64x18xf32>
    %cst_5 = arith.constant 0.000000e+00 : f32
    %6 = vector.broadcast %cst_5 : f32 to vector<64x18xf32>
    %7 = arith.maximumf %5, %6 : vector<64x18xf32>
    %c0_6 = arith.constant 0 : index
    %c0_7 = arith.constant 0 : index
    %8 = vector.load %arg5[%c0_6, %c0_7] : memref<64x18xf32, #tpu.memory_space<vmem>>, vector<64x18xf32>
    tpu.vector_store %arg5[%c0_6, %c0_7], %7 {strides = array<i32>} : memref<64x18xf32, #tpu.memory_space<vmem>>, vector<64x18xf32>,
    return
  }
  func.func @transform_0(%arg0: i32, %arg1: i32) -> (i32, i32) {
    %c0_i32 = arith.constant 0 : i32
    %c0_i32_0 = arith.constant 0 : i32
    return %arg0, %c0_i32 : i32, i32
  }
  func.func @transform_1(%arg0: i32, %arg1: i32) -> (i32, i32) {
    %c0_i32 = arith.constant 0 : i32
    %c0_i32_0 = arith.constant 0 : i32
    return %c0_i32, %arg1 : i32, i32
  }
  func.func @transform_2(%arg0: i32, %arg1: i32) -> (i32, i32) {
    %c0_i32 = arith.constant 0 : i32
    %c0_i32_0 = arith.constant 0 : i32
    return %arg0, %c0_i32 : i32, i32
  }
  func.func @transform_3(%arg0: i32, %arg1: i32) -> (i32, i32) {
    %c0_i32 = arith.constant 0 : i32
    return %arg0, %arg1 : i32, i32
  }
}

module attributes {stable_mosaic.version = 11 : i64} {
  func.func @_gemm_shift_act_kernel(%arg0: i32, %arg1: i32, %arg2: memref<144x128xf32, #tpu.memory_space<vmem>>, %arg3: memref<128x18xf32, #tpu.memory_space<vmem>>, %arg4: memref<144x1xf32, #tpu.memory_space<vmem>>, %arg5: memref<144x18xf32, #tpu.memory_space<vmem>>) attributes {dimension_semantics = [#tpu.dimension_semantics<parallel>, #tpu.dimension_semantics<parallel>], iteration_bounds = array<i64: 4, 1>, scalar_prefetch = 0 : i64, scratch_operands = 0 : i64, tpu.core_type = #tpu.core_type<tc>, window_params = [{transform_indices = @transform_0, window_bounds = array<i64: 144, 128>}, {transform_indices = @transform_1, window_bounds = array<i64: 128, 18>}, {transform_indices = @transform_2, window_bounds = array<i64: 144, 1>}, {transform_indices = @transform_3, window_bounds = array<i64: 144, 18>}]} {
    %c0 = arith.constant 0 : index
    %c0_0 = arith.constant 0 : index
    %0 = vector.load %arg2[%c0, %c0_0] : memref<144x128xf32, #tpu.memory_space<vmem>>, vector<144x128xf32>
    %c0_1 = arith.constant 0 : index
    %c0_2 = arith.constant 0 : index
    %1 = vector.load %arg3[%c0_1, %c0_2] : memref<128x18xf32, #tpu.memory_space<vmem>>, vector<128x18xf32>
    %cst = arith.constant dense<0.000000e+00> : vector<144x18xf32>
    %2 = tpu.matmul %0, %1, %cst {dimension_numbers = #tpu.dot_dimension_numbers<[1], [0], [0], [1], [0, 0, 1, 1], [], []>} : vector<144x128xf32>, vector<128x18xf32>, vector<144x18xf32> -> vector<144x18xf32>
    %c0_3 = arith.constant 0 : index
    %c0_4 = arith.constant 0 : index
    %3 = vector.load %arg4[%c0_3, %c0_4] : memref<144x1xf32, #tpu.memory_space<vmem>>, vector<144x1xf32>
    %4 = vector.broadcast %3 : vector<144x1xf32> to vector<144x18xf32>
    %5 = arith.addf %2, %4 : vector<144x18xf32>
    %cst_5 = arith.constant 0.000000e+00 : f32
    %6 = vector.broadcast %cst_5 : f32 to vector<144x18xf32>
    %7 = arith.maximumf %5, %6 : vector<144x18xf32>
    %c0_6 = arith.constant 0 : index
    %c0_7 = arith.constant 0 : index
    %8 = vector.load %arg5[%c0_6, %c0_7] : memref<144x18xf32, #tpu.memory_space<vmem>>, vector<144x18xf32>
    tpu.vector_store %arg5[%c0_6, %c0_7], %7 {strides = array<i32>} : memref<144x18xf32, #tpu.memory_space<vmem>>, vector<144x18xf32>,
    return
  }
  func.func @transform_0(%arg0: i32, %arg1: i32) -> (i32, i32) {
    %c0_i32 = arith.constant 0 : i32
    %c0_i32_0 = arith.constant 0 : i32
    return %arg0, %c0_i32 : i32, i32
  }
  func.func @transform_1(%arg0: i32, %arg1: i32) -> (i32, i32) {
    %c0_i32 = arith.constant 0 : i32
    %c0_i32_0 = arith.constant 0 : i32
    return %c0_i32, %arg1 : i32, i32
  }
  func.func @transform_2(%arg0: i32, %arg1: i32) -> (i32, i32) {
    %c0_i32 = arith.constant 0 : i32
    %c0_i32_0 = arith.constant 0 : i32
    return %arg0, %c0_i32 : i32, i32
  }
  func.func @transform_3(%arg0: i32, %arg1: i32) -> (i32, i32) {
    %c0_i32 = arith.constant 0 : i32
    return %arg0, %arg1 : i32, i32
  }
}

module attributes {stable_mosaic.version = 11 : i64} {
  func.func @_gemm_shift_act_kernel(%arg0: i32, %arg1: i32, %arg2: memref<256x64xf32, #tpu.memory_space<vmem>>, %arg3: memref<64x128xf32, #tpu.memory_space<vmem>>, %arg4: memref<256x1xf32, #tpu.memory_space<vmem>>, %arg5: memref<256x128xf32, #tpu.memory_space<vmem>>) attributes {dimension_semantics = [#tpu.dimension_semantics<parallel>, #tpu.dimension_semantics<parallel>], iteration_bounds = array<i64: 2, 2>, scalar_prefetch = 0 : i64, scratch_operands = 0 : i64, tpu.core_type = #tpu.core_type<tc>, window_params = [{transform_indices = @transform_0, window_bounds = array<i64: 256, 64>}, {transform_indices = @transform_1, window_bounds = array<i64: 64, 128>}, {transform_indices = @transform_2, window_bounds = array<i64: 256, 1>}, {transform_indices = @transform_3, window_bounds = array<i64: 256, 128>}]} {
    %c0 = arith.constant 0 : index
    %c0_0 = arith.constant 0 : index
    %0 = vector.load %arg2[%c0, %c0_0] : memref<256x64xf32, #tpu.memory_space<vmem>>, vector<256x64xf32>
    %c0_1 = arith.constant 0 : index
    %c0_2 = arith.constant 0 : index
    %1 = vector.load %arg3[%c0_1, %c0_2] : memref<64x128xf32, #tpu.memory_space<vmem>>, vector<64x128xf32>
    %cst = arith.constant dense<0.000000e+00> : vector<256x128xf32>
    %2 = tpu.matmul %0, %1, %cst {dimension_numbers = #tpu.dot_dimension_numbers<[1], [0], [0], [1], [0, 0, 1, 1], [], []>} : vector<256x64xf32>, vector<64x128xf32>, vector<256x128xf32> -> vector<256x128xf32>
    %c0_3 = arith.constant 0 : index
    %c0_4 = arith.constant 0 : index
    %3 = vector.load %arg4[%c0_3, %c0_4] : memref<256x1xf32, #tpu.memory_space<vmem>>, vector<256x1xf32>
    %4 = vector.broadcast %3 : vector<256x1xf32> to vector<256x128xf32>
    %5 = arith.addf %2, %4 : vector<256x128xf32>
    %c0_5 = arith.constant 0 : index
    %c0_6 = arith.constant 0 : index
    %6 = vector.load %arg5[%c0_5, %c0_6] : memref<256x128xf32, #tpu.memory_space<vmem>>, vector<256x128xf32>
    tpu.vector_store %arg5[%c0_5, %c0_6], %5 {strides = array<i32>} : memref<256x128xf32, #tpu.memory_space<vmem>>, vector<256x128xf32>,
    return
  }
  func.func @transform_0(%arg0: i32, %arg1: i32) -> (i32, i32) {
    %c0_i32 = arith.constant 0 : i32
    %c0_i32_0 = arith.constant 0 : i32
    return %arg0, %c0_i32 : i32, i32
  }
  func.func @transform_1(%arg0: i32, %arg1: i32) -> (i32, i32) {
    %c0_i32 = arith.constant 0 : i32
    %c0_i32_0 = arith.constant 0 : i32
    return %c0_i32, %arg1 : i32, i32
  }
  func.func @transform_2(%arg0: i32, %arg1: i32) -> (i32, i32) {
    %c0_i32 = arith.constant 0 : i32
    %c0_i32_0 = arith.constant 0 : i32
    return %arg0, %c0_i32 : i32, i32
  }
  func.func @transform_3(%arg0: i32, %arg1: i32) -> (i32, i32) {
    %c0_i32 = arith.constant 0 : i32
    return %arg0, %arg1 : i32, i32
  }
}

module attributes {stable_mosaic.version = 11 : i64} {
  func.func @_gemm_shift_act_kernel(%arg0: i32, %arg1: i32, %arg2: memref<75x32xf32, #tpu.memory_space<vmem>>, %arg3: memref<32x256xf32, #tpu.memory_space<vmem>>, %arg4: memref<75x1xf32, #tpu.memory_space<vmem>>, %arg5: memref<75x256xf32, #tpu.memory_space<vmem>>) attributes {dimension_semantics = [#tpu.dimension_semantics<parallel>, #tpu.dimension_semantics<parallel>], iteration_bounds = array<i64: 1, 7>, scalar_prefetch = 0 : i64, scratch_operands = 0 : i64, tpu.core_type = #tpu.core_type<tc>, window_params = [{transform_indices = @transform_0, window_bounds = array<i64: 75, 32>}, {transform_indices = @transform_1, window_bounds = array<i64: 32, 256>}, {transform_indices = @transform_2, window_bounds = array<i64: 75, 1>}, {transform_indices = @transform_3, window_bounds = array<i64: 75, 256>}]} {
    %c0 = arith.constant 0 : index
    %c0_0 = arith.constant 0 : index
    %0 = vector.load %arg2[%c0, %c0_0] : memref<75x32xf32, #tpu.memory_space<vmem>>, vector<75x32xf32>
    %c0_1 = arith.constant 0 : index
    %c0_2 = arith.constant 0 : index
    %1 = vector.load %arg3[%c0_1, %c0_2] : memref<32x256xf32, #tpu.memory_space<vmem>>, vector<32x256xf32>
    %cst = arith.constant dense<0.000000e+00> : vector<75x256xf32>
    %2 = tpu.matmul %0, %1, %cst {dimension_numbers = #tpu.dot_dimension_numbers<[1], [0], [0], [1], [0, 0, 1, 1], [], []>} : vector<75x32xf32>, vector<32x256xf32>, vector<75x256xf32> -> vector<75x256xf32>
    %c0_3 = arith.constant 0 : index
    %c0_4 = arith.constant 0 : index
    %3 = vector.load %arg4[%c0_3, %c0_4] : memref<75x1xf32, #tpu.memory_space<vmem>>, vector<75x1xf32>
    %4 = vector.broadcast %3 : vector<75x1xf32> to vector<75x256xf32>
    %5 = arith.addf %2, %4 : vector<75x256xf32>
    %c0_5 = arith.constant 0 : index
    %c0_6 = arith.constant 0 : index
    %6 = vector.load %arg5[%c0_5, %c0_6] : memref<75x256xf32, #tpu.memory_space<vmem>>, vector<75x256xf32>
    tpu.vector_store %arg5[%c0_5, %c0_6], %5 {strides = array<i32>} : memref<75x256xf32, #tpu.memory_space<vmem>>, vector<75x256xf32>,
    return
  }
  func.func @transform_0(%arg0: i32, %arg1: i32) -> (i32, i32) {
    %c0_i32 = arith.constant 0 : i32
    %c0_i32_0 = arith.constant 0 : i32
    return %arg0, %c0_i32 : i32, i32
  }
  func.func @transform_1(%arg0: i32, %arg1: i32) -> (i32, i32) {
    %c0_i32 = arith.constant 0 : i32
    %c0_i32_0 = arith.constant 0 : i32
    return %c0_i32, %arg1 : i32, i32
  }
  func.func @transform_2(%arg0: i32, %arg1: i32) -> (i32, i32) {
    %c0_i32 = arith.constant 0 : i32
    %c0_i32_0 = arith.constant 0 : i32
    return %arg0, %c0_i32 : i32, i32
  }
  func.func @transform_3(%arg0: i32, %arg1: i32) -> (i32, i32) {
    %c0_i32 = arith.constant 0 : i32
    return %arg0, %arg1 : i32, i32
  }
}

</mosaic_0001>

<bundles_post_ra>
// kernel: ae_cluster_forward.6
= control target key start
LH: loop header
LB: loop body
LE: loop exit
PB: predicated region body
PF: predicated region fallthrough
CT: control target
= control target key end

     0   :  { %s2514_s12 = smov 0   ;;  %s2516_s13 = smov 0   ;;  %s3218_s0 = inlined_call_operand.vmem [shape: f32[32,75], index: 0, kind: input, shape index: {}]   ;;  %s3219_s1 = inlined_call_operand.vmem [shape: f32[75,1568], index: 1, kind: input, shape index: {}]   ;;  %s3220_s2 = inlined_call_operand.vmem [shape: f32[32,1], index: 2, kind: input, shape index: {}]   ;;  %s3221_s3 = inlined_call_operand.vmem [shape: f32[32,1568], index: 3, kind: output, shape index: {}]  }
   0x1   :  { %s2518_s14 = smov 0   ;;  %s2520_s15 = smov 0  }
   0x2   :  { %s2522_s16 = smov 0  }
   0x3 LB: > { %s22_s17 = sadd.s32 1, %s2385_s15  ;;  %s1788_s18 = sadd.s32 4294967295, %s2389_s16   ;;  %s2389_s16 = sphi %s2522_s16, %s13_s16   ;;  %s2385_s15 = sphi %s2520_s15, %s3250_s15   ;;  %s2381_s14 = sphi %s2518_s14, %s3249_s14   ;;  %s2377_s13 = sphi %s2516_s13, %s3248_s13   ;;  %s2373_s12 = sphi %s2514_s12, %s3247_s12  }
   0x4   : > { %p23_p0 = scmp.ge.s32.totalorder %s22_s17, 4  ;;  %p65_p1 = scmp.ne.s32.totalorder %s2377_s13, %s2373_s12 }
   0x5   : > { %p66_p2 = scmp.eq.s32.totalorder %s2389_s16, 0  ;;  %p123_p4 = scmp.eq.s32.totalorder %s1788_s18, 3 }
   0x6   : > { %s3252_s17 = smov (%p23_p0, %s22_s17), 0  ;;  %s58_s20 = sadd.s32 1, %s2377_s13 }
   0x7   : > { %p67_p3 = por %p66_p2, %p65_p1  ;;  %s55_s19 = ssub.s32 %s2385_s15, %s3252_s17 }
   0x8   : > { %p56_p5 = scmp.eq.s32.totalorder %s55_s19, 0  ;;  %p2549_p6 = por %p123_p4, %p65_p1 }
   0x9   : > { %p1793_p7 = scmp.ge.s32.totalorder %s2389_s16, 4 }
   0xa   : > { %s2554_s22 = scalar_select %p56_p5, %s2377_s13, %s58_s20  }
   0xb   : > { %163 = sbr.rel (%p1793_p7) target bundleno = 117 (0x75), region = 24 }
  0x12   : > { %166 = sbr.rel (!%p67_p3) target bundleno = 117 (0x75), region = 28  ;;  %s168_s23 = sand.u32 (%p67_p3), 1, %s2377_s13  }
  0x13   : > { %s1794_s24 = sshll.u32 (%p67_p3), %s2385_s15, 2  ;;  %s1916_s25 = smul.u32 (%p67_p3), 320, %s168_s23 }
  0x14   : > { %s172_s26 = ssub.s32 (%p67_p3), 13, %s1794_s24  ;;  %s1862_s27 = sshll.u32 (%p67_p3), %s2385_s15, 5 }
  0x15   : > { %p173_p8 = scmp.lt.s32.totalorder (%p67_p3), %s172_s26, 4  ;;  %s2563_s30 = scalar_lea.vmem (%p67_p3), %s3219_s1, %s1862_s27  }
  0x16   : > { %s2567_s6 = scalar_lea.vmem (%p67_p3), [#allocation2], %s1916_s25  }
  0x19   : > { %s3254_s26 = smov (!%p173_p8, %s172_s26), 4 }
  0x1a   : > { %s175_s4 = smul.u32 1280, %s3254_s26  ;;  %s2565_s5 = sshll.u32 %s3254_s26, 3 }
  0x1c   : > { %p1798_p9 = scmp.eq.s32.totalorder %s175_s4, 0 }
  0x1d   : > { %p183_p10 = scmp.lt.u32.totalorder (!%p1798_p9), %s2565_s5, 8 }
  0x1e   : > { %182 = sbr.rel (%p1798_p9) target bundleno = 117 (0x75), region = 32 }
  0x25   : > { %186 = sbr.rel (%p183_p10) target bundleno = 104 (0x68), region = 36  ;;  %s2571_s7 = sand.u32 (!%p183_p10), 7, %s2565_s5  }
  0x26   : > { %p220_p11 = scmp.eq.s32.totalorder (!%p183_p10), %s2571_s7, 0  ;;  %p1799_p12 = scmp.ne.s32.totalorder (!%p183_p10), %s2571_s7, 0 }
  0x2c   : > { %223 = sbr.rel (%p1799_p12) target bundleno = 68 (0x44), region = 51  ;;  %s224_s8 = sshrl.u32 (!%p1799_p12), %s2565_s5, 3 }
  0x2d   : > { %s225_s9 = sshrl.u32 (!%p1799_p12), %s224_s8, 3  ;;  %s2576_s10 = sand.u32 (!%p1799_p12), 7, %s224_s8  }
  0x2e   : > { %s1863_s11 = sshll.u32 (!%p1799_p12), %s225_s9, 10  ;;  %p1806_p13 = scmp.le.s32.totalorder (!%p1799_p12), %s2576_s10, 0 }
  0x2f   : > { %s408_s18 = sshra.s32 (!%p1799_p12), %s1863_s11, 4 }
  0x30   : > { %s2579_s19 = scalar_lea.vmem (!%p1799_p12), %s2563_s30, %s408_s18   ;;  %s2582_s20 = scalar_lea.vmem (!%p1799_p12), %s2567_s6, %s408_s18 [#allocation2]  }
  0x33   : > { %1648 = sbr.rel (%p1806_p13) target bundleno = 68 (0x44), region = 246  ;;  %s3223_s23 = smov (!%p1806_p13), %s2582_s20 }
  0x34   : > { %s3224_s24 = smov (!%p1806_p13), %s2579_s19  ;;  %s2591_s25 = smov (!%p1806_p13), 0  }
  0x35   : > { %s2593_s26 = smov (!%p1806_p13), 0  }
  0x3a LB: >> { %v424_v0 = vld [vmem:[%s2397_s24] sm:$0xff]  ;;  %v426_v1 = vld [vmem:[%s2397_s24 + $0x68] sm:$0xff]  ;;  %v428_v2 = vld [vmem:[%s2397_s24 + $0xd0] sm:$0xff]  ;;  %s444_s27 = sadd.s32 1, %s2401_s25  ;;  %s418_s26 = sadd.s32 1, %s2405_s26   ;;  %s2405_s26 = sphi %s2593_s26, %s418_s26   ;;  %s2401_s25 = sphi %s2591_s25, %s3225_s25   ;;  %s2397_s24 = sphi %s3224_s24, %s449_s24   ;;  %s2393_s23 = sphi %s3223_s23, %s450_s23  }
  0x3b   : >> { %425 = vst [vmem:[%s2393_s23] sm:$0xff] %v424_v0  ;;  %427 = vst [vmem:[%s2393_s23 + $0x20] sm:$0xff] %v426_v1  ;;  %v430_v3 = vld [vmem:[%s2397_s24 + $0x138] sm:$0xff]  ;;  %v432_v4 = vld [vmem:[%s2397_s24 + $0x1a0] sm:$0xff]  ;;  %p445_p0 = scmp.ge.s32.totalorder %s444_s27, %s2576_s10  ;;  %p417_p1 = scmp.ge.s32.totalorder %s418_s26, %s2576_s10 }
  0x3c   : >> { %429 = vst [vmem:[%s2393_s23 + $0x40] sm:$0xff] %v428_v2  ;;  %v434_v5 = vld [vmem:[%s2397_s24 + $0x208] sm:$0xff]  ;;  %431 = vst [vmem:[%s2393_s23 + $0x60] sm:$0xff] %v430_v3  ;;  %v436_v6 = vld [vmem:[%s2397_s24 + $0x270] sm:$0xff] }
  0x3d   : >> { %433 = vst [vmem:[%s2393_s23 + $0x80] sm:$0xff] %v432_v4  ;;  %435 = vst [vmem:[%s2393_s23 + $0xa0] sm:$0xff] %v434_v5  ;;  %v438_v7 = vld [vmem:[%s2397_s24 + $0x2d8] sm:$0xff]  ;;  %v440_v8 = vld [vmem:[%s2397_s24 + $0x340] sm:$0xff]  ;;  %s3256_s27 = smov (%p445_p0, %s444_s27), 0  ;;  %420 = sbr.rel (!%p417_p1) target bundleno = 58 (0x3a), region = 252 }
  0x3e   : >> { %437 = vst [vmem:[%s2393_s23 + $0xc0] sm:$0xff] %v436_v6  ;;  %439 = vst [vmem:[%s2393_s23 + $0xe0] sm:$0xff] %v438_v7  ;;  %v442_v9 = vld [vmem:[%s2397_s24 + $0x3a8] sm:$0xff]  ;;  %s1807_s28 = sshll.u32 %s3256_s27, 3  ;;  %s3225_s25 = smov %s3256_s27 }
  0x3f   : >> { %441 = vst [vmem:[%s2393_s23 + $0x100] sm:$0xff] %v440_v8  ;;  %443 = vst [vmem:[%s2393_s23 + $0x120] sm:$0xff] %v442_v9  ;;  %s449_s24 = scalar_lea.vmem %s2579_s19, %s1807_s28   ;;  %s450_s23 = scalar_lea.vmem %s2582_s20, %s1807_s28 [#allocation2]  }
  0x44 PF: > { %453 = sbr.rel (%p220_p11) target bundleno = 104 (0x68), region = 69  ;;  %s455_s29 = ssub.s32 (!%p220_p11), %s2565_s5, %s2571_s7 }
  0x45   : > { %s459_s4 = sshrl.u32 (!%p220_p11), %s2565_s5, 3  ;;  %s2620_s8 = scalar_lea.vmem (!%p220_p11), %s2563_s30, %s455_s29 }
  0x46   : > { %s2623_s9 = scalar_lea.vmem (!%p220_p11), %s2567_s6, %s455_s29 [#allocation2]  ;;  %s460_s11 = sshrl.u32 (!%p220_p11), %s459_s4, 3 }
  0x47   : > { %s2625_s18 = sand.u32 (!%p220_p11), 7, %s459_s4   ;;  %s1865_s10 = sshll.u32 (!%p220_p11), %s460_s11, 10 }
  0x48   : > { %s643_s19 = sshra.s32 (!%p220_p11), %s1865_s10, 4  ;;  %p1815_p2 = scmp.le.s32.totalorder (!%p220_p11), %s2625_s18, 0 }
  0x49   : > { %s2628_s20 = scalar_lea.vmem (!%p220_p11), %s2563_s30, %s643_s19   ;;  %s2631_s23 = scalar_lea.vmem (!%p220_p11), %s2567_s6, %s643_s19 [#allocation2]  }
  0x4b   : > { %1676 = sbr.rel (%p1815_p2) target bundleno = 92 (0x5c), region = 268  ;;  %s3226_s24 = smov (!%p1815_p2), %s2631_s23 }
  0x4c   : > { %s3227_s25 = smov (!%p1815_p2), %s2628_s20  ;;  %s2640_s26 = smov (!%p1815_p2), 0  }
  0x4d   : > { %s2642_s27 = smov (!%p1815_p2), 0  }
  0x52 LB: >> { %v659_v10 = vld [vmem:[%s2413_s25] sm:$0xff]  ;;  %v661_v11 = vld [vmem:[%s2413_s25 + $0x68] sm:$0xff]  ;;  %v663_v12 = vld [vmem:[%s2413_s25 + $0xd0] sm:$0xff]  ;;  %s679_s28 = sadd.s32 1, %s2417_s26  ;;  %s653_s27 = sadd.s32 1, %s2421_s27   ;;  %s2421_s27 = sphi %s2642_s27, %s653_s27   ;;  %s2417_s26 = sphi %s2640_s26, %s3228_s26   ;;  %s2413_s25 = sphi %s3227_s25, %s684_s25   ;;  %s2409_s24 = sphi %s3226_s24, %s685_s24  }
  0x53   : >> { %660 = vst [vmem:[%s2409_s24] sm:$0xff] %v659_v10  ;;  %662 = vst [vmem:[%s2409_s24 + $0x20] sm:$0xff] %v661_v11  ;;  %v665_v13 = vld [vmem:[%s2413_s25 + $0x138] sm:$0xff]  ;;  %v667_v14 = vld [vmem:[%s2413_s25 + $0x1a0] sm:$0xff]  ;;  %p680_p3 = scmp.ge.s32.totalorder %s679_s28, %s2625_s18  ;;  %p652_p4 = scmp.ge.s32.totalorder %s653_s27, %s2625_s18 }
  0x54   : >> { %664 = vst [vmem:[%s2409_s24 + $0x40] sm:$0xff] %v663_v12  ;;  %v669_v15 = vld [vmem:[%s2413_s25 + $0x208] sm:$0xff]  ;;  %666 = vst [vmem:[%s2409_s24 + $0x60] sm:$0xff] %v665_v13  ;;  %v671_v16 = vld [vmem:[%s2413_s25 + $0x270] sm:$0xff] }
  0x55   : >> { %668 = vst [vmem:[%s2409_s24 + $0x80] sm:$0xff] %v667_v14  ;;  %670 = vst [vmem:[%s2409_s24 + $0xa0] sm:$0xff] %v669_v15  ;;  %v673_v17 = vld [vmem:[%s2413_s25 + $0x2d8] sm:$0xff]  ;;  %v675_v18 = vld [vmem:[%s2413_s25 + $0x340] sm:$0xff]  ;;  %s3258_s28 = smov (%p680_p3, %s679_s28), 0  ;;  %655 = sbr.rel (!%p652_p4) target bundleno = 82 (0x52), region = 274 }
  0x56   : >> { %672 = vst [vmem:[%s2409_s24 + $0xc0] sm:$0xff] %v671_v16  ;;  %674 = vst [vmem:[%s2409_s24 + $0xe0] sm:$0xff] %v673_v17  ;;  %v677_v19 = vld [vmem:[%s2413_s25 + $0x3a8] sm:$0xff]  ;;  %s1816_s29 = sshll.u32 %s3258_s28, 3  ;;  %s3228_s26 = smov %s3258_s28 }
  0x57   : >> { %676 = vst [vmem:[%s2409_s24 + $0x100] sm:$0xff] %v675_v18  ;;  %678 = vst [vmem:[%s2409_s24 + $0x120] sm:$0xff] %v677_v19  ;;  %s684_s25 = scalar_lea.vmem %s2628_s20, %s1816_s29   ;;  %s685_s24 = scalar_lea.vmem %s2631_s23, %s1816_s29 [#allocation2]  }
  0x5c PF: > { %s2487_s4 = smov 0  }
  0x5d   : > { %s686_s11 = sshllo.u32 %s2487_s4, %s2571_s7 }
  0x5e   : > { %v695_v20 = vld [vmem:[%s2620_s8] sm:%s686_s11]  ;;  %v697_v21 = vld [vmem:[%s2620_s8 + $0x68] sm:%s686_s11] }
  0x5f   : > { %696 = vst [vmem:[%s2623_s9] sm:%s686_s11] %v695_v20  ;;  %698 = vst [vmem:[%s2623_s9 + $0x20] sm:%s686_s11] %v697_v21 }
  0x60   : > { %v699_v22 = vld [vmem:[%s2620_s8 + $0xd0] sm:%s686_s11]  ;;  %v701_v23 = vld [vmem:[%s2620_s8 + $0x138] sm:%s686_s11] }
  0x61   : > { %700 = vst [vmem:[%s2623_s9 + $0x40] sm:%s686_s11] %v699_v22  ;;  %702 = vst [vmem:[%s2623_s9 + $0x60] sm:%s686_s11] %v701_v23 }
  0x62   : > { %v703_v24 = vld [vmem:[%s2620_s8 + $0x1a0] sm:%s686_s11]  ;;  %v705_v25 = vld [vmem:[%s2620_s8 + $0x208] sm:%s686_s11] }
  0x63   : > { %704 = vst [vmem:[%s2623_s9 + $0x80] sm:%s686_s11] %v703_v24  ;;  %706 = vst [vmem:[%s2623_s9 + $0xa0] sm:%s686_s11] %v705_v25 }
  0x64   : > { %v707_v26 = vld [vmem:[%s2620_s8 + $0x270] sm:%s686_s11]  ;;  %v709_v27 = vld [vmem:[%s2620_s8 + $0x2d8] sm:%s686_s11] }
  0x65   : > { %708 = vst [vmem:[%s2623_s9 + $0xc0] sm:%s686_s11] %v707_v26  ;;  %710 = vst [vmem:[%s2623_s9 + $0xe0] sm:%s686_s11] %v709_v27 }
  0x66   : > { %v711_v28 = vld [vmem:[%s2620_s8 + $0x340] sm:%s686_s11]  ;;  %v713_v29 = vld [vmem:[%s2620_s8 + $0x3a8] sm:%s686_s11] }
  0x67   : > { %712 = vst [vmem:[%s2623_s9 + $0x100] sm:%s686_s11] %v711_v28  ;;  %714 = vst [vmem:[%s2623_s9 + $0x120] sm:%s686_s11] %v713_v29 }
  0x68 PF: > { %p1818_p5 = scmp.ge.u32.totalorder %s2565_s5, 8 }
  0x69   : > { %s2488_s7 = smov (!%p1818_p5), 0  }
  0x6a   : > { %189 = sbr.rel (%p1818_p5) target bundleno = 117 (0x75), region = 40  ;;  %s190_s8 = sshllo.u32 (!%p1818_p5), %s2488_s7, %s2565_s5 }
  0x6b   : > { %v199_v30 = vld [vmem:[%s2563_s30] sm:%s190_s8] (!%p1818_p5)  ;;  %v201_v31 = vld [vmem:[%s2563_s30 + $0x68] sm:%s190_s8] (!%p1818_p5) }
  0x6c   : > { %200 = vst [vmem:[%s2567_s6] sm:%s190_s8] (!%p1818_p5), %v199_v30  ;;  %202 = vst [vmem:[%s2567_s6 + $0x20] sm:%s190_s8] (!%p1818_p5), %v201_v31 }
  0x6d   : > { %v203_v32 = vld [vmem:[%s2563_s30 + $0xd0] sm:%s190_s8] (!%p1818_p5)  ;;  %v205_v33 = vld [vmem:[%s2563_s30 + $0x138] sm:%s190_s8] (!%p1818_p5) }
  0x6e   : > { %204 = vst [vmem:[%s2567_s6 + $0x40] sm:%s190_s8] (!%p1818_p5), %v203_v32  ;;  %206 = vst [vmem:[%s2567_s6 + $0x60] sm:%s190_s8] (!%p1818_p5), %v205_v33 }
  0x6f   : > { %v207_v34 = vld [vmem:[%s2563_s30 + $0x1a0] sm:%s190_s8] (!%p1818_p5)  ;;  %v209_v35 = vld [vmem:[%s2563_s30 + $0x208] sm:%s190_s8] (!%p1818_p5) }
  0x70   : > { %208 = vst [vmem:[%s2567_s6 + $0x80] sm:%s190_s8] (!%p1818_p5), %v207_v34  ;;  %210 = vst [vmem:[%s2567_s6 + $0xa0] sm:%s190_s8] (!%p1818_p5), %v209_v35 }
  0x71   : > { %v211_v36 = vld [vmem:[%s2563_s30 + $0x270] sm:%s190_s8]  ;;  %v213_v37 = vld [vmem:[%s2563_s30 + $0x2d8] sm:%s190_s8] }
  0x72   : > { %212 = vst [vmem:[%s2567_s6 + $0xc0] sm:%s190_s8] %v211_v36  ;;  %214 = vst [vmem:[%s2567_s6 + $0xe0] sm:%s190_s8] %v213_v37 }
  0x73   : > { %v215_v38 = vld [vmem:[%s2563_s30 + $0x340] sm:%s190_s8]  ;;  %v217_v39 = vld [vmem:[%s2563_s30 + $0x3a8] sm:%s190_s8] }
  0x74   : > { %216 = vst [vmem:[%s2567_s6 + $0x100] sm:%s190_s8] %v215_v38  ;;  %218 = vst [vmem:[%s2567_s6 + $0x120] sm:%s190_s8] %v217_v39 }
  0x75 PF: > { %p1819_p7 = scmp.ge.s32.totalorder %s2389_s16, 1  ;;  %p717_p8 = scmp.lt.s32.totalorder %s2389_s16, 5 }
  0x77   : > { %p718_p9 = pnand %p1819_p7, %p717_p8 }
  0x78   : > { %s724_s5 = sand.u32 (!%p718_p9), 1, %s2373_s12   ;;  %v2489_v40 = vmov (!%p718_p9), 0.0   ;;  %v2490_v41 = vmov (!%p718_p9), 0   ;;  %v823_v42 = vld [vmem:[%s3220_s2] sm:$0xff] (!%p718_p9)  ;;  %v824_v43 = vld [vmem:[%s3220_s2 + $0x8] sm:$0xff] (!%p718_p9)  ;;  %v825_v44 = vld [vmem:[%s3220_s2 + $0x10] sm:$0xff] (!%p718_p9) }
  0x79   : > { %721 = sbr.rel (%p718_p9) target bundleno = 540 (0x21c), region = 94  ;;  %937 = vmatprep.mubr.f32.mxu0 (!%p718_p9), %v2489_v40  ;;  %1026 = vmatprep.mubr.f32.mxu1 (!%p718_p9), %v2489_v40  ;;  %v826_v48 = vld [vmem:[%s3220_s2 + $0x18] sm:$0xff] (!%p718_p9)  ;;  %vm860_vm0 = vcmask (!%p718_p9), 1042432   ;;  %vm2491_vm1 = vmmov (!%p718_p9), 1   ;;  %vm847_vm3 = vcmask (!%p718_p9), 613376  }
  0x7a   : > { %s1917_s9 = smul.u32 (!%p718_p9), 320, %s724_s5  ;;  %2221 = vset.pattern.permute.xlu0 (!%p718_p9), %v2490_v41  ;;  %2222 = vset.pattern.permute.xlu1 (!%p718_p9), %v2490_v41  ;;  %vm1889_vm2 = vmpackc.low (!%p718_p9), %vm860_vm0, %vm2491_vm1 }
  0x7b   : > { %829 = vperm.xlu0 (!%p718_p9), %2221, %v823_v42   ;;  %839 = vperm.xlu1 (!%p718_p9), %2222, %v825_v44   ;;  %v780_v44 = vld [vmem:[%s3218_s0 + $0x8] sm:$0xff] (!%p718_p9) }
  0x7c   : > { %s2722_s23 = scalar_lea.vmem (!%p718_p9), [#allocation2], %s1917_s9  ;;  %s1820_s9 = sshll.u32 (!%p718_p9), %s724_s5, 7 }
  0x7d   : > { %v784_v45 = vld [vmem:[%s2722_s23 + $0x8] sm:$0xff] (!%p718_p9)  ;;  %v786_v47 = vld [vmem:[%s2722_s23 + $0x18] sm:$0xff] (!%p718_p9)  ;;  %v783_v51 = vld [vmem:[%s2722_s23] sm:$0xff] (!%p718_p9)  ;;  %s2795_s30 = scalar_lea.vmem (!%p718_p9), [#allocation3], %s1820_s9  }
  0x7e   : > { %v788_v46 = vld [vmem:[%s2722_s23 + $0x28] sm:$0xff] (!%p718_p9)  ;;  %v790_v50 = vld [vmem:[%s2722_s23 + $0x38] sm:$0xff] (!%p718_p9)  ;;  %v787_v52 = vld [vmem:[%s2722_s23 + $0x20] sm:$0xff] (!%p718_p9) }
  0x7f   : > { %v1872_v49 = vpack.c.bf16 (!%p718_p9), %v788_v46, %v784_v45  ;;  %v1894_v53 = vpack.c.bf16 (!%p718_p9), %v790_v50, %v786_v47  ;;  %v1874_v54 = vpack.c.bf16 (!%p718_p9), %v787_v52, %v783_v51  ;;  %v785_v55 = vld [vmem:[%s2722_s23 + $0x10] sm:$0xff] (!%p718_p9)  ;;  %v792_v57 = vld [vmem:[%s2722_s23 + $0x48] sm:$0xff] (!%p718_p9)  ;;  %v794_v60 = vld [vmem:[%s2722_s23 + $0x58] sm:$0xff] (!%p718_p9)  ;;  %834 = vperm.xlu0 (!%p718_p9), %2221, %v824_v43   ;;  %844 = vperm.xlu1 (!%p718_p9), %2222, %v826_v48  }
  0x80   : > { %v789_v56 = vld [vmem:[%s2722_s23 + $0x30] sm:$0xff]  ;;  %v796_v59 = vld [vmem:[%s2722_s23 + $0x68] sm:$0xff]  ;;  %v798_v61 = vld [vmem:[%s2722_s23 + $0x78] sm:$0xff]  ;;  %s1834_s12 = sshll.u32 (%p2549_p6), %s2381_s14, 2  ;;  %s1867_s5 = sshll.u32 (%p2549_p6), %s2381_s14, 5 }
  0x81   : > { %1873 = vmatprep.subr.bf16.mxu0 %v1872_v49  ;;  %v1896_v58 = vpack.c.bf16 %v789_v56, %v785_v55  ;;  %1895 = vmatprep.subr.bf16.mxu1 %v1894_v53  ;;  %v1876_v62 = vpack.c.bf16 %v796_v59, %v792_v57  ;;  %v1898_v63 = vpack.c.bf16 %v798_v61, %v794_v60  ;;  %v791_v0 = vld [vmem:[%s2722_s23 + $0x40] sm:$0xff]  ;;  %v793_v2 = vld [vmem:[%s2722_s23 + $0x50] sm:$0xff]  ;;  %v800_v5 = vld [vmem:[%s2722_s23 + $0x88] sm:$0xff]  ;;  %s1092_s6 = ssub.s32 (%p2549_p6), 13, %s1834_s12  ;;  %s2820_s19 = scalar_lea.vmem (%p2549_p6), %s3221_s3, %s1867_s5  }
  0x82   : > { %1875 = vmatpush1.bf16.msra.mxu0 %v1874_v54  ;;  %v795_v1 = vld [vmem:[%s2722_s23 + $0x60] sm:$0xff]  ;;  %v797_v4 = vld [vmem:[%s2722_s23 + $0x70] sm:$0xff]  ;;  %v804_v6 = vld [vmem:[%s2722_s23 + $0xa8] sm:$0xff]  ;;  %p1093_p10 = scmp.lt.s32.totalorder (%p2549_p6), %s1092_s6, 4 }
  0x83   : > { %1897 = vmatpush1.bf16.msra.mxu1 %v1896_v58  ;;  %v1878_v3 = vpack.c.bf16 %v795_v1, %v791_v0  ;;  %1877 = vmatprep.subr.bf16.mxu0 %v1876_v62  ;;  %v1900_v7 = vpack.c.bf16 %v797_v4, %v793_v2  ;;  %v1880_v8 = vpack.c.bf16 %v804_v6, %v800_v5  ;;  %v802_v9 = vld [vmem:[%s2722_s23 + $0x98] sm:$0xff]  ;;  %v799_v11 = vld [vmem:[%s2722_s23 + $0x80] sm:$0xff]  ;;  %v801_v14 = vld [vmem:[%s2722_s23 + $0x90] sm:$0xff] }
  0x84   : > { %1899 = vmatprep.subr.bf16.mxu1 %v1898_v63  ;;  %v806_v10 = vld [vmem:[%s2722_s23 + $0xb8] sm:$0xff]  ;;  %v803_v13 = vld [vmem:[%s2722_s23 + $0xa0] sm:$0xff]  ;;  %v805_v15 = vld [vmem:[%s2722_s23 + $0xb0] sm:$0xff] }
  0x85   : > { %v1902_v12 = vpack.c.bf16 %v806_v10, %v802_v9  ;;  %v1882_v16 = vpack.c.bf16 %v803_v13, %v799_v11  ;;  %v808_v17 = vld [vmem:[%s2722_s23 + $0xc8] sm:$0xff]  ;;  %v810_v19 = vld [vmem:[%s2722_s23 + $0xd8] sm:$0xff]  ;;  %v1904_v20 = vpack.c.bf16 %v805_v15, %v801_v14  ;;  %v807_v23 = vld [vmem:[%s2722_s23 + $0xc0] sm:$0xff] }
  0x86   : > { %1879 = vmatpush1.bf16.msra.mxu0 %v1878_v3  ;;  %v812_v18 = vld [vmem:[%s2722_s23 + $0xe8] sm:$0xff]  ;;  %v814_v22 = vld [vmem:[%s2722_s23 + $0xf8] sm:$0xff]  ;;  %v811_v24 = vld [vmem:[%s2722_s23 + $0xe0] sm:$0xff] }
  0x87   : > { %1901 = vmatpush1.bf16.msra.mxu1 %v1900_v7  ;;  %1881 = vmatprep.subr.bf16.mxu0 %v1880_v8  ;;  %v1884_v21 = vpack.c.bf16 %v812_v18, %v808_v17  ;;  %v1906_v25 = vpack.c.bf16 %v814_v22, %v810_v19  ;;  %v809_v26 = vld [vmem:[%s2722_s23 + $0xd0] sm:$0xff]  ;;  %v816_v28 = vld [vmem:[%s2722_s23 + $0x108] sm:$0xff]  ;;  %v818_v30 = vld [vmem:[%s2722_s23 + $0x118] sm:$0xff]  ;;  %v1886_v32 = vpack.c.bf16 %v811_v24, %v807_v23 }
  0x88   : > { %1903 = vmatprep.subr.bf16.mxu1 %v1902_v12  ;;  %v813_v27 = vld [vmem:[%s2722_s23 + $0xf0] sm:$0xff]  ;;  %v820_v29 = vld [vmem:[%s2722_s23 + $0x128] sm:$0x7]  ;;  %v822_v31 = vld [vmem:[%s2722_s23 + $0x138] sm:$0x7] }
  0x89   : > { %v1908_v33 = vpack.c.bf16 %v813_v27, %v809_v26  ;;  %v1888_v34 = vpack.c.bf16 %v820_v29, %v816_v28  ;;  %v815_v35 = vld [vmem:[%s2722_s23 + $0x100] sm:$0xff]  ;;  %v1910_v37 = vpack.c.bf16 %v822_v31, %v818_v30  ;;  %v817_v38 = vld [vmem:[%s2722_s23 + $0x110] sm:$0xff]  ;;  %v782_v46 = vld [vmem:[%s3218_s0 + $0x18] sm:$0xff] }
  0x8a   : > { %1883 = vmatpush1.bf16.msra.mxu0 %v1882_v16  ;;  %v819_v36 = vld [vmem:[%s2722_s23 + $0x120] sm:$0x7]  ;;  %v821_v39 = vld [vmem:[%s2722_s23 + $0x130] sm:$0x7] }
  0x8b   : > { %1905 = vmatpush1.bf16.msra.mxu1 %v1904_v20  ;;  %1885 = vmatprep.subr.bf16.mxu0 %v1884_v21  ;;  %v1891_v41 = vpack.c.bf16 %v819_v36, %v815_v35  ;;  %v1913_v42 = vpack.c.bf16 %v821_v39, %v817_v38  ;;  %v779_v43 = vld [vmem:[%s3218_s0] sm:$0xff]  ;;  %v781_v45 = vld [vmem:[%s3218_s0 + $0x10] sm:$0xff] }
  0x8c   : > { %1907 = vmatprep.subr.bf16.mxu1 %v1906_v25 }
  0x8e   : > { %1887 = vmatpush1.bf16.msra.mxu0 %v1886_v32 }
  0x8f   : > { %1909 = vmatpush1.bf16.msra.mxu1 %v1908_v33  ;;  %1890 = vmatprep.subr.msk.bf16.mxu0 %vm1889_vm2, %v1888_v34 }
  0x90   : > { %1912 = vmatprep.subr.msk.bf16.mxu1 %vm1889_vm2, %v1910_v37 }
  0x92   : > { %1893 = vmatpush1.bf16.msk.msra.mxu0 %vm1889_vm2, %v1891_v41 }
  0x93   : > { %1915 = vmatpush1.bf16.msk.msra.mxu1 %vm1889_vm2, %v1913_v42 }
  0x95   : > { %1823 = vmatmul.mubr.msk.f32.vlgmr.msra.gmra.mrb[0].mxu0 %vm847_vm3, %v779_v43 }
  0x96   : > { %1829 = vmatmul.mubr.msk.f32.vlgmr.msra.gmra.mrb[0].mxu1 %vm847_vm3, %v779_v43  ;;  %943 = vmatprep.mubr.f32.mxu0 %v2489_v40 }
  0x97   : > { %1032 = vmatprep.mubr.f32.mxu1 %v2489_v40 }
  0x99   : > { %1824 = vmatmul.mubr.msk.f32.gmra.mrb[2].mxu0 %vm847_vm3, %v780_v44 }
  0x9a   : > { %1830 = vmatmul.mubr.msk.f32.gmra.mrb[2].mxu1 %vm847_vm3, %v780_v44  ;;  %949 = vmatprep.mubr.f32.mxu0 %v2489_v40 }
  0x9b   : > { %1038 = vmatprep.mubr.f32.mxu1 %v2489_v40 }
  0x9d   : > { %1825 = vmatmul.mubr.msk.f32.gmra.mrb[4].mxu0 %vm847_vm3, %v781_v45 }
  0x9e   : > { %1831 = vmatmul.mubr.msk.f32.gmra.mrb[4].mxu1 %vm847_vm3, %v781_v45  ;;  %955 = vmatprep.mubr.f32.mxu0 %v2489_v40 }
  0x9f   : > { %1044 = vmatprep.mubr.f32.mxu1 %v2489_v40 }
  0xa1   : > { %1826 = vmatmul.mubr.msk.f32.gmra.mrb[6].mxu0 %vm847_vm3, %v782_v46 }
  0xa2   : > { %1832 = vmatmul.mubr.msk.f32.gmra.mrb[6].mxu1 %vm847_vm3, %v782_v46 }
  0xfa   : > { %v830_v47 = vpop.permute.xlu0 %829  ;;  %v840_v1 = vpop.permute.xlu1 %839 }
  0xfe   : > { %v835_v55 = vpop.permute.xlu0 %834  ;;  %v845_v19 = vpop.permute.xlu1 %844 }
 0x168   : > { %v939_v48 = vpop.f32.mrb[0].mxu0 }
 0x169   : > { %v940_v49 = vadd.f32 %v939_v48, %v830_v47  ;;  %v1028_v50 = vpop.f32.mrb[0].mxu1  ;;  %v941_v51 = vpop.f32.mrb[1].mxu0 }
 0x16a   : > { %v1029_v52 = vadd.f32 %v1028_v50, %v830_v47  ;;  %v942_v53 = vadd.f32 %v941_v51, %v830_v47  ;;  %v1030_v54 = vpop.f32.mrb[1].mxu1 }
 0x16b   : > { %v1051_v56 = vmax.f32 %v940_v49, 0.0  ;;  %v1031_v57 = vadd.f32 %v1030_v54, %v830_v47 }
 0x16c   : > { %v1053_v58 = vmax.f32 %v1029_v52, 0.0  ;;  %v1052_v59 = vmax.f32 %v942_v53, 0.0  ;;  %v945_v40 = vpop.f32.mrb[2].mxu0 }
 0x16d   : > { %1067 = vst [vmem:[%s2795_s30] sm:$0xff] %v1051_v56  ;;  %v1054_v60 = vmax.f32 %v1031_v57, 0.0  ;;  %v946_v61 = vadd.f32 %v945_v40, %v835_v55  ;;  %v1034_v62 = vpop.f32.mrb[2].mxu1  ;;  %v947_v63 = vpop.f32.mrb[3].mxu0 }
 0x16e   : > { %1069 = vst [vmem:[%s2795_s30 + $0x10] sm:$0xff] %v1053_v58  ;;  %1068 = vst [vmem:[%s2795_s30 + $0x8] sm:$0xff] %v1052_v59  ;;  %v1035_v0 = vadd.f32 %v1034_v62, %v835_v55  ;;  %v948_v2 = vadd.f32 %v947_v63, %v835_v55  ;;  %v1036_v3 = vpop.f32.mrb[3].mxu1 }
 0x16f   : > { %1070 = vst [vmem:[%s2795_s30 + $0x18] sm:$0xff] %v1054_v60  ;;  %v1055_v4 = vmax.f32 %v946_v61, 0.0  ;;  %v1037_v5 = vadd.f32 %v1036_v3, %v835_v55 }
 0x170   : > { %v1057_v6 = vmax.f32 %v1035_v0, 0.0  ;;  %v1056_v7 = vmax.f32 %v948_v2, 0.0  ;;  %v951_v8 = vpop.f32.mrb[4].mxu0 }
 0x171   : > { %1071 = vst [vmem:[%s2795_s30 + $0x20] sm:$0xff] %v1055_v4  ;;  %v1058_v9 = vmax.f32 %v1037_v5, 0.0  ;;  %v952_v10 = vadd.f32 %v951_v8, %v840_v1  ;;  %v1040_v11 = vpop.f32.mrb[4].mxu1  ;;  %v953_v12 = vpop.f32.mrb[5].mxu0 }
 0x172   : > { %1073 = vst [vmem:[%s2795_s30 + $0x30] sm:$0xff] %v1057_v6  ;;  %1072 = vst [vmem:[%s2795_s30 + $0x28] sm:$0xff] %v1056_v7  ;;  %v1041_v13 = vadd.f32 %v1040_v11, %v840_v1  ;;  %v954_v14 = vadd.f32 %v953_v12, %v840_v1  ;;  %v1042_v15 = vpop.f32.mrb[5].mxu1 }
 0x173   : > { %1074 = vst [vmem:[%s2795_s30 + $0x38] sm:$0xff] %v1058_v9  ;;  %v1059_v16 = vmax.f32 %v952_v10, 0.0  ;;  %v1043_v17 = vadd.f32 %v1042_v15, %v840_v1 }
 0x174   : > { %v1061_v18 = vmax.f32 %v1041_v13, 0.0  ;;  %v1060_v20 = vmax.f32 %v954_v14, 0.0  ;;  %v957_v21 = vpop.f32.mrb[6].mxu0 }
 0x175   : > { %1075 = vst [vmem:[%s2795_s30 + $0x40] sm:$0xff] %v1059_v16  ;;  %v1062_v22 = vmax.f32 %v1043_v17, 0.0  ;;  %v958_v23 = vadd.f32 %v957_v21, %v845_v19  ;;  %v1046_v24 = vpop.f32.mrb[6].mxu1  ;;  %v959_v25 = vpop.f32.mrb[7].mxu0  ;;  %1089 = sbr.rel (!%p2549_p6) target bundleno = 540 (0x21c), region = 102 }
 0x176   : > { %1077 = vst [vmem:[%s2795_s30 + $0x50] sm:$0xff] %v1061_v18  ;;  %1076 = vst [vmem:[%s2795_s30 + $0x48] sm:$0xff] %v1060_v20  ;;  %v1047_v26 = vadd.f32 %v1046_v24, %v845_v19  ;;  %v960_v27 = vadd.f32 %v959_v25, %v845_v19  ;;  %v1048_v28 = vpop.f32.mrb[7].mxu1 }
 0x177   : > { %1078 = vst [vmem:[%s2795_s30 + $0x58] sm:$0xff] %v1062_v22  ;;  %v1063_v29 = vmax.f32 %v958_v23, 0.0  ;;  %v1049_v30 = vadd.f32 %v1048_v28, %v845_v19 }
 0x178   : > { %v1065_v31 = vmax.f32 %v1047_v26, 0.0  ;;  %v1064_v32 = vmax.f32 %v960_v27, 0.0 }
 0x179   : > { %1079 = vst [vmem:[%s2795_s30 + $0x60] sm:$0xff] %v1063_v29  ;;  %v1066_v33 = vmax.f32 %v1049_v30, 0.0 }
 0x17a   : > { %1081 = vst [vmem:[%s2795_s30 + $0x70] sm:$0xff] %v1065_v31  ;;  %1080 = vst [vmem:[%s2795_s30 + $0x68] sm:$0xff] %v1064_v32 }
 0x17b   : > { %1082 = vst [vmem:[%s2795_s30 + $0x78] sm:$0xff] %v1066_v33 }
 0x17c   : > { %s3260_s6 = smov (!%p1093_p10, %s1092_s6), 4 }
 0x17d   : > { %s1835_s20 = sshll.u32 %s3260_s6, 9  ;;  %s2822_s23 = sshll.u32 %s3260_s6, 3 }
 0x17e   : > { %p1839_p11 = scmp.eq.s32.totalorder %s1835_s20, 0 }
 0x17f   : > { %p1105_p12 = scmp.lt.u32.totalorder (!%p1839_p11), %s2822_s23, 8 }
 0x180   : > { %1104 = sbr.rel (%p1839_p11) target bundleno = 540 (0x21c), region = 106 }
 0x187   : > { %1108 = sbr.rel (%p1105_p12) target bundleno = 531 (0x213), region = 110  ;;  %s2826_s21 = sand.u32 (!%p1105_p12), 7, %s2822_s23  }
 0x188   : > { %p1130_p6 = scmp.eq.s32.totalorder (!%p1105_p12), %s2826_s21, 0  ;;  %p1840_p13 = scmp.ne.s32.totalorder (!%p1105_p12), %s2826_s21, 0 }
 0x18e   : > { %1133 = sbr.rel (%p1840_p13) target bundleno = 461 (0x1cd), region = 125  ;;  %s1134_s14 = sshrl.u32 (!%p1840_p13), %s2822_s23, 3 }
 0x18f   : > { %s2833_s24 = sshrl.u32 (!%p1840_p13), %s1134_s14, 4 }
 0x190   : > { %p1841_p0 = scmp.le.s32.totalorder (!%p1840_p13), %s2833_s24, 0 }
 0x195   : > { %1690 = sbr.rel (%p1841_p0) target bundleno = 441 (0x1b9), region = 279  ;;  %s3229_s25 = smov (!%p1841_p0), %s2820_s19 }
 0x196   : > { %s3230_s26 = smov (!%p1841_p0), %s2795_s30  ;;  %s2842_s27 = smov (!%p1841_p0), 0  }
 0x197   : > { %s2844_s28 = smov (!%p1841_p0), 0  }
 0x19c LB: >> { %v1147_v34 = vld [vmem:[%s2429_s26] sm:$0xff]  ;;  %v1149_v35 = vld [vmem:[%s2429_s26 + $0x8] sm:$0xff]  ;;  %v1151_v36 = vld [vmem:[%s2429_s26 + $0x10] sm:$0xff]  ;;  %s1275_s29 = sadd.s32 1, %s2433_s27  ;;  %s1141_s28 = sadd.s32 1, %s2437_s28   ;;  %s2437_s28 = sphi %s2844_s28, %s1141_s28   ;;  %s2433_s27 = sphi %s2842_s27, %s3234_s27   ;;  %s2429_s26 = sphi %s3230_s26, %s3233_s26   ;;  %s2425_s25 = sphi %s3229_s25, %s3232_s25  }
 0x19d   : >> { %1148 = vst [vmem:[%s2425_s25] sm:$0xff] %v1147_v34  ;;  %1150 = vst [vmem:[%s2425_s25 + $0x8] sm:$0xff] %v1149_v35  ;;  %v1153_v37 = vld [vmem:[%s2429_s26 + $0x18] sm:$0xff]  ;;  %v1155_v38 = vld [vmem:[%s2429_s26 + $0x20] sm:$0xff]  ;;  %p2889_p1 = scmp.ge.s32.totalorder %s1275_s29, %s2833_s24  ;;  %p1140_p2 = scmp.ge.s32.totalorder %s1141_s28, %s2833_s24 }
 0x19e   : >> { %1152 = vst [vmem:[%s2425_s25 + $0x10] sm:$0xff] %v1151_v36  ;;  %v1157_v39 = vld [vmem:[%s2429_s26 + $0x28] sm:$0xff]  ;;  %1154 = vst [vmem:[%s2425_s25 + $0x18] sm:$0xff] %v1153_v37  ;;  %v1159_v41 = vld [vmem:[%s2429_s26 + $0x30] sm:$0xff] }
 0x19f   : >> { %1156 = vst [vmem:[%s2425_s25 + $0x20] sm:$0xff] %v1155_v38  ;;  %1158 = vst [vmem:[%s2425_s25 + $0x28] sm:$0xff] %v1157_v39  ;;  %v1161_v42 = vld [vmem:[%s2429_s26 + $0x38] sm:$0xff]  ;;  %v1163_v43 = vld [vmem:[%s2429_s26 + $0x40] sm:$0xff]  ;;  %s3262_s29 = smov (%p2889_p1, %s1275_s29), 0 }
 0x1a0   : >> { %1180 = vst [vmem:[%s2425_s25 + $0x68] sm:$0xff] %v1155_v38  ;;  %1182 = vst [vmem:[%s2425_s25 + $0x70] sm:$0xff] %v1157_v39  ;;  %v1165_v44 = vld [vmem:[%s2429_s26 + $0x48] sm:$0xff]  ;;  %v1167_v45 = vld [vmem:[%s2429_s26 + $0x50] sm:$0xff]  ;;  %s1842_s11 = sshll.u32 %s3262_s29, 7  ;;  %s3234_s27 = smov %s3262_s29 }
 0x1a1   : >> { %1160 = vst [vmem:[%s2425_s25 + $0x30] sm:$0xff] %v1159_v41  ;;  %1162 = vst [vmem:[%s2425_s25 + $0x38] sm:$0xff] %v1161_v42  ;;  %v1169_v46 = vld [vmem:[%s2429_s26 + $0x58] sm:$0xff]  ;;  %v1171_v47 = vld [vmem:[%s2429_s26 + $0x60] sm:$0xff]  ;;  %s1280_s7 = scalar_lea.vmem %s2795_s30, %s1842_s11 [#allocation3]   ;;  %s1281_s8 = scalar_lea.vmem %s2820_s19, %s1842_s11  }
 0x1a2   : >> { %1164 = vst [vmem:[%s2425_s25 + $0x40] sm:$0xff] %v1163_v43  ;;  %1184 = vst [vmem:[%s2425_s25 + $0x78] sm:$0xff] %v1159_v41  ;;  %v1197_v48 = vld [vmem:[%s2429_s26 + $0x68] sm:$0xff]  ;;  %v1199_v49 = vld [vmem:[%s2429_s26 + $0x70] sm:$0xff] }
 0x1a3   : >> { %1186 = vst [vmem:[%s2425_s25 + $0x80] sm:$0xff] %v1161_v42  ;;  %1188 = vst [vmem:[%s2425_s25 + $0x88] sm:$0xff] %v1163_v43  ;;  %v1201_v50 = vld [vmem:[%s2429_s26 + $0x78] sm:$0xff]  ;;  %v1203_v51 = vld [vmem:[%s2429_s26 + $0x80] sm:$0xff] }
 0x1a4   : >> { %1212 = vst [vmem:[%s2425_s25 + $0xd0] sm:$0xff] %v1163_v43  ;;  %1166 = vst [vmem:[%s2425_s25 + $0x48] sm:$0xff] %v1165_v44  ;;  %v1229_v52 = vld [vmem:[%s2429_s26 + $0x88] sm:$0xff]  ;;  %v1231_v53 = vld [vmem:[%s2429_s26 + $0x90] sm:$0xff] }
 0x1a5   : >> { %1168 = vst [vmem:[%s2425_s25 + $0x50] sm:$0xff] %v1167_v45  ;;  %1170 = vst [vmem:[%s2425_s25 + $0x58] sm:$0xff] %v1169_v46  ;;  %v1233_v54 = vld [vmem:[%s2429_s26 + $0x98] sm:$0xff]  ;;  %v1235_v55 = vld [vmem:[%s2429_s26 + $0xa0] sm:$0xff] }
 0x1a6   : >> { %1190 = vst [vmem:[%s2425_s25 + $0x90] sm:$0xff] %v1165_v44  ;;  %1192 = vst [vmem:[%s2425_s25 + $0x98] sm:$0xff] %v1167_v45  ;;  %v1261_v56 = vld [vmem:[%s2429_s26 + $0xa8] sm:$0xff]  ;;  %v1263_v57 = vld [vmem:[%s2429_s26 + $0xb0] sm:$0xff] }
 0x1a7   : >> { %1194 = vst [vmem:[%s2425_s25 + $0xa0] sm:$0xff] %v1169_v46  ;;  %1214 = vst [vmem:[%s2425_s25 + $0xd8] sm:$0xff] %v1165_v44  ;;  %v1265_v58 = vld [vmem:[%s2429_s26 + $0xb8] sm:$0xff]  ;;  %v1267_v59 = vld [vmem:[%s2429_s26 + $0xc0] sm:$0xff] }
 0x1a8   : >> { %1216 = vst [vmem:[%s2425_s25 + $0xe0] sm:$0xff] %v1167_v45  ;;  %1218 = vst [vmem:[%s2425_s25 + $0xe8] sm:$0xff] %v1169_v46  ;;  %v1269_v40 = vld [vmem:[%s2429_s26 + $0xc8] sm:$0xff]  ;;  %v1271_v60 = vld [vmem:[%s2429_s26 + $0xd0] sm:$0xff] }
 0x1a9   : >> { %1172 = vst [vmem:[%s2425_s25 + $0x60] sm:$0xff] %v1171_v47  ;;  %1196 = vst [vmem:[%s2425_s25 + $0xa8] sm:$0xff] %v1171_v47  ;;  %v1273_v61 = vld [vmem:[%s2429_s26 + $0xd8] sm:$0xff]  ;;  %s3233_s26 = smov %s1280_s7 }
 0x1aa   : >> { %1198 = vst [vmem:[%s2425_s25 + $0xb0] sm:$0xff] %v1197_v48  ;;  %1200 = vst [vmem:[%s2425_s25 + $0xb8] sm:$0xff] %v1199_v49 }
 0x1ab   : >> { %1220 = vst [vmem:[%s2425_s25 + $0xf0] sm:$0xff] %v1171_v47  ;;  %1222 = vst [vmem:[%s2425_s25 + $0xf8] sm:$0xff] %v1197_v48 }
 0x1ac   : >> { %1224 = vst [vmem:[%s2425_s25 + $0x100] sm:$0xff] %v1199_v49  ;;  %1244 = vst [vmem:[%s2425_s25 + $0x138] sm:$0xff] %v1171_v47 }
 0x1ad   : >> { %1246 = vst [vmem:[%s2425_s25 + $0x140] sm:$0xff] %v1197_v48  ;;  %1248 = vst [vmem:[%s2425_s25 + $0x148] sm:$0xff] %v1199_v49 }
 0x1ae   : >> { %1202 = vst [vmem:[%s2425_s25 + $0xc0] sm:$0xff] %v1201_v50  ;;  %1204 = vst [vmem:[%s2425_s25 + $0xc8] sm:$0xff] %v1203_v51 }
 0x1af   : >> { %1226 = vst [vmem:[%s2425_s25 + $0x108] sm:$0xff] %v1201_v50  ;;  %1228 = vst [vmem:[%s2425_s25 + $0x110] sm:$0xff] %v1203_v51 }
 0x1b0   : >> { %1230 = vst [vmem:[%s2425_s25 + $0x118] sm:$0xff] %v1229_v52  ;;  %1250 = vst [vmem:[%s2425_s25 + $0x150] sm:$0xff] %v1201_v50 }
 0x1b1   : >> { %1252 = vst [vmem:[%s2425_s25 + $0x158] sm:$0xff] %v1203_v51  ;;  %1254 = vst [vmem:[%s2425_s25 + $0x160] sm:$0xff] %v1229_v52 }
 0x1b2   : >> { %1232 = vst [vmem:[%s2425_s25 + $0x120] sm:$0xff] %v1231_v53  ;;  %1234 = vst [vmem:[%s2425_s25 + $0x128] sm:$0xff] %v1233_v54  ;;  %1143 = sbr.rel (!%p1140_p2) target bundleno = 412 (0x19c), region = 285 }
 0x1b3   : >> { %1236 = vst [vmem:[%s2425_s25 + $0x130] sm:$0xff] %v1235_v55  ;;  %1256 = vst [vmem:[%s2425_s25 + $0x168] sm:$0xff] %v1231_v53 }
 0x1b4   : >> { %1258 = vst [vmem:[%s2425_s25 + $0x170] sm:$0xff] %v1233_v54  ;;  %1260 = vst [vmem:[%s2425_s25 + $0x178] sm:$0xff] %v1235_v55 }
 0x1b5   : >> { %1262 = vst [vmem:[%s2425_s25 + $0x180] sm:$0xff] %v1261_v56  ;;  %1264 = vst [vmem:[%s2425_s25 + $0x188] sm:$0xff] %v1263_v57 }
 0x1b6   : >> { %1266 = vst [vmem:[%s2425_s25 + $0x190] sm:$0xff] %v1265_v58  ;;  %1268 = vst [vmem:[%s2425_s25 + $0x198] sm:$0xff] %v1267_v59 }
 0x1b7   : >> { %1270 = vst [vmem:[%s2425_s25 + $0x1a0] sm:$0xff] %v1269_v40  ;;  %1272 = vst [vmem:[%s2425_s25 + $0x1a8] sm:$0xff] %v1271_v60 }
 0x1b8   : >> { %1274 = vst [vmem:[%s2425_s25 + $0x1b0] sm:$0xff] %v1273_v61  ;;  %s3232_s25 = smov %s1281_s8 }
 0x1b9 PF: > { %s2971_s9 = sand.u32 15, %s1134_s14   ;;  %s1868_s12 = sshll.u32 %s2833_s24, 11 }
 0x1ba   : > { %s1286_s5 = sshra.s32 %s1868_s12, 4  ;;  %p1847_p3 = scmp.le.s32.totalorder %s2971_s9, 0 }
 0x1bb   : > { %s2975_s6 = scalar_lea.vmem %s2795_s30, %s1286_s5 [#allocation3]   ;;  %s2978_s18 = scalar_lea.vmem %s2820_s19, %s1286_s5  }
 0x1bc   : > { %1704 = sbr.rel (%p1847_p3) target bundleno = 461 (0x1cd), region = 290  ;;  %s3235_s10 = smov (!%p1847_p3), %s2978_s18 }
 0x1bd   : > { %s3236_s20 = smov (!%p1847_p3), %s2975_s6  ;;  %s2987_s25 = smov (!%p1847_p3), 0  }
 0x1be   : > { %s2451_s26 = smov (!%p1847_p3), 0  }
 0x1c3 LB: >> { %v1302_v62 = vld [vmem:[%s2445_s20] sm:$0xff]  ;;  %s1310_s14 = sadd.s32 1, %s2449_s25  ;;  %s1296_s26 = sadd.s32 1, %s2453_s26   ;;  %s2453_s26 = sphi %s2451_s26, %s1296_s26   ;;  %s2449_s25 = sphi %s2987_s25, %s3237_s25   ;;  %s2445_s20 = sphi %s3236_s20, %s1315_s20   ;;  %s2441_s10 = sphi %s3235_s10, %s1316_s10  }
 0x1c4   : >> { %v1304_v63 = vld [vmem:[%s2445_s20 + $0x20] sm:$0xff]  ;;  %1303 = vst [vmem:[%s2441_s10] sm:$0xff] %v1302_v62  ;;  %p1311_p4 = scmp.ge.s32.totalorder %s1310_s14, %s2971_s9  ;;  %p1295_p5 = scmp.ge.s32.totalorder %s1296_s26, %s2971_s9 }
 0x1c5   : >> { %v1306_v0 = vld [vmem:[%s2445_s20 + $0x40] sm:$0xff]  ;;  %1305 = vst [vmem:[%s2441_s10 + $0x68] sm:$0xff] %v1304_v63 }
 0x1c6   : >> { %1307 = vst [vmem:[%s2441_s10 + $0xd0] sm:$0xff] %v1306_v0  ;;  %v1308_v1 = vld [vmem:[%s2445_s20 + $0x60] sm:$0xff]  ;;  %s3264_s14 = smov (%p1311_p4, %s1310_s14), 0  ;;  %1298 = sbr.rel (!%p1295_p5) target bundleno = 451 (0x1c3), region = 296 }
 0x1c7   : >> { %1309 = vst [vmem:[%s2441_s10 + $0x138] sm:$0xff] %v1308_v1  ;;  %s1848_s24 = sshll.u32 %s3264_s14, 3  ;;  %s3237_s25 = smov %s3264_s14 }
 0x1c8   : >> { %s1315_s20 = scalar_lea.vmem %s2975_s6, %s1848_s24 [#allocation3]   ;;  %s1316_s10 = scalar_lea.vmem %s2978_s18, %s1848_s24  }
 0x1cd PF: > { %1319 = sbr.rel (%p1130_p6) target bundleno = 531 (0x213), region = 143  ;;  %s1321_s27 = ssub.s32 (!%p1130_p6), %s2822_s23, %s2826_s21 }
 0x1ce   : > { %s1325_s28 = sshrl.u32 (!%p1130_p6), %s2822_s23, 3  ;;  %s3008_s29 = scalar_lea.vmem (!%p1130_p6), %s2795_s30, %s1321_s27 [#allocation3] }
 0x1cf   : > { %s3011_s4 = scalar_lea.vmem (!%p1130_p6), %s2820_s19, %s1321_s27  ;;  %s3015_s11 = sshrl.u32 (!%p1130_p6), %s1325_s28, 4 }
 0x1d0   : > { %p1850_p7 = scmp.le.s32.totalorder (!%p1130_p6), %s3015_s11, 0 }
 0x1d4   : > { %1718 = sbr.rel (%p1850_p7) target bundleno = 504 (0x1f8), region = 301  ;;  %s3238_s7 = smov (!%p1850_p7), %s2820_s19 }
 0x1d5   : > { %s3239_s8 = smov (!%p1850_p7), %s2795_s30  ;;  %s3024_s9 = smov (!%p1850_p7), 0  }
 0x1d6   : > { %s3026_s12 = smov (!%p1850_p7), 0  }
 0x1db LB: >> { %v1338_v2 = vld [vmem:[%s2461_s8] sm:$0xff]  ;;  %v1340_v3 = vld [vmem:[%s2461_s8 + $0x8] sm:$0xff]  ;;  %v1342_v4 = vld [vmem:[%s2461_s8 + $0x10] sm:$0xff]  ;;  %s1466_s5 = sadd.s32 1, %s2465_s9  ;;  %s1332_s12 = sadd.s32 1, %s2469_s12   ;;  %s2469_s12 = sphi %s3026_s12, %s1332_s12   ;;  %s2465_s9 = sphi %s3024_s9, %s3243_s9   ;;  %s2461_s8 = sphi %s3239_s8, %s3242_s8   ;;  %s2457_s7 = sphi %s3238_s7, %s3241_s7  }
 0x1dc   : >> { %1339 = vst [vmem:[%s2457_s7] sm:$0xff] %v1338_v2  ;;  %1341 = vst [vmem:[%s2457_s7 + $0x8] sm:$0xff] %v1340_v3  ;;  %v1344_v5 = vld [vmem:[%s2461_s8 + $0x18] sm:$0xff]  ;;  %v1346_v6 = vld [vmem:[%s2461_s8 + $0x20] sm:$0xff]  ;;  %p3071_p8 = scmp.ge.s32.totalorder %s1466_s5, %s3015_s11  ;;  %p1331_p9 = scmp.ge.s32.totalorder %s1332_s12, %s3015_s11 }
 0x1dd   : >> { %1343 = vst [vmem:[%s2457_s7 + $0x10] sm:$0xff] %v1342_v4  ;;  %v1348_v7 = vld [vmem:[%s2461_s8 + $0x28] sm:$0xff]  ;;  %1345 = vst [vmem:[%s2457_s7 + $0x18] sm:$0xff] %v1344_v5  ;;  %v1350_v8 = vld [vmem:[%s2461_s8 + $0x30] sm:$0xff] }
 0x1de   : >> { %1347 = vst [vmem:[%s2457_s7 + $0x20] sm:$0xff] %v1346_v6  ;;  %1349 = vst [vmem:[%s2457_s7 + $0x28] sm:$0xff] %v1348_v7  ;;  %v1352_v9 = vld [vmem:[%s2461_s8 + $0x38] sm:$0xff]  ;;  %v1354_v10 = vld [vmem:[%s2461_s8 + $0x40] sm:$0xff]  ;;  %s3266_s5 = smov (%p3071_p8, %s1466_s5), 0 }
 0x1df   : >> { %1371 = vst [vmem:[%s2457_s7 + $0x68] sm:$0xff] %v1346_v6  ;;  %1373 = vst [vmem:[%s2457_s7 + $0x70] sm:$0xff] %v1348_v7  ;;  %v1356_v11 = vld [vmem:[%s2461_s8 + $0x48] sm:$0xff]  ;;  %v1358_v12 = vld [vmem:[%s2461_s8 + $0x50] sm:$0xff]  ;;  %s1851_s18 = sshll.u32 %s3266_s5, 7  ;;  %s3243_s9 = smov %s3266_s5 }
 0x1e0   : >> { %1351 = vst [vmem:[%s2457_s7 + $0x30] sm:$0xff] %v1350_v8  ;;  %1353 = vst [vmem:[%s2457_s7 + $0x38] sm:$0xff] %v1352_v9  ;;  %v1360_v13 = vld [vmem:[%s2461_s8 + $0x58] sm:$0xff]  ;;  %v1362_v14 = vld [vmem:[%s2461_s8 + $0x60] sm:$0xff]  ;;  %s1471_s10 = scalar_lea.vmem %s2795_s30, %s1851_s18 [#allocation3]   ;;  %s1472_s20 = scalar_lea.vmem %s2820_s19, %s1851_s18  }
 0x1e1   : >> { %1355 = vst [vmem:[%s2457_s7 + $0x40] sm:$0xff] %v1354_v10  ;;  %1375 = vst [vmem:[%s2457_s7 + $0x78] sm:$0xff] %v1350_v8  ;;  %v1388_v15 = vld [vmem:[%s2461_s8 + $0x68] sm:$0xff]  ;;  %v1390_v16 = vld [vmem:[%s2461_s8 + $0x70] sm:$0xff] }
 0x1e2   : >> { %1377 = vst [vmem:[%s2457_s7 + $0x80] sm:$0xff] %v1352_v9  ;;  %1379 = vst [vmem:[%s2457_s7 + $0x88] sm:$0xff] %v1354_v10  ;;  %v1392_v17 = vld [vmem:[%s2461_s8 + $0x78] sm:$0xff]  ;;  %v1394_v18 = vld [vmem:[%s2461_s8 + $0x80] sm:$0xff] }
 0x1e3   : >> { %1403 = vst [vmem:[%s2457_s7 + $0xd0] sm:$0xff] %v1354_v10  ;;  %1357 = vst [vmem:[%s2457_s7 + $0x48] sm:$0xff] %v1356_v11  ;;  %v1420_v19 = vld [vmem:[%s2461_s8 + $0x88] sm:$0xff]  ;;  %v1422_v20 = vld [vmem:[%s2461_s8 + $0x90] sm:$0xff] }
 0x1e4   : >> { %1359 = vst [vmem:[%s2457_s7 + $0x50] sm:$0xff] %v1358_v12  ;;  %1361 = vst [vmem:[%s2457_s7 + $0x58] sm:$0xff] %v1360_v13  ;;  %v1424_v21 = vld [vmem:[%s2461_s8 + $0x98] sm:$0xff]  ;;  %v1426_v22 = vld [vmem:[%s2461_s8 + $0xa0] sm:$0xff] }
 0x1e5   : >> { %1381 = vst [vmem:[%s2457_s7 + $0x90] sm:$0xff] %v1356_v11  ;;  %1383 = vst [vmem:[%s2457_s7 + $0x98] sm:$0xff] %v1358_v12  ;;  %v1452_v23 = vld [vmem:[%s2461_s8 + $0xa8] sm:$0xff]  ;;  %v1454_v24 = vld [vmem:[%s2461_s8 + $0xb0] sm:$0xff] }
 0x1e6   : >> { %1385 = vst [vmem:[%s2457_s7 + $0xa0] sm:$0xff] %v1360_v13  ;;  %1405 = vst [vmem:[%s2457_s7 + $0xd8] sm:$0xff] %v1356_v11  ;;  %v1456_v25 = vld [vmem:[%s2461_s8 + $0xb8] sm:$0xff]  ;;  %v1458_v26 = vld [vmem:[%s2461_s8 + $0xc0] sm:$0xff] }
 0x1e7   : >> { %1407 = vst [vmem:[%s2457_s7 + $0xe0] sm:$0xff] %v1358_v12  ;;  %1409 = vst [vmem:[%s2457_s7 + $0xe8] sm:$0xff] %v1360_v13  ;;  %v1460_v27 = vld [vmem:[%s2461_s8 + $0xc8] sm:$0xff]  ;;  %v1462_v28 = vld [vmem:[%s2461_s8 + $0xd0] sm:$0xff] }
 0x1e8   : >> { %1363 = vst [vmem:[%s2457_s7 + $0x60] sm:$0xff] %v1362_v14  ;;  %1387 = vst [vmem:[%s2457_s7 + $0xa8] sm:$0xff] %v1362_v14  ;;  %v1464_v29 = vld [vmem:[%s2461_s8 + $0xd8] sm:$0xff]  ;;  %s3242_s8 = smov %s1471_s10 }
 0x1e9   : >> { %1389 = vst [vmem:[%s2457_s7 + $0xb0] sm:$0xff] %v1388_v15  ;;  %1391 = vst [vmem:[%s2457_s7 + $0xb8] sm:$0xff] %v1390_v16 }
 0x1ea   : >> { %1411 = vst [vmem:[%s2457_s7 + $0xf0] sm:$0xff] %v1362_v14  ;;  %1413 = vst [vmem:[%s2457_s7 + $0xf8] sm:$0xff] %v1388_v15 }
 0x1eb   : >> { %1415 = vst [vmem:[%s2457_s7 + $0x100] sm:$0xff] %v1390_v16  ;;  %1435 = vst [vmem:[%s2457_s7 + $0x138] sm:$0xff] %v1362_v14 }
 0x1ec   : >> { %1437 = vst [vmem:[%s2457_s7 + $0x140] sm:$0xff] %v1388_v15  ;;  %1439 = vst [vmem:[%s2457_s7 + $0x148] sm:$0xff] %v1390_v16 }
 0x1ed   : >> { %1393 = vst [vmem:[%s2457_s7 + $0xc0] sm:$0xff] %v1392_v17  ;;  %1395 = vst [vmem:[%s2457_s7 + $0xc8] sm:$0xff] %v1394_v18 }
 0x1ee   : >> { %1417 = vst [vmem:[%s2457_s7 + $0x108] sm:$0xff] %v1392_v17  ;;  %1419 = vst [vmem:[%s2457_s7 + $0x110] sm:$0xff] %v1394_v18 }
 0x1ef   : >> { %1421 = vst [vmem:[%s2457_s7 + $0x118] sm:$0xff] %v1420_v19  ;;  %1441 = vst [vmem:[%s2457_s7 + $0x150] sm:$0xff] %v1392_v17 }
 0x1f0   : >> { %1443 = vst [vmem:[%s2457_s7 + $0x158] sm:$0xff] %v1394_v18  ;;  %1445 = vst [vmem:[%s2457_s7 + $0x160] sm:$0xff] %v1420_v19 }
 0x1f1   : >> { %1423 = vst [vmem:[%s2457_s7 + $0x120] sm:$0xff] %v1422_v20  ;;  %1425 = vst [vmem:[%s2457_s7 + $0x128] sm:$0xff] %v1424_v21  ;;  %1334 = sbr.rel (!%p1331_p9) target bundleno = 475 (0x1db), region = 307 }
 0x1f2   : >> { %1427 = vst [vmem:[%s2457_s7 + $0x130] sm:$0xff] %v1426_v22  ;;  %1447 = vst [vmem:[%s2457_s7 + $0x168] sm:$0xff] %v1422_v20 }
 0x1f3   : >> { %1449 = vst [vmem:[%s2457_s7 + $0x170] sm:$0xff] %v1424_v21  ;;  %1451 = vst [vmem:[%s2457_s7 + $0x178] sm:$0xff] %v1426_v22 }
 0x1f4   : >> { %1453 = vst [vmem:[%s2457_s7 + $0x180] sm:$0xff] %v1452_v23  ;;  %1455 = vst [vmem:[%s2457_s7 + $0x188] sm:$0xff] %v1454_v24 }
 0x1f5   : >> { %1457 = vst [vmem:[%s2457_s7 + $0x190] sm:$0xff] %v1456_v25  ;;  %1459 = vst [vmem:[%s2457_s7 + $0x198] sm:$0xff] %v1458_v26 }
 0x1f6   : >> { %1461 = vst [vmem:[%s2457_s7 + $0x1a0] sm:$0xff] %v1460_v27  ;;  %1463 = vst [vmem:[%s2457_s7 + $0x1a8] sm:$0xff] %v1462_v28 }
 0x1f7   : >> { %1465 = vst [vmem:[%s2457_s7 + $0x1b0] sm:$0xff] %v1464_v29  ;;  %s3241_s7 = smov %s1472_s20 }
 0x1f8 PF: > { %s3153_s25 = sand.u32 15, %s1325_s28   ;;  %s1870_s26 = sshll.u32 %s3015_s11, 11 }
 0x1f9   : > { %s1477_s14 = sshra.s32 %s1870_s26, 4  ;;  %p1856_p10 = scmp.le.s32.totalorder %s3153_s25, 0 }
 0x1fa   : > { %s3157_s24 = scalar_lea.vmem %s2795_s30, %s1477_s14 [#allocation3]   ;;  %s3160_s27 = scalar_lea.vmem %s2820_s19, %s1477_s14  }
 0x1fb   : > { %1732 = sbr.rel (%p1856_p10) target bundleno = 524 (0x20c), region = 312  ;;  %s3244_s7 = smov (!%p1856_p10), %s3160_s27 }
 0x1fc   : > { %s3245_s8 = smov (!%p1856_p10), %s3157_s24  ;;  %s3169_s9 = smov (!%p1856_p10), 0  }
 0x1fd   : > { %s2483_s12 = smov (!%p1856_p10), 0  }
 0x202 LB: >> { %v1493_v30 = vld [vmem:[%s2477_s8] sm:$0xff]  ;;  %s1501_s28 = sadd.s32 1, %s2481_s9  ;;  %s1487_s12 = sadd.s32 1, %s2485_s12   ;;  %s2485_s12 = sphi %s2483_s12, %s1487_s12   ;;  %s2481_s9 = sphi %s3169_s9, %s3246_s9   ;;  %s2477_s8 = sphi %s3245_s8, %s1506_s8   ;;  %s2473_s7 = sphi %s3244_s7, %s1507_s7  }
 0x203   : >> { %v1495_v31 = vld [vmem:[%s2477_s8 + $0x20] sm:$0xff]  ;;  %1494 = vst [vmem:[%s2473_s7] sm:$0xff] %v1493_v30  ;;  %p1502_p11 = scmp.ge.s32.totalorder %s1501_s28, %s3153_s25  ;;  %p1486_p12 = scmp.ge.s32.totalorder %s1487_s12, %s3153_s25 }
 0x204   : >> { %v1497_v32 = vld [vmem:[%s2477_s8 + $0x40] sm:$0xff]  ;;  %1496 = vst [vmem:[%s2473_s7 + $0x68] sm:$0xff] %v1495_v31 }
 0x205   : >> { %1498 = vst [vmem:[%s2473_s7 + $0xd0] sm:$0xff] %v1497_v32  ;;  %v1499_v33 = vld [vmem:[%s2477_s8 + $0x60] sm:$0xff]  ;;  %s3268_s28 = smov (%p1502_p11, %s1501_s28), 0  ;;  %1489 = sbr.rel (!%p1486_p12) target bundleno = 514 (0x202), region = 318 }
 0x206   : >> { %1500 = vst [vmem:[%s2473_s7 + $0x138] sm:$0xff] %v1499_v33  ;;  %s1857_s11 = sshll.u32 %s3268_s28, 3  ;;  %s3246_s9 = smov %s3268_s28 }
 0x207   : >> { %s1506_s8 = scalar_lea.vmem %s3157_s24, %s1857_s11 [#allocation3]   ;;  %s1507_s7 = scalar_lea.vmem %s3160_s27, %s1857_s11  }
 0x20c PF: > { %s2492_s5 = smov 0  }
 0x20d   : > { %s1508_s6 = sshllo.u32 %s2492_s5, %s2826_s21 }
 0x20e   : > { %v1517_v34 = vld [vmem:[%s3008_s29] sm:%s1508_s6] }
 0x20f   : > { %v1519_v35 = vld [vmem:[%s3008_s29 + $0x20] sm:%s1508_s6]  ;;  %1518 = vst [vmem:[%s3011_s4] sm:%s1508_s6] %v1517_v34 }
 0x210   : > { %1520 = vst [vmem:[%s3011_s4 + $0x68] sm:%s1508_s6] %v1519_v35  ;;  %v1521_v36 = vld [vmem:[%s3008_s29 + $0x40] sm:%s1508_s6] }
 0x211   : > { %v1523_v37 = vld [vmem:[%s3008_s29 + $0x60] sm:%s1508_s6]  ;;  %1522 = vst [vmem:[%s3011_s4 + $0xd0] sm:%s1508_s6] %v1521_v36 }
 0x212   : > { %1524 = vst [vmem:[%s3011_s4 + $0x138] sm:%s1508_s6] %v1523_v37 }
 0x213 PF: > { %p1859_p6 = scmp.ge.u32.totalorder %s2822_s23, 8 }
 0x214   : > { %s2493_s18 = smov (!%p1859_p6), 0  }
 0x215   : > { %1111 = sbr.rel (%p1859_p6) target bundleno = 540 (0x21c), region = 114  ;;  %s1112_s21 = sshllo.u32 (!%p1859_p6), %s2493_s18, %s2822_s23 }
 0x216   : > { %v1121_v38 = vld [vmem:[%s2795_s30] sm:%s1112_s21] (!%p1859_p6) }
 0x217   : > { %v1123_v39 = vld [vmem:[%s2795_s30 + $0x20] sm:%s1112_s21] (!%p1859_p6)  ;;  %1122 = vst [vmem:[%s2820_s19] sm:%s1112_s21] (!%p1859_p6), %v1121_v38 }
 0x218   : > { %1124 = vst [vmem:[%s2820_s19 + $0x68] sm:%s1112_s21] (!%p1859_p6), %v1123_v39  ;;  %v1125_v41 = vld [vmem:[%s2795_s30 + $0x40] sm:%s1112_s21] (!%p1859_p6) }
 0x219   : > { %v1127_v42 = vld [vmem:[%s2795_s30 + $0x60] sm:%s1112_s21] (!%p1859_p6)  ;;  %1126 = vst [vmem:[%s2820_s19 + $0xd0] sm:%s1112_s21] (!%p1859_p6), %v1125_v41 }
 0x21a   : > { %1128 = vst [vmem:[%s2820_s19 + $0x138] sm:%s1112_s21] (!%p1859_p6), %v1127_v42 }
 0x21c PF: > { %s13_s16 = sadd.s32 1, %s2389_s16   ;;  %s3247_s12 = smov %s2377_s13 }
 0x21d   : > { %p10_p13 = scmp.ge.s32.totalorder %s13_s16, 6   ;;  %s3248_s13 = smov %s2554_s22 }
 0x21e   : > { %s3249_s14 = smov %s2385_s15  ;;  %s3250_s15 = smov %s3252_s17 }
 0x21f   :  { %12 = sbr.rel (!%p10_p13) target bundleno = 3 (0x3), region = 329 }

// kernel: ae_cluster_forward.7
= control target key start
LH: loop header
LB: loop body
LE: loop exit
PB: predicated region body
PF: predicated region fallthrough
CT: control target
= control target key end

     0   :  { %s1347_s12 = smov 0   ;;  %s1349_s13 = smov 0   ;;  %s1759_s0 = inlined_call_operand.vmem [shape: f32[64,512], index: 0, kind: input, shape index: {}]   ;;  %s1760_s1 = inlined_call_operand.vmem [shape: f32[512,162], index: 1, kind: input, shape index: {}]   ;;  %s1761_s2 = inlined_call_operand.vmem [shape: f32[64,1], index: 2, kind: input, shape index: {}]   ;;  %s1762_s3 = inlined_call_operand.vmem [shape: f32[64,162], index: 3, kind: output, shape index: {}]  }
   0x1   :  { %s1351_s14 = smov 0   ;;  %s1353_s15 = smov 0  }
   0x2   :  { %s1355_s16 = smov 0  }
   0x3 LB: > { %s22_s17 = sadd.s32 1, %s1320_s15  ;;  %s1052_s18 = sadd.s32 4294967295, %s1324_s16   ;;  %s1324_s16 = sphi %s1355_s16, %s13_s16   ;;  %s1320_s15 = sphi %s1353_s15, %s1767_s15   ;;  %s1316_s14 = sphi %s1351_s14, %s1766_s14   ;;  %s1312_s13 = sphi %s1349_s13, %s1765_s13   ;;  %s1308_s12 = sphi %s1347_s12, %s1764_s12  }
   0x4   : > { %p23_p0 = scmp.ge.s32.totalorder %s22_s17, 2  ;;  %p65_p1 = scmp.ne.s32.totalorder %s1312_s13, %s1308_s12 }
   0x5   : > { %p66_p2 = scmp.eq.s32.totalorder %s1324_s16, 0  ;;  %p123_p4 = scmp.eq.s32.totalorder %s1052_s18, 1 }
   0x6   : > { %s1769_s17 = smov (%p23_p0, %s22_s17), 0  ;;  %s58_s20 = sadd.s32 1, %s1312_s13 }
   0x7   : > { %p67_p3 = por %p66_p2, %p65_p1  ;;  %s55_s19 = ssub.s32 %s1320_s15, %s1769_s17 }
   0x8   : > { %p56_p5 = scmp.eq.s32.totalorder %s55_s19, 0  ;;  %p1382_p6 = por %p123_p4, %p65_p1 }
   0x9   : > { %p1057_p7 = scmp.ge.s32.totalorder %s1324_s16, 2 }
   0xa   : > { %s1387_s22 = scalar_select %p56_p5, %s1312_s13, %s58_s20  }
   0xb   : > { %164 = sbr.rel (%p1057_p7) target bundleno = 54 (0x36), region = 24 }
  0x12   : > { %167 = sbr.rel (!%p67_p3) target bundleno = 54 (0x36), region = 28  ;;  %s169_s23 = sand.u32 (%p67_p3), 1, %s1312_s13  }
  0x13   : > { %s1059_s24 = sshll.u32 (%p67_p3), %s1320_s15, 3  ;;  %s1058_s25 = sshll.u32 (%p67_p3), %s169_s23, 9 }
  0x14   : > { %s1395_s28 = scalar_lea.vmem (%p67_p3), %s1760_s1, %s1059_s24  ;;  %s1400_s29 = scalar_lea.vmem (%p67_p3), [#allocation2], %s1058_s25 }
  0x15   : > { %v327_v0 = vld [vmem:[%s1395_s28] sm:$0xff] (%p67_p3)  ;;  %v329_v1 = vld [vmem:[%s1395_s28 + $0x10] sm:$0xff] (%p67_p3) }
  0x16   : > { %v331_v2 = vld [vmem:[%s1395_s28 + $0x20] sm:$0xff] (%p67_p3)  ;;  %328 = vst [vmem:[%s1400_s29] sm:$0xff] (%p67_p3), %v327_v0  ;;  %330 = vst [vmem:[%s1400_s29 + $0x8] sm:$0xff] (%p67_p3), %v329_v1  ;;  %v333_v3 = vld [vmem:[%s1395_s28 + $0x30] sm:$0xff] (%p67_p3) }
  0x17   : > { %332 = vst [vmem:[%s1400_s29 + $0x10] sm:$0xff] (%p67_p3), %v331_v2  ;;  %v335_v4 = vld [vmem:[%s1395_s28 + $0x40] sm:$0xff] (%p67_p3)  ;;  %v337_v5 = vld [vmem:[%s1395_s28 + $0x50] sm:$0xff] (%p67_p3)  ;;  %334 = vst [vmem:[%s1400_s29 + $0x18] sm:$0xff] (%p67_p3), %v333_v3 }
  0x18   : > { %336 = vst [vmem:[%s1400_s29 + $0x20] sm:$0xff] (%p67_p3), %v335_v4  ;;  %338 = vst [vmem:[%s1400_s29 + $0x28] sm:$0xff] (%p67_p3), %v337_v5  ;;  %v339_v6 = vld [vmem:[%s1395_s28 + $0x60] sm:$0xff] (%p67_p3)  ;;  %v341_v7 = vld [vmem:[%s1395_s28 + $0x70] sm:$0xff] (%p67_p3) }
  0x19   : > { %v343_v8 = vld [vmem:[%s1395_s28 + $0x80] sm:$0xff]  ;;  %340 = vst [vmem:[%s1400_s29 + $0x30] sm:$0xff] %v339_v6  ;;  %342 = vst [vmem:[%s1400_s29 + $0x38] sm:$0xff] %v341_v7  ;;  %v345_v9 = vld [vmem:[%s1395_s28 + $0x90] sm:$0xff] }
  0x1a   : > { %344 = vst [vmem:[%s1400_s29 + $0x40] sm:$0xff] %v343_v8  ;;  %v347_v10 = vld [vmem:[%s1395_s28 + $0xa0] sm:$0xff]  ;;  %v349_v11 = vld [vmem:[%s1395_s28 + $0xb0] sm:$0xff]  ;;  %346 = vst [vmem:[%s1400_s29 + $0x48] sm:$0xff] %v345_v9 }
  0x1b   : > { %348 = vst [vmem:[%s1400_s29 + $0x50] sm:$0xff] %v347_v10  ;;  %350 = vst [vmem:[%s1400_s29 + $0x58] sm:$0xff] %v349_v11  ;;  %v351_v12 = vld [vmem:[%s1395_s28 + $0xc0] sm:$0xff]  ;;  %v353_v13 = vld [vmem:[%s1395_s28 + $0xd0] sm:$0xff] }
  0x1c   : > { %v355_v14 = vld [vmem:[%s1395_s28 + $0xe0] sm:$0xff]  ;;  %352 = vst [vmem:[%s1400_s29 + $0x60] sm:$0xff] %v351_v12  ;;  %354 = vst [vmem:[%s1400_s29 + $0x68] sm:$0xff] %v353_v13  ;;  %v357_v15 = vld [vmem:[%s1395_s28 + $0xf0] sm:$0xff] }
  0x1d   : > { %356 = vst [vmem:[%s1400_s29 + $0x70] sm:$0xff] %v355_v14  ;;  %v359_v16 = vld [vmem:[%s1395_s28 + $0x100] sm:$0xff]  ;;  %v361_v17 = vld [vmem:[%s1395_s28 + $0x110] sm:$0xff]  ;;  %358 = vst [vmem:[%s1400_s29 + $0x78] sm:$0xff] %v357_v15 }
  0x1e   : > { %360 = vst [vmem:[%s1400_s29 + $0x80] sm:$0xff] %v359_v16  ;;  %362 = vst [vmem:[%s1400_s29 + $0x88] sm:$0xff] %v361_v17  ;;  %v363_v18 = vld [vmem:[%s1395_s28 + $0x120] sm:$0xff]  ;;  %v365_v19 = vld [vmem:[%s1395_s28 + $0x130] sm:$0xff] }
  0x1f   : > { %v367_v20 = vld [vmem:[%s1395_s28 + $0x140] sm:$0xff]  ;;  %364 = vst [vmem:[%s1400_s29 + $0x90] sm:$0xff] %v363_v18  ;;  %366 = vst [vmem:[%s1400_s29 + $0x98] sm:$0xff] %v365_v19  ;;  %v369_v21 = vld [vmem:[%s1395_s28 + $0x150] sm:$0xff] }
  0x20   : > { %368 = vst [vmem:[%s1400_s29 + $0xa0] sm:$0xff] %v367_v20  ;;  %v371_v22 = vld [vmem:[%s1395_s28 + $0x160] sm:$0xff]  ;;  %v373_v23 = vld [vmem:[%s1395_s28 + $0x170] sm:$0xff]  ;;  %370 = vst [vmem:[%s1400_s29 + $0xa8] sm:$0xff] %v369_v21 }
  0x21   : > { %372 = vst [vmem:[%s1400_s29 + $0xb0] sm:$0xff] %v371_v22  ;;  %374 = vst [vmem:[%s1400_s29 + $0xb8] sm:$0xff] %v373_v23  ;;  %v375_v24 = vld [vmem:[%s1395_s28 + $0x180] sm:$0xff]  ;;  %v377_v25 = vld [vmem:[%s1395_s28 + $0x190] sm:$0xff] }
  0x22   : > { %v379_v26 = vld [vmem:[%s1395_s28 + $0x1a0] sm:$0xff]  ;;  %376 = vst [vmem:[%s1400_s29 + $0xc0] sm:$0xff] %v375_v24  ;;  %378 = vst [vmem:[%s1400_s29 + $0xc8] sm:$0xff] %v377_v25  ;;  %v381_v27 = vld [vmem:[%s1395_s28 + $0x1b0] sm:$0xff] }
  0x23   : > { %380 = vst [vmem:[%s1400_s29 + $0xd0] sm:$0xff] %v379_v26  ;;  %v383_v28 = vld [vmem:[%s1395_s28 + $0x1c0] sm:$0xff]  ;;  %v385_v29 = vld [vmem:[%s1395_s28 + $0x1d0] sm:$0xff]  ;;  %382 = vst [vmem:[%s1400_s29 + $0xd8] sm:$0xff] %v381_v27 }
  0x24   : > { %384 = vst [vmem:[%s1400_s29 + $0xe0] sm:$0xff] %v383_v28  ;;  %386 = vst [vmem:[%s1400_s29 + $0xe8] sm:$0xff] %v385_v29  ;;  %v387_v30 = vld [vmem:[%s1395_s28 + $0x1e0] sm:$0xff]  ;;  %v389_v31 = vld [vmem:[%s1395_s28 + $0x1f0] sm:$0xff] }
  0x25   : > { %v391_v32 = vld [vmem:[%s1395_s28 + $0x200] sm:$0xff]  ;;  %388 = vst [vmem:[%s1400_s29 + $0xf0] sm:$0xff] %v387_v30  ;;  %390 = vst [vmem:[%s1400_s29 + $0xf8] sm:$0xff] %v389_v31  ;;  %v393_v33 = vld [vmem:[%s1395_s28 + $0x210] sm:$0xff] }
  0x26   : > { %392 = vst [vmem:[%s1400_s29 + $0x100] sm:$0xff] %v391_v32  ;;  %v395_v34 = vld [vmem:[%s1395_s28 + $0x220] sm:$0xff]  ;;  %v397_v35 = vld [vmem:[%s1395_s28 + $0x230] sm:$0xff]  ;;  %394 = vst [vmem:[%s1400_s29 + $0x108] sm:$0xff] %v393_v33 }
  0x27   : > { %396 = vst [vmem:[%s1400_s29 + $0x110] sm:$0xff] %v395_v34  ;;  %398 = vst [vmem:[%s1400_s29 + $0x118] sm:$0xff] %v397_v35  ;;  %v399_v36 = vld [vmem:[%s1395_s28 + $0x240] sm:$0xff]  ;;  %v401_v37 = vld [vmem:[%s1395_s28 + $0x250] sm:$0xff] }
  0x28   : > { %v403_v38 = vld [vmem:[%s1395_s28 + $0x260] sm:$0xff]  ;;  %400 = vst [vmem:[%s1400_s29 + $0x120] sm:$0xff] %v399_v36  ;;  %402 = vst [vmem:[%s1400_s29 + $0x128] sm:$0xff] %v401_v37  ;;  %v405_v39 = vld [vmem:[%s1395_s28 + $0x270] sm:$0xff] }
  0x29   : > { %404 = vst [vmem:[%s1400_s29 + $0x130] sm:$0xff] %v403_v38  ;;  %v407_v40 = vld [vmem:[%s1395_s28 + $0x280] sm:$0xff]  ;;  %v409_v41 = vld [vmem:[%s1395_s28 + $0x290] sm:$0xff]  ;;  %406 = vst [vmem:[%s1400_s29 + $0x138] sm:$0xff] %v405_v39 }
  0x2a   : > { %408 = vst [vmem:[%s1400_s29 + $0x140] sm:$0xff] %v407_v40  ;;  %410 = vst [vmem:[%s1400_s29 + $0x148] sm:$0xff] %v409_v41  ;;  %v411_v42 = vld [vmem:[%s1395_s28 + $0x2a0] sm:$0xff]  ;;  %v413_v43 = vld [vmem:[%s1395_s28 + $0x2b0] sm:$0xff] }
  0x2b   : > { %v415_v44 = vld [vmem:[%s1395_s28 + $0x2c0] sm:$0xff]  ;;  %412 = vst [vmem:[%s1400_s29 + $0x150] sm:$0xff] %v411_v42  ;;  %414 = vst [vmem:[%s1400_s29 + $0x158] sm:$0xff] %v413_v43  ;;  %v417_v45 = vld [vmem:[%s1395_s28 + $0x2d0] sm:$0xff] }
  0x2c   : > { %416 = vst [vmem:[%s1400_s29 + $0x160] sm:$0xff] %v415_v44  ;;  %v419_v46 = vld [vmem:[%s1395_s28 + $0x2e0] sm:$0xff]  ;;  %v421_v47 = vld [vmem:[%s1395_s28 + $0x2f0] sm:$0xff]  ;;  %418 = vst [vmem:[%s1400_s29 + $0x168] sm:$0xff] %v417_v45 }
  0x2d   : > { %420 = vst [vmem:[%s1400_s29 + $0x170] sm:$0xff] %v419_v46  ;;  %422 = vst [vmem:[%s1400_s29 + $0x178] sm:$0xff] %v421_v47  ;;  %v423_v48 = vld [vmem:[%s1395_s28 + $0x300] sm:$0xff]  ;;  %v425_v49 = vld [vmem:[%s1395_s28 + $0x310] sm:$0xff] }
  0x2e   : > { %v427_v50 = vld [vmem:[%s1395_s28 + $0x320] sm:$0xff]  ;;  %424 = vst [vmem:[%s1400_s29 + $0x180] sm:$0xff] %v423_v48  ;;  %426 = vst [vmem:[%s1400_s29 + $0x188] sm:$0xff] %v425_v49  ;;  %v429_v51 = vld [vmem:[%s1395_s28 + $0x330] sm:$0xff] }
  0x2f   : > { %428 = vst [vmem:[%s1400_s29 + $0x190] sm:$0xff] %v427_v50  ;;  %v431_v52 = vld [vmem:[%s1395_s28 + $0x340] sm:$0xff]  ;;  %v433_v53 = vld [vmem:[%s1395_s28 + $0x350] sm:$0xff]  ;;  %430 = vst [vmem:[%s1400_s29 + $0x198] sm:$0xff] %v429_v51 }
  0x30   : > { %432 = vst [vmem:[%s1400_s29 + $0x1a0] sm:$0xff] %v431_v52  ;;  %434 = vst [vmem:[%s1400_s29 + $0x1a8] sm:$0xff] %v433_v53  ;;  %v435_v54 = vld [vmem:[%s1395_s28 + $0x360] sm:$0xff]  ;;  %v437_v55 = vld [vmem:[%s1395_s28 + $0x370] sm:$0xff] }
  0x31   : > { %v439_v56 = vld [vmem:[%s1395_s28 + $0x380] sm:$0xff]  ;;  %436 = vst [vmem:[%s1400_s29 + $0x1b0] sm:$0xff] %v435_v54  ;;  %438 = vst [vmem:[%s1400_s29 + $0x1b8] sm:$0xff] %v437_v55  ;;  %v441_v57 = vld [vmem:[%s1395_s28 + $0x390] sm:$0xff] }
  0x32   : > { %440 = vst [vmem:[%s1400_s29 + $0x1c0] sm:$0xff] %v439_v56  ;;  %v443_v58 = vld [vmem:[%s1395_s28 + $0x3a0] sm:$0xff]  ;;  %v445_v59 = vld [vmem:[%s1395_s28 + $0x3b0] sm:$0xff]  ;;  %442 = vst [vmem:[%s1400_s29 + $0x1c8] sm:$0xff] %v441_v57 }
  0x33   : > { %444 = vst [vmem:[%s1400_s29 + $0x1d0] sm:$0xff] %v443_v58  ;;  %446 = vst [vmem:[%s1400_s29 + $0x1d8] sm:$0xff] %v445_v59  ;;  %v447_v60 = vld [vmem:[%s1395_s28 + $0x3c0] sm:$0xff]  ;;  %v449_v61 = vld [vmem:[%s1395_s28 + $0x3d0] sm:$0xff] }
  0x34   : > { %v451_v62 = vld [vmem:[%s1395_s28 + $0x3e0] sm:$0xff]  ;;  %448 = vst [vmem:[%s1400_s29 + $0x1e0] sm:$0xff] %v447_v60  ;;  %450 = vst [vmem:[%s1400_s29 + $0x1e8] sm:$0xff] %v449_v61  ;;  %v453_v63 = vld [vmem:[%s1395_s28 + $0x3f0] sm:$0xff] }
  0x35   : > { %452 = vst [vmem:[%s1400_s29 + $0x1f0] sm:$0xff] %v451_v62  ;;  %454 = vst [vmem:[%s1400_s29 + $0x1f8] sm:$0xff] %v453_v63 }
  0x36 PF: > { %p1060_p8 = scmp.ge.s32.totalorder %s1324_s16, 1  ;;  %p459_p9 = scmp.lt.s32.totalorder %s1324_s16, 3 }
  0x38   : > { %p460_p10 = pnand %p1060_p8, %p459_p9 }
  0x39   : > { %s466_s30 = sand.u32 (!%p460_p10), 1, %s1308_s12   ;;  %v514_v0 = vld [vmem:[%s1759_s0 + $0x8] sm:$0xff] (!%p460_p10)  ;;  %v516_v1 = vld [vmem:[%s1759_s0 + $0x18] sm:$0xff] (!%p460_p10)  ;;  %v1326_v2 = vmov (!%p460_p10), 0  }
  0x3a   : > { %463 = sbr.rel (%p460_p10) target bundleno = 353 (0x161), region = 66  ;;  %s1061_s8 = sshll.u32 (!%p460_p10), %s466_s30, 9  ;;  %721 = vmatprep.mubr.f32.mxu0 (!%p460_p10), %v514_v0  ;;  %826 = vmatprep.mubr.f32.mxu1 (!%p460_p10), %v516_v1 }
  0x3b   : > { %1284 = vset.pattern.permute.xlu0 (!%p460_p10), %v1326_v2  ;;  %1285 = vset.pattern.permute.xlu1 (!%p460_p10), %v1326_v2  ;;  %s1538_s9 = scalar_lea.vmem (!%p460_p10), [#allocation2], %s1061_s8  ;;  %s1062_s20 = sshll.u32 (!%p460_p10), %s466_s30, 6 }
  0x3c   : > { %v561_v3 = vld [vmem:[%s1538_s9 + $0x80] sm:$0xff] (!%p460_p10)  ;;  %v562_v4 = vld [vmem:[%s1538_s9 + $0x88] sm:$0xff] (!%p460_p10)  ;;  %v563_v14 = vld [vmem:[%s1538_s9 + $0x90] sm:$0xff] (!%p460_p10)  ;;  %s1720_s23 = scalar_lea.vmem (!%p460_p10), [#allocation3], %s1062_s20 }
  0x3d   : > { %v545_v5 = vld [vmem:[%s1538_s9] sm:$0xff] (!%p460_p10)  ;;  %v1179_v6 = vpack.c.bf16 (!%p460_p10), %v562_v4, %v561_v3  ;;  %v546_v7 = vld [vmem:[%s1538_s9 + $0x8] sm:$0xff] (!%p460_p10)  ;;  %v564_v16 = vld [vmem:[%s1538_s9 + $0x98] sm:$0xff] (!%p460_p10) }
  0x3e   : > { %v593_v8 = vld [vmem:[%s1538_s9 + $0x180] sm:$0xff] (!%p460_p10)  ;;  %v594_v9 = vld [vmem:[%s1538_s9 + $0x188] sm:$0xff] (!%p460_p10)  ;;  %v1181_v10 = vpack.c.bf16 (!%p460_p10), %v546_v7, %v545_v5  ;;  %v547_v17 = vld [vmem:[%s1538_s9 + $0x10] sm:$0xff] (!%p460_p10)  ;;  %v1183_v19 = vpack.c.bf16 (!%p460_p10), %v564_v16, %v563_v14 }
  0x3f   : > { %v1211_v11 = vpack.c.bf16 (!%p460_p10), %v594_v9, %v593_v8  ;;  %v577_v12 = vld [vmem:[%s1538_s9 + $0x100] sm:$0xff] (!%p460_p10)  ;;  %v578_v13 = vld [vmem:[%s1538_s9 + $0x108] sm:$0xff] (!%p460_p10)  ;;  %1180 = vmatprep.subr.bf16.mxu0 (!%p460_p10), %v1179_v6  ;;  %v548_v18 = vld [vmem:[%s1538_s9 + $0x18] sm:$0xff] (!%p460_p10) }
  0x40   : > { %v1213_v15 = vpack.c.bf16 (!%p460_p10), %v578_v13, %v577_v12  ;;  %1182 = vmatpush3.bf16.msra.mxu0 (!%p460_p10), %v1181_v10  ;;  %v1185_v20 = vpack.c.bf16 (!%p460_p10), %v548_v18, %v547_v17  ;;  %v595_v21 = vld [vmem:[%s1538_s9 + $0x190] sm:$0xff] (!%p460_p10)  ;;  %v596_v22 = vld [vmem:[%s1538_s9 + $0x198] sm:$0xff] (!%p460_p10)  ;;  %v565_v26 = vld [vmem:[%s1538_s9 + $0xa0] sm:$0xff] (!%p460_p10) }
  0x41   : > { %1212 = vmatprep.subr.bf16.mxu1 %v1211_v11  ;;  %v579_v23 = vld [vmem:[%s1538_s9 + $0x110] sm:$0xff]  ;;  %v1215_v24 = vpack.c.bf16 %v596_v22, %v595_v21  ;;  %v580_v25 = vld [vmem:[%s1538_s9 + $0x118] sm:$0xff]  ;;  %v566_v27 = vld [vmem:[%s1538_s9 + $0xa8] sm:$0xff]  ;;  %1184 = vmatprep.subr.bf16.mxu0 %v1183_v19  ;;  %s1064_s12 = sshll.u32 (%p1382_p6), %s1316_s14, 3 }
  0x42   : > { %1214 = vmatpush3.bf16.msra.mxu1 %v1213_v15  ;;  %v1217_v28 = vpack.c.bf16 %v580_v25, %v579_v23  ;;  %v1187_v29 = vpack.c.bf16 %v566_v27, %v565_v26  ;;  %v549_v30 = vld [vmem:[%s1538_s9 + $0x20] sm:$0xff]  ;;  %v550_v31 = vld [vmem:[%s1538_s9 + $0x28] sm:$0xff]  ;;  %v567_v38 = vld [vmem:[%s1538_s9 + $0xb0] sm:$0xff]  ;;  %s894_s25 = scalar_lea.vmem (%p1382_p6), %s1762_s3, %s1064_s12 }
  0x43   : > { %v597_v32 = vld [vmem:[%s1538_s9 + $0x1a0] sm:$0xff]  ;;  %1216 = vmatprep.subr.bf16.mxu1 %v1215_v24  ;;  %v598_v33 = vld [vmem:[%s1538_s9 + $0x1a8] sm:$0xff]  ;;  %v1189_v36 = vpack.c.bf16 %v550_v31, %v549_v30  ;;  %v568_v39 = vld [vmem:[%s1538_s9 + $0xb8] sm:$0xff] }
  0x44   : > { %v581_v34 = vld [vmem:[%s1538_s9 + $0x120] sm:$0xff]  ;;  %v582_v35 = vld [vmem:[%s1538_s9 + $0x128] sm:$0xff]  ;;  %1186 = vmatpush3.bf16.msra.mxu0 %v1185_v20  ;;  %v1219_v37 = vpack.c.bf16 %v598_v33, %v597_v32  ;;  %v551_v40 = vld [vmem:[%s1538_s9 + $0x30] sm:$0xff]  ;;  %v1191_v42 = vpack.c.bf16 %v568_v39, %v567_v38 }
  0x45   : > { %1188 = vmatprep.subr.bf16.mxu0 %v1187_v29  ;;  %v1221_v41 = vpack.c.bf16 %v582_v35, %v581_v34  ;;  %v552_v43 = vld [vmem:[%s1538_s9 + $0x38] sm:$0xff]  ;;  %v599_v44 = vld [vmem:[%s1538_s9 + $0x1b0] sm:$0xff]  ;;  %v569_v49 = vld [vmem:[%s1538_s9 + $0xc0] sm:$0xff] }
  0x46   : > { %1218 = vmatpush3.bf16.msra.mxu1 %v1217_v28  ;;  %v600_v45 = vld [vmem:[%s1538_s9 + $0x1b8] sm:$0xff]  ;;  %v583_v47 = vld [vmem:[%s1538_s9 + $0x130] sm:$0xff]  ;;  %v570_v50 = vld [vmem:[%s1538_s9 + $0xc8] sm:$0xff]  ;;  %v1193_v51 = vpack.c.bf16 %v552_v43, %v551_v40 }
  0x47   : > { %1220 = vmatprep.subr.bf16.mxu1 %v1219_v37  ;;  %v1223_v46 = vpack.c.bf16 %v600_v45, %v599_v44  ;;  %v584_v48 = vld [vmem:[%s1538_s9 + $0x138] sm:$0xff]  ;;  %v601_v52 = vld [vmem:[%s1538_s9 + $0x1c0] sm:$0xff]  ;;  %v602_v53 = vld [vmem:[%s1538_s9 + $0x1c8] sm:$0xff]  ;;  %v1195_v55 = vpack.c.bf16 %v570_v50, %v569_v49 }
  0x48   : > { %1190 = vmatpush3.bf16.msra.mxu0 %v1189_v36  ;;  %v1225_v54 = vpack.c.bf16 %v584_v48, %v583_v47  ;;  %v553_v56 = vld [vmem:[%s1538_s9 + $0x40] sm:$0xff]  ;;  %v554_v57 = vld [vmem:[%s1538_s9 + $0x48] sm:$0xff]  ;;  %v1227_v59 = vpack.c.bf16 %v602_v53, %v601_v52  ;;  %v571_v61 = vld [vmem:[%s1538_s9 + $0xd0] sm:$0xff] }
  0x49   : > { %1192 = vmatprep.subr.bf16.mxu0 %v1191_v42  ;;  %v585_v58 = vld [vmem:[%s1538_s9 + $0x140] sm:$0xff]  ;;  %v586_v60 = vld [vmem:[%s1538_s9 + $0x148] sm:$0xff]  ;;  %v572_v62 = vld [vmem:[%s1538_s9 + $0xd8] sm:$0xff]  ;;  %v1197_v1 = vpack.c.bf16 %v554_v57, %v553_v56 }
  0x4a   : > { %1222 = vmatpush3.bf16.msra.mxu1 %v1221_v41  ;;  %v603_v63 = vld [vmem:[%s1538_s9 + $0x1d0] sm:$0xff]  ;;  %v604_v0 = vld [vmem:[%s1538_s9 + $0x1d8] sm:$0xff]  ;;  %v1229_v2 = vpack.c.bf16 %v586_v60, %v585_v58  ;;  %v1199_v3 = vpack.c.bf16 %v572_v62, %v571_v61  ;;  %v573_v9 = vld [vmem:[%s1538_s9 + $0xe0] sm:$0xff] }
  0x4b   : > { %1224 = vmatprep.subr.bf16.mxu1 %v1223_v46  ;;  %v555_v4 = vld [vmem:[%s1538_s9 + $0x50] sm:$0xff]  ;;  %v556_v5 = vld [vmem:[%s1538_s9 + $0x58] sm:$0xff]  ;;  %v1231_v7 = vpack.c.bf16 %v604_v0, %v603_v63  ;;  %v574_v10 = vld [vmem:[%s1538_s9 + $0xe8] sm:$0xff] }
  0x4c   : > { %1194 = vmatpush3.bf16.msra.mxu0 %v1193_v51  ;;  %v587_v6 = vld [vmem:[%s1538_s9 + $0x150] sm:$0xff]  ;;  %v588_v8 = vld [vmem:[%s1538_s9 + $0x158] sm:$0xff]  ;;  %v605_v11 = vld [vmem:[%s1538_s9 + $0x1e0] sm:$0xff]  ;;  %v1201_v13 = vpack.c.bf16 %v556_v5, %v555_v4  ;;  %v1203_v15 = vpack.c.bf16 %v574_v10, %v573_v9 }
  0x4d   : > { %1196 = vmatprep.subr.bf16.mxu0 %v1195_v55  ;;  %v606_v12 = vld [vmem:[%s1538_s9 + $0x1e8] sm:$0xff]  ;;  %v1233_v14 = vpack.c.bf16 %v588_v8, %v587_v6  ;;  %v557_v16 = vld [vmem:[%s1538_s9 + $0x60] sm:$0xff]  ;;  %v575_v21 = vld [vmem:[%s1538_s9 + $0xf0] sm:$0xff] }
  0x4e   : > { %1226 = vmatpush3.bf16.msra.mxu1 %v1225_v54  ;;  %v558_v17 = vld [vmem:[%s1538_s9 + $0x68] sm:$0xff]  ;;  %v589_v18 = vld [vmem:[%s1538_s9 + $0x160] sm:$0xff]  ;;  %v1235_v19 = vpack.c.bf16 %v606_v12, %v605_v11  ;;  %v576_v22 = vld [vmem:[%s1538_s9 + $0xf8] sm:$0xff] }
  0x4f   : > { %1228 = vmatprep.subr.bf16.mxu1 %v1227_v59  ;;  %v590_v20 = vld [vmem:[%s1538_s9 + $0x168] sm:$0xff]  ;;  %v607_v23 = vld [vmem:[%s1538_s9 + $0x1f0] sm:$0xff]  ;;  %v608_v24 = vld [vmem:[%s1538_s9 + $0x1f8] sm:$0xff]  ;;  %v1205_v25 = vpack.c.bf16 %v558_v17, %v557_v16  ;;  %v1207_v27 = vpack.c.bf16 %v576_v22, %v575_v21 }
  0x50   : > { %1198 = vmatpush3.bf16.msra.mxu0 %v1197_v1  ;;  %v1237_v26 = vpack.c.bf16 %v590_v20, %v589_v18  ;;  %v559_v28 = vld [vmem:[%s1538_s9 + $0x70] sm:$0xff]  ;;  %v560_v29 = vld [vmem:[%s1538_s9 + $0x78] sm:$0xff]  ;;  %v1239_v30 = vpack.c.bf16 %v608_v24, %v607_v23  ;;  %v609_v35 = vld [vmem:[%s1761_s2] sm:$0xff] }
  0x51   : > { %1200 = vmatprep.subr.bf16.mxu0 %v1199_v3  ;;  %v591_v31 = vld [vmem:[%s1538_s9 + $0x170] sm:$0xff]  ;;  %v592_v32 = vld [vmem:[%s1538_s9 + $0x178] sm:$0xff]  ;;  %v1209_v33 = vpack.c.bf16 %v560_v29, %v559_v28  ;;  %619 = vperm.xlu0 %1284, %v609_v35   ;;  %v610_v37 = vld [vmem:[%s1761_s2 + $0x8] sm:$0xff] }
  0x52   : > { %1230 = vmatpush3.bf16.msra.mxu1 %v1229_v2  ;;  %v1241_v34 = vpack.c.bf16 %v592_v32, %v591_v31  ;;  %v611_v36 = vld [vmem:[%s1761_s2 + $0x10] sm:$0xff]  ;;  %v513_v38 = vld [vmem:[%s1759_s0] sm:$0xff]  ;;  %v612_v39 = vld [vmem:[%s1761_s2 + $0x18] sm:$0xff] }
  0x53   : > { %1232 = vmatprep.subr.bf16.mxu1 %v1231_v7  ;;  %629 = vperm.xlu1 %1285, %v611_v36   ;;  %v515_v40 = vld [vmem:[%s1759_s0 + $0x10] sm:$0xff]  ;;  %v518_v41 = vld [vmem:[%s1759_s0 + $0x28] sm:$0xff]  ;;  %v520_v42 = vld [vmem:[%s1759_s0 + $0x38] sm:$0xff] }
  0x54   : > { %1202 = vmatpush3.bf16.msra.mxu0 %v1201_v13  ;;  %v613_v43 = vld [vmem:[%s1761_s2 + $0x20] sm:$0xff]  ;;  %v614_v45 = vld [vmem:[%s1761_s2 + $0x28] sm:$0xff]  ;;  %v519_v46 = vld [vmem:[%s1759_s0 + $0x30] sm:$0xff] }
  0x55   : > { %1204 = vmatprep.subr.bf16.mxu0 %v1203_v15  ;;  %624 = vperm.xlu0 %1284, %v610_v37   ;;  %v517_v44 = vld [vmem:[%s1759_s0 + $0x20] sm:$0xff]  ;;  %v522_v47 = vld [vmem:[%s1759_s0 + $0x48] sm:$0xff]  ;;  %v524_v48 = vld [vmem:[%s1759_s0 + $0x58] sm:$0xff] }
  0x56   : > { %1234 = vmatpush3.bf16.msra.mxu1 %v1233_v14  ;;  %v615_v49 = vld [vmem:[%s1761_s2 + $0x30] sm:$0xff]  ;;  %v521_v50 = vld [vmem:[%s1759_s0 + $0x40] sm:$0xff]  ;;  %v616_v51 = vld [vmem:[%s1761_s2 + $0x38] sm:$0xff] }
  0x57   : > { %1236 = vmatprep.subr.bf16.mxu1 %v1235_v19  ;;  %634 = vperm.xlu1 %1285, %v612_v39   ;;  %v523_v52 = vld [vmem:[%s1759_s0 + $0x50] sm:$0xff]  ;;  %v526_v53 = vld [vmem:[%s1759_s0 + $0x68] sm:$0xff]  ;;  %v528_v54 = vld [vmem:[%s1759_s0 + $0x78] sm:$0xff] }
  0x58   : > { %1206 = vmatpush3.bf16.msra.mxu0 %v1205_v25  ;;  %v525_v55 = vld [vmem:[%s1759_s0 + $0x60] sm:$0xff]  ;;  %v527_v56 = vld [vmem:[%s1759_s0 + $0x70] sm:$0xff]  ;;  %v530_v57 = vld [vmem:[%s1759_s0 + $0x88] sm:$0xff] }
  0x59   : > { %1208 = vmatprep.subr.bf16.mxu0 %v1207_v27  ;;  %639 = vperm.xlu0 %1284, %v613_v43   ;;  %v532_v58 = vld [vmem:[%s1759_s0 + $0x98] sm:$0xff]  ;;  %v529_v59 = vld [vmem:[%s1759_s0 + $0x80] sm:$0xff]  ;;  %v531_v60 = vld [vmem:[%s1759_s0 + $0x90] sm:$0xff] }
  0x5a   : > { %1238 = vmatpush3.bf16.msra.mxu1 %v1237_v26  ;;  %v534_v61 = vld [vmem:[%s1759_s0 + $0xa8] sm:$0xff]  ;;  %v536_v62 = vld [vmem:[%s1759_s0 + $0xb8] sm:$0xff]  ;;  %v533_v63 = vld [vmem:[%s1759_s0 + $0xa0] sm:$0xff] }
  0x5b   : > { %1240 = vmatprep.subr.bf16.mxu1 %v1239_v30  ;;  %644 = vperm.xlu1 %1285, %v614_v45   ;;  %v535_v0 = vld [vmem:[%s1759_s0 + $0xb0] sm:$0xff]  ;;  %v538_v1 = vld [vmem:[%s1759_s0 + $0xc8] sm:$0xff]  ;;  %v540_v2 = vld [vmem:[%s1759_s0 + $0xd8] sm:$0xff] }
  0x5c   : > { %1210 = vmatpush3.bf16.msra.mxu0 %v1209_v33  ;;  %v537_v3 = vld [vmem:[%s1759_s0 + $0xc0] sm:$0xff]  ;;  %v539_v4 = vld [vmem:[%s1759_s0 + $0xd0] sm:$0xff]  ;;  %v542_v5 = vld [vmem:[%s1759_s0 + $0xe8] sm:$0xff] }
  0x5d   : > { %649 = vperm.xlu0 %1284, %v615_v49   ;;  %v544_v6 = vld [vmem:[%s1759_s0 + $0xf8] sm:$0xff]  ;;  %v541_v7 = vld [vmem:[%s1759_s0 + $0xe0] sm:$0xff]  ;;  %v543_v8 = vld [vmem:[%s1759_s0 + $0xf0] sm:$0xff] }
  0x5e   : > { %1242 = vmatpush3.bf16.msra.mxu1 %v1241_v34 }
  0x5f   : > { %722 = vmatmul.mubr.f32.vlgmr.msra.gmra.mrb[0].mxu0 %v513_v38  ;;  %654 = vperm.xlu1 %1285, %v616_v51  }
  0x60   : > { %726 = vmatprep.mubr.f32.mxu0 %v518_v41 }
  0x61   : > { %827 = vmatmul.mubr.f32.vlgmr.msra.gmra.mrb[0].mxu1 %v515_v40 }
  0x62   : > { %831 = vmatprep.mubr.f32.mxu1 %v520_v42 }
  0x63   : > { %727 = vmatmul.mubr.f32.gmra.mrb[2].mxu0 %v517_v44 }
  0x64   : > { %731 = vmatprep.mubr.f32.mxu0 %v522_v47 }
  0x65   : > { %832 = vmatmul.mubr.f32.gmra.mrb[2].mxu1 %v519_v46 }
  0x66   : > { %836 = vmatprep.mubr.f32.mxu1 %v524_v48 }
  0x67   : > { %732 = vmatmul.mubr.f32.gmra.mrb[4].mxu0 %v521_v50 }
  0x68   : > { %736 = vmatprep.mubr.f32.mxu0 %v526_v53 }
  0x69   : > { %837 = vmatmul.mubr.f32.gmra.mrb[4].mxu1 %v523_v52 }
  0x6a   : > { %841 = vmatprep.mubr.f32.mxu1 %v528_v54 }
  0x6b   : > { %737 = vmatmul.mubr.f32.gmra.mrb[6].mxu0 %v525_v55 }
  0x6c   : > { %741 = vmatprep.mubr.f32.mxu0 %v530_v57 }
  0x6d   : > { %842 = vmatmul.mubr.f32.gmra.mrb[6].mxu1 %v527_v56 }
  0x6e   : > { %846 = vmatprep.mubr.f32.mxu1 %v532_v58 }
  0x6f   : > { %742 = vmatmul.mubr.f32.gmra.mrb[8].mxu0 %v529_v59 }
  0x70   : > { %746 = vmatprep.mubr.f32.mxu0 %v534_v61 }
  0x71   : > { %847 = vmatmul.mubr.f32.gmra.mrb[8].mxu1 %v531_v60 }
  0x72   : > { %851 = vmatprep.mubr.f32.mxu1 %v536_v62 }
  0x73   : > { %747 = vmatmul.mubr.f32.gmra.mrb[10].mxu0 %v533_v63 }
  0x74   : > { %751 = vmatprep.mubr.f32.mxu0 %v538_v1 }
  0x75   : > { %852 = vmatmul.mubr.f32.gmra.mrb[10].mxu1 %v535_v0 }
  0x76   : > { %856 = vmatprep.mubr.f32.mxu1 %v540_v2 }
  0x77   : > { %752 = vmatmul.mubr.f32.gmra.mrb[12].mxu0 %v537_v3 }
  0x78   : > { %756 = vmatprep.mubr.f32.mxu0 %v542_v5 }
  0x79   : > { %857 = vmatmul.mubr.f32.gmra.mrb[12].mxu1 %v539_v4 }
  0x7a   : > { %861 = vmatprep.mubr.f32.mxu1 %v544_v6 }
  0x7b   : > { %757 = vmatmul.mubr.f32.gmra.mrb[14].mxu0 %v541_v7 }
  0x7d   : > { %862 = vmatmul.mubr.f32.gmra.mrb[14].mxu1 %v543_v8 }
  0xd0   : > { %v620_v9 = vpop.permute.xlu0 %619 }
  0xd2   : > { %v630_v26 = vpop.permute.xlu1 %629 }
  0xd4   : > { %v625_v18 = vpop.permute.xlu0 %624 }
  0xd6   : > { %v635_v43 = vpop.permute.xlu1 %634 }
  0xd8   : > { %v640_v53 = vpop.permute.xlu0 %639 }
  0xda   : > { %v645_v63 = vpop.permute.xlu1 %644 }
 0x132   : > { %v1099_v10 = vpop.f32.mrb[0].mxu0 }
 0x133   : > { %v1100_v11 = vpop.f32.mrb[1].mxu0 }
 0x134   : > { %v1155_v12 = vpop.f32.mrb[0].mxu1  ;;  %v1101_v13 = vadd.f32 %v1100_v11, %v1099_v10 }
 0x135   : > { %v1156_v14 = vpop.f32.mrb[1].mxu1 }
 0x136   : > { %v1157_v15 = vadd.f32 %v1156_v14, %v1155_v12  ;;  %v724_v16 = vadd.f32 %v1101_v13, %v620_v9  ;;  %v1102_v17 = vpop.f32.mrb[2].mxu0  ;;  %v650_v9 = vpop.permute.xlu0 %649 }
 0x137   : > { %v1103_v19 = vpop.f32.mrb[3].mxu0 }
 0x138   : > { %v1158_v20 = vpop.f32.mrb[2].mxu1  ;;  %v829_v21 = vadd.f32 %v1157_v15, %v724_v16  ;;  %v1104_v22 = vadd.f32 %v1103_v19, %v1102_v17  ;;  %v655_v19 = vpop.permute.xlu1 %654 }
 0x139   : > { %v1159_v23 = vpop.f32.mrb[3].mxu1 }
 0x13a   : > { %v1160_v24 = vadd.f32 %v1159_v23, %v1158_v20  ;;  %v867_v25 = vmax.f32 %v829_v21, 0.0  ;;  %v729_v27 = vadd.f32 %v1104_v22, %v625_v18  ;;  %v1105_v28 = vpop.f32.mrb[4].mxu0 }
 0x13b   : > { %v1106_v29 = vpop.f32.mrb[5].mxu0 }
 0x13c   : > { %v1161_v30 = vpop.f32.mrb[4].mxu1  ;;  %875 = vst [vmem:[%s1720_s23] sm:$0xff] %v867_v25  ;;  %v834_v31 = vadd.f32 %v1160_v24, %v729_v27  ;;  %v1107_v32 = vadd.f32 %v1106_v29, %v1105_v28 }
 0x13d   : > { %v1162_v33 = vpop.f32.mrb[5].mxu1 }
 0x13e   : > { %v1163_v34 = vadd.f32 %v1162_v33, %v1161_v30  ;;  %v868_v35 = vmax.f32 %v834_v31, 0.0  ;;  %v734_v36 = vadd.f32 %v1107_v32, %v630_v26  ;;  %v1108_v37 = vpop.f32.mrb[6].mxu0 }
 0x13f   : > { %v1109_v38 = vpop.f32.mrb[7].mxu0 }
 0x140   : > { %v1164_v39 = vpop.f32.mrb[6].mxu1  ;;  %876 = vst [vmem:[%s1720_s23 + $0x8] sm:$0xff] %v868_v35  ;;  %v839_v40 = vadd.f32 %v1163_v34, %v734_v36  ;;  %v1110_v41 = vadd.f32 %v1109_v38, %v1108_v37 }
 0x141   : > { %v1165_v42 = vpop.f32.mrb[7].mxu1 }
 0x142   : > { %v1166_v44 = vadd.f32 %v1165_v42, %v1164_v39  ;;  %v869_v45 = vmax.f32 %v839_v40, 0.0  ;;  %v739_v46 = vadd.f32 %v1110_v41, %v635_v43  ;;  %v1111_v47 = vpop.f32.mrb[8].mxu0 }
 0x143   : > { %v1112_v48 = vpop.f32.mrb[9].mxu0  ;;  %v936_v25 = vld [vmem:[%s1720_s23] sm:$0xff] (%p1382_p6) }
 0x144   : > { %v1167_v49 = vpop.f32.mrb[8].mxu1  ;;  %877 = vst [vmem:[%s1720_s23 + $0x10] sm:$0xff] %v869_v45  ;;  %v844_v50 = vadd.f32 %v1166_v44, %v739_v46  ;;  %v1113_v51 = vadd.f32 %v1112_v48, %v1111_v47  ;;  %937 = vst [vmem:[%s894_s25] sm:$0xff] (%p1382_p6), %v936_v25 }
 0x145   : > { %v1168_v52 = vpop.f32.mrb[9].mxu1 }
 0x146   : > { %v1169_v54 = vadd.f32 %v1168_v52, %v1167_v49  ;;  %v870_v55 = vmax.f32 %v844_v50, 0.0  ;;  %v744_v56 = vadd.f32 %v1113_v51, %v640_v53  ;;  %v1114_v57 = vpop.f32.mrb[10].mxu0 }
 0x147   : > { %v1115_v58 = vpop.f32.mrb[11].mxu0  ;;  %v938_v26 = vld [vmem:[%s1720_s23 + $0x8] sm:$0xff] (%p1382_p6) }
 0x148   : > { %v1170_v59 = vpop.f32.mrb[10].mxu1  ;;  %878 = vst [vmem:[%s1720_s23 + $0x18] sm:$0xff] %v870_v55  ;;  %v849_v60 = vadd.f32 %v1169_v54, %v744_v56  ;;  %v1116_v61 = vadd.f32 %v1115_v58, %v1114_v57  ;;  %939 = vst [vmem:[%s894_s25 + $0x10] sm:$0xff] (%p1382_p6), %v938_v26 }
 0x149   : > { %v1171_v62 = vpop.f32.mrb[11].mxu1 }
 0x14a   : > { %v1172_v0 = vadd.f32 %v1171_v62, %v1170_v59  ;;  %v871_v1 = vmax.f32 %v849_v60, 0.0  ;;  %v749_v2 = vadd.f32 %v1116_v61, %v645_v63  ;;  %v1117_v3 = vpop.f32.mrb[12].mxu0 }
 0x14b   : > { %v1118_v4 = vpop.f32.mrb[13].mxu0  ;;  %v940_v27 = vld [vmem:[%s1720_s23 + $0x10] sm:$0xff] (%p1382_p6) }
 0x14c   : > { %v1173_v5 = vpop.f32.mrb[12].mxu1  ;;  %879 = vst [vmem:[%s1720_s23 + $0x20] sm:$0xff] %v871_v1  ;;  %v854_v6 = vadd.f32 %v1172_v0, %v749_v2  ;;  %v1119_v7 = vadd.f32 %v1118_v4, %v1117_v3  ;;  %941 = vst [vmem:[%s894_s25 + $0x20] sm:$0xff] (%p1382_p6), %v940_v27 }
 0x14d   : > { %v1174_v8 = vpop.f32.mrb[13].mxu1 }
 0x14e   : > { %v1175_v10 = vadd.f32 %v1174_v8, %v1173_v5  ;;  %v872_v11 = vmax.f32 %v854_v6, 0.0  ;;  %v754_v12 = vadd.f32 %v1119_v7, %v650_v9  ;;  %v1120_v13 = vpop.f32.mrb[14].mxu0 }
 0x14f   : > { %v1121_v14 = vpop.f32.mrb[15].mxu0  ;;  %v942_v28 = vld [vmem:[%s1720_s23 + $0x18] sm:$0xff] (%p1382_p6) }
 0x150   : > { %v1176_v15 = vpop.f32.mrb[14].mxu1  ;;  %880 = vst [vmem:[%s1720_s23 + $0x28] sm:$0xff] %v872_v11  ;;  %v859_v16 = vadd.f32 %v1175_v10, %v754_v12  ;;  %v1122_v17 = vadd.f32 %v1121_v14, %v1120_v13  ;;  %943 = vst [vmem:[%s894_s25 + $0x30] sm:$0xff] (%p1382_p6), %v942_v28 }
 0x151   : > { %v1177_v18 = vpop.f32.mrb[15].mxu1 }
 0x152   : > { %v1178_v20 = vadd.f32 %v1177_v18, %v1176_v15  ;;  %v873_v21 = vmax.f32 %v859_v16, 0.0  ;;  %v759_v22 = vadd.f32 %v1122_v17, %v655_v19  ;;  %889 = sbr.rel (!%p1382_p6) target bundleno = 353 (0x161), region = 74 }
 0x153   : > { %v944_v29 = vld [vmem:[%s1720_s23 + $0x20] sm:$0xff] (%p1382_p6) }
 0x154   : > { %881 = vst [vmem:[%s1720_s23 + $0x30] sm:$0xff] %v873_v21  ;;  %v864_v23 = vadd.f32 %v1178_v20, %v759_v22  ;;  %945 = vst [vmem:[%s894_s25 + $0x40] sm:$0xff] (%p1382_p6), %v944_v29 }
 0x156   : > { %v874_v24 = vmax.f32 %v864_v23, 0.0 }
 0x157   : > { %v946_v30 = vld [vmem:[%s1720_s23 + $0x28] sm:$0xff] (%p1382_p6) }
 0x158   : > { %882 = vst [vmem:[%s1720_s23 + $0x38] sm:$0xff] %v874_v24  ;;  %947 = vst [vmem:[%s894_s25 + $0x50] sm:$0xff] (%p1382_p6), %v946_v30 }
 0x15b   : > { %v948_v31 = vld [vmem:[%s1720_s23 + $0x30] sm:$0xff] }
 0x15c   : > { %949 = vst [vmem:[%s894_s25 + $0x60] sm:$0xff] %v948_v31 }
 0x15f   : > { %v950_v32 = vld [vmem:[%s1720_s23 + $0x38] sm:$0xff] }
 0x160   : > { %951 = vst [vmem:[%s894_s25 + $0x70] sm:$0xff] %v950_v32 }
 0x161 PF: > { %s13_s16 = sadd.s32 1, %s1324_s16   ;;  %s1764_s12 = smov %s1312_s13 }
 0x162   : > { %p10_p11 = scmp.ge.s32.totalorder %s13_s16, 4   ;;  %s1765_s13 = smov %s1387_s22 }
 0x163   : > { %s1766_s14 = smov %s1320_s15  ;;  %s1767_s15 = smov %s1769_s17 }
 0x164   :  { %12 = sbr.rel (!%p10_p11) target bundleno = 3 (0x3), region = 149 }

// kernel: mul.42
= control target key start
LH: loop header
LB: loop body
LE: loop exit
PB: predicated region body
PF: predicated region fallthrough
CT: control target
= control target key end

     0   :  { %vm9_vm0 = vcmask 15360   ;;  %vm36_vm1 = vcmask 48128   ;;  %vm22_vm2 = vcmask 31744   ;;  %vm50_vm3 = vcmask 64512   ;;  %s643_s18 = smov 126   ;;  %s644_s23 = smov 122   ;;  %s1126_s0 = inlined_call_operand.vmem [shape: f32[64,9], index: 0, kind: input, shape index: {}]   ;;  %s1127_s1 = inlined_call_operand.vmem [shape: f32[576], index: 1, kind: output, shape index: {}]  }
   0x1   :  { %v460_v0 = vld [vmem:[%s1126_s0 + $0xe] sm:$0x1]   ;;  %v467_v2 = vld [vmem:[%s1126_s0 + $0x2a] sm:$0x1]   ;;  %v463_v5 = vld [vmem:[%s1126_s0 + $0x1c] sm:$0x1]  }
   0x2   :  { %v461_v1 = vld [vmem:[%s1126_s0 + $0xe] sm:$0x1]   ;;  %v468_v4 = vld [vmem:[%s1126_s0 + $0x2a] sm:$0x1]   ;;  %v464_v6 = vld [vmem:[%s1126_s0 + $0x1c] sm:$0x1]  }
   0x3   :  { %v10_v3 = vsel %vm9_vm0, %v461_v1, %v460_v0  ;;  %v37_v7 = vsel %vm36_vm1, %v468_v4, %v467_v2  ;;  %v471_v8 = vld [vmem:[%s1126_s0 + $0x38] sm:$0x1]   ;;  %v23_v10 = vsel %vm22_vm2, %v464_v6, %v463_v5  ;;  %s645_s24 = smov 124   ;;  %s646_s25 = smov 120   ;;  %v475_v12 = vld [vmem:[%s1126_s0 + $0xd] sm:$0x1]  }
   0x4   :  { %11 = vrot.lane.b32.xlu0 %v10_v3, %s643_s18  ;;  %v472_v9 = vld [vmem:[%s1126_s0 + $0x38] sm:$0x1]   ;;  %38 = vrot.lane.b32.xlu1 %v37_v7, %s644_s23  ;;  %v476_v13 = vld [vmem:[%s1126_s0 + $0x1b] sm:$0x1]   ;;  %s647_s30 = smov 117   ;;  %s648_s2 = smov 115  }
   0x5   :  { %v51_v11 = vsel %vm50_vm3, %v472_v9, %v471_v8  ;;  %v478_v14 = vld [vmem:[%s1126_s0 + $0x29] sm:$0x1]   ;;  %v480_v15 = vld [vmem:[%s1126_s0 + $0x37] sm:$0x1]   ;;  %s649_s7 = smov 113   ;;  %s650_s8 = smov 111  }
   0x6   :  { %v482_v16 = vld [vmem:[%s1126_s0 + $0xc] sm:$0x1]   ;;  %v483_v17 = vld [vmem:[%s1126_s0 + $0x1a] sm:$0x1]   ;;  %s651_s13 = smov 108   ;;  %s652_s14 = smov 106  }
   0x7   :  { %v485_v18 = vld [vmem:[%s1126_s0 + $0x28] sm:$0x1]   ;;  %v487_v19 = vld [vmem:[%s1126_s0 + $0x36] sm:$0x1]   ;;  %s653_s19 = smov 104   ;;  %s654_s20 = smov 102  }
   0x8   :  { %24 = vrot.lane.b32.xlu0 %v23_v10, %s645_s24  ;;  %52 = vrot.lane.b32.xlu1 %v51_v11, %s646_s25  ;;  %v489_v20 = vld [vmem:[%s1126_s0 + $0xb] sm:$0x1]   ;;  %v490_v21 = vld [vmem:[%s1126_s0 + $0x19] sm:$0x1]   ;;  %s655_s25 = smov 99   ;;  %s656_s26 = smov 97  }
   0x9   :  { %v492_v22 = vld [vmem:[%s1126_s0 + $0x27] sm:$0x1]   ;;  %v494_v23 = vld [vmem:[%s1126_s0 + $0x35] sm:$0x1]   ;;  %vm3_vm4 = vcmask 72704   ;;  %s658_s5 = smov 93  }
   0xa   :  { %v2_v24 = vld [vmem:[%s1126_s0] sm:$0x1]   ;;  %v496_v25 = vld [vmem:[%s1126_s0 + $0xa] sm:$0x1]   ;;  %v497_v26 = vld [vmem:[%s1126_s0 + $0x18] sm:$0x1]  }
   0xb   :  { %4 = vst.msk [vmem:[%s1127_s1] sm:$0x1] %vm3_vm4, %v2_v24   ;;  %s659_s12 = smov 90   ;;  %v499_v27 = vld [vmem:[%s1126_s0 + $0x26] sm:$0x1]   ;;  %s661_s18 = smov 86  }
   0xc   :  { %62 = vrot.lane.b32.xlu0 %v475_v12, %s647_s30  ;;  %68 = vrot.lane.b32.xlu1 %v476_v13, %s648_s2  ;;  %s657_s2 = smov 95   ;;  %v501_v28 = vld [vmem:[%s1126_s0 + $0x34] sm:$0x1]   ;;  %v503_v29 = vld [vmem:[%s1126_s0 + $0x9] sm:$0x1]   ;;  %s663_s24 = smov 81  }
   0xd   :  { %v504_v30 = vld [vmem:[%s1126_s0 + $0x17] sm:$0x1]   ;;  %v506_v31 = vld [vmem:[%s1126_s0 + $0x25] sm:$0x1]   ;;  %v508_v32 = vld [vmem:[%s1126_s0 + $0x33] sm:$0x1]  }
   0xe   :  { %s665_s30 = smov 77   ;;  %v510_v33 = vld [vmem:[%s1126_s0 + $0x8] sm:$0x1]   ;;  %v511_v34 = vld [vmem:[%s1126_s0 + $0x16] sm:$0x1]   ;;  %s676_s3 = smov 54  }
   0xf   :  { %v513_v35 = vld [vmem:[%s1126_s0 + $0x24] sm:$0x1]   ;;  %v515_v36 = vld [vmem:[%s1126_s0 + $0x32] sm:$0x1]   ;;  %v517_v37 = vld [vmem:[%s1126_s0 + $0x7] sm:$0x1]  }
  0x10   :  { %75 = vrot.lane.b32.xlu0 %v478_v14, %s649_s7  ;;  %82 = vrot.lane.b32.xlu1 %v480_v15, %s650_s8  ;;  %s667_s7 = smov 72   ;;  %s668_s8 = smov 70   ;;  %v518_v38 = vld [vmem:[%s1126_s0 + $0x15] sm:$0x1]   ;;  %v520_v39 = vld [vmem:[%s1126_s0 + $0x23] sm:$0x1]  }
  0x11   :  { %v522_v40 = vld [vmem:[%s1126_s0 + $0x31] sm:$0x1]   ;;  %v524_v41 = vld [vmem:[%s1126_s0 + $0x3f] sm:$0x1]   ;;  %v526_v42 = vld [vmem:[%s1126_s0 + $0x6] sm:$0x1]  }
  0x12   :  { %v527_v43 = vld [vmem:[%s1126_s0 + $0x14] sm:$0x1]   ;;  %v529_v44 = vld [vmem:[%s1126_s0 + $0x22] sm:$0x1]   ;;  %s678_s9 = smov 50   ;;  %s680_s15 = smov 46  }
  0x13   :  { %v531_v45 = vld [vmem:[%s1126_s0 + $0x30] sm:$0x1]   ;;  %v533_v46 = vld [vmem:[%s1126_s0 + $0x3e] sm:$0x1]   ;;  %v535_v47 = vld [vmem:[%s1126_s0 + $0x5] sm:$0x1]  }
  0x14   :  { %89 = vrot.lane.b32.xlu0 %v482_v16, %s651_s13  ;;  %95 = vrot.lane.b32.xlu1 %v483_v17, %s652_s14  ;;  %s660_s13 = smov 88   ;;  %s670_s14 = smov 66   ;;  %v536_v48 = vld [vmem:[%s1126_s0 + $0x13] sm:$0x1]   ;;  %v538_v49 = vld [vmem:[%s1126_s0 + $0x21] sm:$0x1]  }
  0x15   :  { %s682_s21 = smov 43   ;;  %v540_v50 = vld [vmem:[%s1126_s0 + $0x2f] sm:$0x1]   ;;  %s684_s27 = smov 39   ;;  %v542_v51 = vld [vmem:[%s1126_s0 + $0x3d] sm:$0x1]  }
  0x16   :  { %v544_v52 = vld [vmem:[%s1126_s0 + $0x4] sm:$0x1]   ;;  %s686_s4 = smov 36   ;;  %v545_v53 = vld [vmem:[%s1126_s0 + $0x12] sm:$0x1]   ;;  %s688_s10 = smov 32  }
  0x17   :  { %v547_v54 = vld [vmem:[%s1126_s0 + $0x20] sm:$0x1]   ;;  %v549_v55 = vld [vmem:[%s1126_s0 + $0x2e] sm:$0x1]   ;;  %v551_v56 = vld [vmem:[%s1126_s0 + $0x3c] sm:$0x1]  }
  0x18   :  { %102 = vrot.lane.b32.xlu0 %v485_v18, %s653_s19  ;;  %109 = vrot.lane.b32.xlu1 %v487_v19, %s654_s20  ;;  %s662_s19 = smov 84   ;;  %s672_s20 = smov 61   ;;  %v553_v57 = vld [vmem:[%s1126_s0 + $0x3] sm:$0x1]   ;;  %v554_v58 = vld [vmem:[%s1126_s0 + $0x11] sm:$0x1]  }
  0x19   :  { %s690_s16 = smov 28   ;;  %s692_s22 = smov 25   ;;  %v556_v59 = vld [vmem:[%s1126_s0 + $0x1f] sm:$0x1]   ;;  %v558_v60 = vld [vmem:[%s1126_s0 + $0x2d] sm:$0x1]  }
  0x1a   :  { %s694_s28 = smov 21   ;;  %v560_v61 = vld [vmem:[%s1126_s0 + $0x3b] sm:$0x1]   ;;  %v562_v62 = vld [vmem:[%s1126_s0 + $0x2] sm:$0x1]   ;;  %s698_s11 = smov 14  }
  0x1b   :  { %v563_v63 = vld [vmem:[%s1126_s0 + $0x10] sm:$0x1]   ;;  %v565_v0 = vld [vmem:[%s1126_s0 + $0x1e] sm:$0x1]   ;;  %v567_v1 = vld [vmem:[%s1126_s0 + $0x2c] sm:$0x1]  }
  0x1c   :  { %116 = vrot.lane.b32.xlu0 %v489_v20, %s655_s25  ;;  %122 = vrot.lane.b32.xlu1 %v490_v21, %s656_s26  ;;  %s664_s25 = smov 79   ;;  %s674_s26 = smov 57   ;;  %v569_v2 = vld [vmem:[%s1126_s0 + $0x3a] sm:$0x1]   ;;  %vm13_vm5 = vcmask 56320   ;;  %vm16_vm6 = vcmask 1048560  }
  0x1d   :  { %s700_s17 = smov 10   ;;  %v571_v3 = vld [vmem:[%s1126_s0 + $0x1] sm:$0x1]   ;;  %vm40_vm7 = vcmask 23552   ;;  %v572_v5 = vld [vmem:[%s1126_s0 + $0xf] sm:$0x1]  }
  0x1e   :  { %vm26_vm8 = vcmask 39936   ;;  %vm29_vm9 = vcmask 1048544   ;;  %vm43_vm10 = vcmask 1048528   ;;  %s702_s29 = smov 7   ;;  %v574_v7 = vld [vmem:[%s1126_s0 + $0x1d] sm:$0x1]  }
  0x1f   :  { %vm54_vm11 = vcmask 7168   ;;  %vm57_vm12 = vcmask 1048512   ;;  %v576_v9 = vld [vmem:[%s1126_s0 + $0x2b] sm:$0x1]   ;;  %vm64_vm13 = vcmask 1032104   ;;  %vm70_vm14 = vcmask 1015704  }
  0x20   :  { %129 = vrot.lane.b32.xlu0 %v492_v22, %s657_s2  ;;  %136 = vrot.lane.b32.xlu1 %v494_v23, %s658_s5  ;;  %s666_s2 = smov 75   ;;  %s696_s5 = smov 18   ;;  %v578_v11 = vld [vmem:[%s1126_s0 + $0x39] sm:$0x1]   ;;  %vm77_vm15 = vcmask 999304   ;;  %vm84_vm0 = vcmask 982904  }
  0x21   :  { %vm91_vm1 = vcmask 958304   ;;  %vm97_vm2 = vcmask 941904   ;;  %vm104_vm3 = vcmask 925504   ;;  %vm111_vm4 = vcmask 909104  }
  0x24   :  { %143 = vrot.lane.b32.xlu0 %v496_v25, %s659_s12  ;;  %149 = vrot.lane.b32.xlu1 %v497_v26, %s660_s13  ;;  %s669_s13 = smov 68  }
  0x28   :  { %156 = vrot.lane.b32.xlu0 %v499_v27, %s661_s18  ;;  %163 = vrot.lane.b32.xlu1 %v501_v28, %s662_s19  ;;  %s671_s19 = smov 63  }
  0x2c   :  { %170 = vrot.lane.b32.xlu0 %v503_v29, %s663_s24  ;;  %176 = vrot.lane.b32.xlu1 %v504_v30, %s664_s25  ;;  %s673_s25 = smov 59  }
  0x30   :  { %183 = vrot.lane.b32.xlu0 %v506_v31, %s665_s30  ;;  %190 = vrot.lane.b32.xlu1 %v508_v32, %s666_s2  ;;  %s675_s2 = smov 55  }
  0x34   :  { %197 = vrot.lane.b32.xlu0 %v510_v33, %s667_s7  ;;  %203 = vrot.lane.b32.xlu1 %v511_v34, %s668_s8  ;;  %s677_s8 = smov 52  }
  0x38   :  { %210 = vrot.lane.b32.xlu0 %v513_v35, %s669_s13  ;;  %217 = vrot.lane.b32.xlu1 %v515_v36, %s670_s14  ;;  %s679_s14 = smov 48  }
  0x3c   :  { %224 = vrot.lane.b32.xlu0 %v517_v37, %s671_s19  ;;  %230 = vrot.lane.b32.xlu1 %v518_v38, %s672_s20  ;;  %s681_s20 = smov 45  }
  0x40   :  { %237 = vrot.lane.b32.xlu0 %v520_v39, %s673_s25  ;;  %244 = vrot.lane.b32.xlu1 %v522_v40, %s674_s26  ;;  %s683_s26 = smov 41  }
  0x44   :  { %251 = vrot.lane.b32.xlu0 %v524_v41, %s675_s2  ;;  %258 = vrot.lane.b32.xlu1 %v526_v42, %s676_s3  ;;  %s685_s3 = smov 37  }
  0x48   :  { %264 = vrot.lane.b32.xlu0 %v527_v43, %s677_s8  ;;  %271 = vrot.lane.b32.xlu1 %v529_v44, %s678_s9  ;;  %s687_s9 = smov 34  }
  0x4c   :  { %278 = vrot.lane.b32.xlu0 %v531_v45, %s679_s14  ;;  %285 = vrot.lane.b32.xlu1 %v533_v46, %s680_s15  ;;  %s689_s15 = smov 30  }
  0x50   :  { %292 = vrot.lane.b32.xlu0 %v535_v47, %s681_s20  ;;  %298 = vrot.lane.b32.xlu1 %v536_v48, %s682_s21  ;;  %s691_s21 = smov 27   ;;  %s705_s20 = smov 1  }
  0x54   :  { %305 = vrot.lane.b32.xlu0 %v538_v49, %s683_s26  ;;  %312 = vrot.lane.b32.xlu1 %v540_v50, %s684_s27  ;;  %s693_s27 = smov 23   ;;  %s701_s26 = smov 9  }
  0x58   :  { %319 = vrot.lane.b32.xlu0 %v542_v51, %s685_s3  ;;  %326 = vrot.lane.b32.xlu1 %v544_v52, %s686_s4  ;;  %s695_s4 = smov 19  }
  0x5c   :  { %332 = vrot.lane.b32.xlu0 %v545_v53, %s687_s9  ;;  %339 = vrot.lane.b32.xlu1 %v547_v54, %s688_s10  ;;  %s697_s10 = smov 16  }
  0x60   :  { %346 = vrot.lane.b32.xlu0 %v549_v55, %s689_s15  ;;  %353 = vrot.lane.b32.xlu1 %v551_v56, %s690_s16  ;;  %s699_s16 = smov 12  }
  0x64   :  { %360 = vrot.lane.b32.xlu0 %v553_v57, %s691_s21  ;;  %366 = vrot.lane.b32.xlu1 %v554_v58, %s692_s22 }
  0x68   :  { %373 = vrot.lane.b32.xlu0 %v556_v59, %s693_s27  ;;  %380 = vrot.lane.b32.xlu1 %v558_v60, %s694_s28 }
  0x6c   :  { %387 = vrot.lane.b32.xlu0 %v560_v61, %s695_s4  ;;  %394 = vrot.lane.b32.xlu1 %v562_v62, %s696_s5 }
  0x70   :  { %400 = vrot.lane.b32.xlu0 %v563_v63, %s697_s10  ;;  %407 = vrot.lane.b32.xlu1 %v565_v0, %s698_s11  ;;  %s703_s11 = smov 5  }
  0x74   :  { %414 = vrot.lane.b32.xlu0 %v567_v1, %s699_s16  ;;  %421 = vrot.lane.b32.xlu1 %v569_v2, %s700_s17  ;;  %s704_s16 = smov 3  }
  0x76   :  { %v12_v4 = vpop.permute.xlu0 %11   ;;  %v39_v6 = vpop.permute.xlu1 %38  }
  0x77   :  { %462 = vst.msk [vmem:[%s1127_s1 + $0x1] sm:$0x1] %vm13_vm5, %v12_v4   ;;  %vm118_vm5 = vcmask 884504  }
  0x78   :  { %17 = vst.msk [vmem:[%s1127_s1] sm:$0x1] %vm16_vm6, %v12_v4   ;;  %428 = vrot.lane.b32.xlu0 %v571_v3, %s701_s26  ;;  %434 = vrot.lane.b32.xlu1 %v572_v5, %s702_s29  ;;  %vm124_vm6 = vcmask 868104  }
  0x79   :  { %469 = vst.msk [vmem:[%s1127_s1 + $0x3] sm:$0x1] %vm40_vm7, %v39_v6   ;;  %vm131_vm7 = vcmask 851704  }
  0x7a   :  { %v25_v8 = vpop.permute.xlu0 %24   ;;  %v53_v10 = vpop.permute.xlu1 %52  }
  0x7b   :  { %465 = vst.msk [vmem:[%s1127_s1 + $0x2] sm:$0x1] %vm26_vm8, %v25_v8   ;;  %vm138_vm8 = vcmask 835304  }
  0x7c   :  { %466 = vst.msk [vmem:[%s1127_s1 + $0x1] sm:$0x1] %vm29_vm9, %v25_v8   ;;  %441 = vrot.lane.b32.xlu0 %v574_v7, %s703_s11  ;;  %448 = vrot.lane.b32.xlu1 %v576_v9, %s704_s16  ;;  %vm145_vm9 = vcmask 810704  }
  0x7d   :  { %470 = vst.msk [vmem:[%s1127_s1 + $0x2] sm:$0x1] %vm43_vm10, %v39_v6   ;;  %vm151_vm10 = vcmask 794304  }
  0x7e   :  { %473 = vst.msk [vmem:[%s1127_s1 + $0x4] sm:$0x1] %vm54_vm11, %v53_v10   ;;  %v63_v12 = vpop.permute.xlu0 %62   ;;  %v69_v13 = vpop.permute.xlu1 %68   ;;  %vm158_vm11 = vcmask 777904  }
  0x7f   :  { %474 = vst.msk [vmem:[%s1127_s1 + $0x3] sm:$0x1] %vm57_vm12, %v53_v10   ;;  %vm165_vm12 = vcmask 761504  }
  0x80   :  { %65 = vst.msk [vmem:[%s1127_s1] sm:$0x1] %vm64_vm13, %v63_v12   ;;  %455 = vrot.lane.b32.xlu0 %v578_v11, %s705_s20  ;;  %vm172_vm13 = vcmask 736904  }
  0x81   :  { %477 = vst.msk [vmem:[%s1127_s1 + $0x1] sm:$0x1] %vm70_vm14, %v69_v13   ;;  %vm178_vm14 = vcmask 720504  }
  0x82   :  { %v76_v14 = vpop.permute.xlu0 %75   ;;  %v83_v15 = vpop.permute.xlu1 %82  }
  0x83   :  { %479 = vst.msk [vmem:[%s1127_s1 + $0x2] sm:$0x1] %vm77_vm15, %v76_v14   ;;  %vm185_vm15 = vcmask 704104  }
  0x84   :  { %481 = vst.msk [vmem:[%s1127_s1 + $0x3] sm:$0x1] %vm84_vm0, %v83_v15   ;;  %vm192_vm0 = vcmask 687704  }
  0x86   :  { %v90_v16 = vpop.permute.xlu0 %89   ;;  %v96_v17 = vpop.permute.xlu1 %95  }
  0x87   :  { %92 = vst.msk [vmem:[%s1127_s1] sm:$0x1] %vm91_vm1, %v90_v16   ;;  %vm199_vm1 = vcmask 663104  }
  0x88   :  { %484 = vst.msk [vmem:[%s1127_s1 + $0x1] sm:$0x1] %vm97_vm2, %v96_v17   ;;  %vm205_vm2 = vcmask 646704  }
  0x8a   :  { %v103_v18 = vpop.permute.xlu0 %102   ;;  %v110_v19 = vpop.permute.xlu1 %109  }
  0x8b   :  { %486 = vst.msk [vmem:[%s1127_s1 + $0x2] sm:$0x1] %vm104_vm3, %v103_v18   ;;  %vm212_vm3 = vcmask 630304  }
  0x8c   :  { %488 = vst.msk [vmem:[%s1127_s1 + $0x3] sm:$0x1] %vm111_vm4, %v110_v19   ;;  %vm219_vm4 = vcmask 613904  }
  0x8e   :  { %v117_v20 = vpop.permute.xlu0 %116   ;;  %v123_v21 = vpop.permute.xlu1 %122  }
  0x8f   :  { %119 = vst.msk [vmem:[%s1127_s1] sm:$0x1] %vm118_vm5, %v117_v20   ;;  %vm226_vm5 = vcmask 589304  }
  0x90   :  { %491 = vst.msk [vmem:[%s1127_s1 + $0x1] sm:$0x1] %vm124_vm6, %v123_v21   ;;  %vm232_vm6 = vcmask 572904  }
  0x92   :  { %v130_v22 = vpop.permute.xlu0 %129   ;;  %v137_v23 = vpop.permute.xlu1 %136  }
  0x93   :  { %493 = vst.msk [vmem:[%s1127_s1 + $0x2] sm:$0x1] %vm131_vm7, %v130_v22   ;;  %vm239_vm7 = vcmask 556504  }
  0x94   :  { %495 = vst.msk [vmem:[%s1127_s1 + $0x3] sm:$0x1] %vm138_vm8, %v137_v23   ;;  %vm246_vm8 = vcmask 540104  }
  0x96   :  { %v144_v24 = vpop.permute.xlu0 %143   ;;  %v150_v25 = vpop.permute.xlu1 %149  }
  0x97   :  { %146 = vst.msk [vmem:[%s1127_s1] sm:$0x1] %vm145_vm9, %v144_v24   ;;  %vm253_vm9 = vcmask 523704  }
  0x98   :  { %498 = vst.msk [vmem:[%s1127_s1 + $0x1] sm:$0x1] %vm151_vm10, %v150_v25   ;;  %vm260_vm10 = vcmask 515504  }
  0x9a   :  { %v157_v26 = vpop.permute.xlu0 %156   ;;  %v164_v27 = vpop.permute.xlu1 %163  }
  0x9b   :  { %500 = vst.msk [vmem:[%s1127_s1 + $0x2] sm:$0x1] %vm158_vm11, %v157_v26   ;;  %vm266_vm11 = vcmask 499104  }
  0x9c   :  { %502 = vst.msk [vmem:[%s1127_s1 + $0x3] sm:$0x1] %vm165_vm12, %v164_v27   ;;  %vm273_vm12 = vcmask 482704  }
  0x9e   :  { %v171_v28 = vpop.permute.xlu0 %170   ;;  %v177_v29 = vpop.permute.xlu1 %176  }
  0x9f   :  { %173 = vst.msk [vmem:[%s1127_s1] sm:$0x1] %vm172_vm13, %v171_v28   ;;  %vm280_vm13 = vcmask 466304  }
  0xa0   :  { %505 = vst.msk [vmem:[%s1127_s1 + $0x1] sm:$0x1] %vm178_vm14, %v177_v29   ;;  %vm287_vm14 = vcmask 449904  }
  0xa2   :  { %v184_v30 = vpop.permute.xlu0 %183   ;;  %v191_v31 = vpop.permute.xlu1 %190  }
  0xa3   :  { %507 = vst.msk [vmem:[%s1127_s1 + $0x2] sm:$0x1] %vm185_vm15, %v184_v30   ;;  %vm294_vm15 = vcmask 441704  }
  0xa4   :  { %509 = vst.msk [vmem:[%s1127_s1 + $0x3] sm:$0x1] %vm192_vm0, %v191_v31   ;;  %vm300_vm0 = vcmask 425304  }
  0xa6   :  { %v198_v32 = vpop.permute.xlu0 %197   ;;  %v204_v33 = vpop.permute.xlu1 %203  }
  0xa7   :  { %200 = vst.msk [vmem:[%s1127_s1] sm:$0x1] %vm199_vm1, %v198_v32   ;;  %vm307_vm1 = vcmask 408904  }
  0xa8   :  { %512 = vst.msk [vmem:[%s1127_s1 + $0x1] sm:$0x1] %vm205_vm2, %v204_v33   ;;  %vm314_vm2 = vcmask 392504  }
  0xaa   :  { %v211_v34 = vpop.permute.xlu0 %210   ;;  %v218_v35 = vpop.permute.xlu1 %217  }
  0xab   :  { %514 = vst.msk [vmem:[%s1127_s1 + $0x2] sm:$0x1] %vm212_vm3, %v211_v34   ;;  %vm321_vm3 = vcmask 376104  }
  0xac   :  { %516 = vst.msk [vmem:[%s1127_s1 + $0x3] sm:$0x1] %vm219_vm4, %v218_v35   ;;  %vm328_vm4 = vcmask 367904  }
  0xae   :  { %v225_v36 = vpop.permute.xlu0 %224   ;;  %v231_v37 = vpop.permute.xlu1 %230  }
  0xaf   :  { %227 = vst.msk [vmem:[%s1127_s1] sm:$0x1] %vm226_vm5, %v225_v36   ;;  %vm334_vm5 = vcmask 351504  }
  0xb0   :  { %519 = vst.msk [vmem:[%s1127_s1 + $0x1] sm:$0x1] %vm232_vm6, %v231_v37   ;;  %vm341_vm6 = vcmask 335104  }
  0xb2   :  { %v238_v38 = vpop.permute.xlu0 %237   ;;  %v245_v39 = vpop.permute.xlu1 %244  }
  0xb3   :  { %521 = vst.msk [vmem:[%s1127_s1 + $0x2] sm:$0x1] %vm239_vm7, %v238_v38   ;;  %vm348_vm7 = vcmask 318704  }
  0xb4   :  { %523 = vst.msk [vmem:[%s1127_s1 + $0x3] sm:$0x1] %vm246_vm8, %v245_v39   ;;  %vm355_vm8 = vcmask 302304  }
  0xb6   :  { %v252_v40 = vpop.permute.xlu0 %251   ;;  %v259_v41 = vpop.permute.xlu1 %258  }
  0xb7   :  { %525 = vst.msk [vmem:[%s1127_s1 + $0x4] sm:$0x1] %vm253_vm9, %v252_v40   ;;  %vm362_vm9 = vcmask 294104  }
  0xb8   :  { %261 = vst.msk [vmem:[%s1127_s1] sm:$0x1] %vm260_vm10, %v259_v41   ;;  %vm368_vm10 = vcmask 277704  }
  0xba   :  { %v265_v42 = vpop.permute.xlu0 %264   ;;  %v272_v43 = vpop.permute.xlu1 %271  }
  0xbb   :  { %528 = vst.msk [vmem:[%s1127_s1 + $0x1] sm:$0x1] %vm266_vm11, %v265_v42   ;;  %vm375_vm11 = vcmask 261304  }
  0xbc   :  { %530 = vst.msk [vmem:[%s1127_s1 + $0x2] sm:$0x1] %vm273_vm12, %v272_v43   ;;  %vm382_vm12 = vcmask 244904  }
  0xbe   :  { %v279_v44 = vpop.permute.xlu0 %278   ;;  %v286_v45 = vpop.permute.xlu1 %285  }
  0xbf   :  { %532 = vst.msk [vmem:[%s1127_s1 + $0x3] sm:$0x1] %vm280_vm13, %v279_v44   ;;  %vm389_vm13 = vcmask 228504  }
  0xc0   :  { %534 = vst.msk [vmem:[%s1127_s1 + $0x4] sm:$0x1] %vm287_vm14, %v286_v45   ;;  %vm396_vm14 = vcmask 220304  }
  0xc2   :  { %v293_v46 = vpop.permute.xlu0 %292   ;;  %v299_v47 = vpop.permute.xlu1 %298  }
  0xc3   :  { %295 = vst.msk [vmem:[%s1127_s1] sm:$0x1] %vm294_vm15, %v293_v46   ;;  %vm402_vm15 = vcmask 203904  }
  0xc4   :  { %537 = vst.msk [vmem:[%s1127_s1 + $0x1] sm:$0x1] %vm300_vm0, %v299_v47   ;;  %vm409_vm0 = vcmask 187504  }
  0xc6   :  { %v306_v48 = vpop.permute.xlu0 %305   ;;  %v313_v49 = vpop.permute.xlu1 %312  }
  0xc7   :  { %539 = vst.msk [vmem:[%s1127_s1 + $0x2] sm:$0x1] %vm307_vm1, %v306_v48   ;;  %vm416_vm1 = vcmask 171104  }
  0xc8   :  { %541 = vst.msk [vmem:[%s1127_s1 + $0x3] sm:$0x1] %vm314_vm2, %v313_v49   ;;  %vm423_vm2 = vcmask 154704  }
  0xca   :  { %v320_v50 = vpop.permute.xlu0 %319   ;;  %v327_v51 = vpop.permute.xlu1 %326  }
  0xcb   :  { %543 = vst.msk [vmem:[%s1127_s1 + $0x4] sm:$0x1] %vm321_vm3, %v320_v50   ;;  %vm430_vm3 = vcmask 146504  }
  0xcc   :  { %329 = vst.msk [vmem:[%s1127_s1] sm:$0x1] %vm328_vm4, %v327_v51   ;;  %vm436_vm4 = vcmask 130104  }
  0xce   :  { %v333_v52 = vpop.permute.xlu0 %332   ;;  %v340_v53 = vpop.permute.xlu1 %339  }
  0xcf   :  { %546 = vst.msk [vmem:[%s1127_s1 + $0x1] sm:$0x1] %vm334_vm5, %v333_v52   ;;  %vm443_vm5 = vcmask 113704  }
  0xd0   :  { %548 = vst.msk [vmem:[%s1127_s1 + $0x2] sm:$0x1] %vm341_vm6, %v340_v53   ;;  %vm450_vm6 = vcmask 97304  }
  0xd2   :  { %v347_v54 = vpop.permute.xlu0 %346   ;;  %v354_v55 = vpop.permute.xlu1 %353  }
  0xd3   :  { %550 = vst.msk [vmem:[%s1127_s1 + $0x3] sm:$0x1] %vm348_vm7, %v347_v54   ;;  %vm457_vm7 = vcmask 80904  }
  0xd4   :  { %552 = vst.msk [vmem:[%s1127_s1 + $0x4] sm:$0x1] %vm355_vm8, %v354_v55  }
  0xd6   :  { %v361_v56 = vpop.permute.xlu0 %360   ;;  %v367_v57 = vpop.permute.xlu1 %366  }
  0xd7   :  { %363 = vst.msk [vmem:[%s1127_s1] sm:$0x1] %vm362_vm9, %v361_v56  }
  0xd8   :  { %555 = vst.msk [vmem:[%s1127_s1 + $0x1] sm:$0x1] %vm368_vm10, %v367_v57  }
  0xda   :  { %v374_v58 = vpop.permute.xlu0 %373   ;;  %v381_v59 = vpop.permute.xlu1 %380  }
  0xdb   :  { %557 = vst.msk [vmem:[%s1127_s1 + $0x2] sm:$0x1] %vm375_vm11, %v374_v58  }
  0xdc   :  { %559 = vst.msk [vmem:[%s1127_s1 + $0x3] sm:$0x1] %vm382_vm12, %v381_v59  }
  0xde   :  { %v388_v60 = vpop.permute.xlu0 %387   ;;  %v395_v61 = vpop.permute.xlu1 %394  }
  0xdf   :  { %561 = vst.msk [vmem:[%s1127_s1 + $0x4] sm:$0x1] %vm389_vm13, %v388_v60  }
  0xe0   :  { %397 = vst.msk [vmem:[%s1127_s1] sm:$0x1] %vm396_vm14, %v395_v61  }
  0xe2   :  { %v401_v62 = vpop.permute.xlu0 %400   ;;  %v408_v63 = vpop.permute.xlu1 %407  }
  0xe3   :  { %564 = vst.msk [vmem:[%s1127_s1 + $0x1] sm:$0x1] %vm402_vm15, %v401_v62  }
  0xe4   :  { %566 = vst.msk [vmem:[%s1127_s1 + $0x2] sm:$0x1] %vm409_vm0, %v408_v63  }
  0xe6   :  { %v415_v0 = vpop.permute.xlu0 %414   ;;  %v422_v1 = vpop.permute.xlu1 %421  }
  0xe7   :  { %568 = vst.msk [vmem:[%s1127_s1 + $0x3] sm:$0x1] %vm416_vm1, %v415_v0  }
  0xe8   :  { %570 = vst.msk [vmem:[%s1127_s1 + $0x4] sm:$0x1] %vm423_vm2, %v422_v1  }
  0xea   :  { %v429_v2 = vpop.permute.xlu0 %428   ;;  %v435_v3 = vpop.permute.xlu1 %434  }
  0xeb   :  { %431 = vst.msk [vmem:[%s1127_s1] sm:$0x1] %vm430_vm3, %v429_v2  }
  0xec   :  { %573 = vst.msk [vmem:[%s1127_s1 + $0x1] sm:$0x1] %vm436_vm4, %v435_v3  }
  0xee   :  { %v442_v4 = vpop.permute.xlu0 %441   ;;  %v449_v5 = vpop.permute.xlu1 %448  }
  0xef   :  { %575 = vst.msk [vmem:[%s1127_s1 + $0x2] sm:$0x1] %vm443_vm5, %v442_v4  }
  0xf0   :  { %577 = vst.msk [vmem:[%s1127_s1 + $0x3] sm:$0x1] %vm450_vm6, %v449_v5  }
  0xf2   :  { %v456_v6 = vpop.permute.xlu0 %455  }
  0xf3   :  { %579 = vst.msk [vmem:[%s1127_s1 + $0x4] sm:$0x1] %vm457_vm7, %v456_v6  }

// kernel: ae_cluster_forward.8
= control target key start
LH: loop header
LB: loop body
LE: loop exit
PB: predicated region body
PF: predicated region fallthrough
CT: control target
= control target key end

     0   :  { %s1194_s12 = smov 0   ;;  %s1196_s13 = smov 0   ;;  %s1541_s0 = inlined_call_operand.vmem [shape: f32[128,576], index: 0, kind: input, shape index: {}]   ;;  %s1542_s1 = inlined_call_operand.vmem [shape: f32[576,18], index: 1, kind: input, shape index: {}]   ;;  %s1543_s2 = inlined_call_operand.vmem [shape: f32[128,1], index: 2, kind: input, shape index: {}]   ;;  %s1544_s3 = inlined_call_operand.vmem [shape: f32[128,18], index: 3, kind: output, shape index: {}]  }
   0x1   :  { %s1198_s14 = smov 0  }
   0x2 LB: > { %s25_s15 = sadd.s32 1, %s1167_s13  ;;  %p860_p0 = scmp.ge.s32.totalorder %s1171_s14, 1  ;;  %s1171_s14 = sphi %s1198_s14, %s13_s14   ;;  %s1167_s13 = sphi %s1196_s13, %s1547_s13   ;;  %s1163_s12 = sphi %s1194_s12, %s1546_s12  }
   0x3   : > { %p27_p1 = scmp.ge.s32.totalorder %s25_s15, 2  ;;  %p173_p2 = scmp.lt.s32.totalorder %s1171_s14, 3 }
   0x5   : > { %s1549_s15 = smov (%p27_p1, %s25_s15), 0  ;;  %p174_p3 = pnand %p860_p0, %p173_p2 }
   0x6   : > { %v292_v0 = vld [vmem:[%s1542_s1 + $0x80] sm:$0xff] (!%p174_p3)  ;;  %v293_v1 = vld [vmem:[%s1542_s1 + $0x88] sm:$0xff] (!%p174_p3)  ;;  %v1173_v7 = vmov (!%p174_p3), 0   ;;  %v294_v12 = vld [vmem:[%s1542_s1 + $0x90] sm:$0xff] (!%p174_p3)  ;;  %s861_s17 = sshll.u32 (!%p174_p3), %s1163_s12, 3  ;;  %vm396_vm0 = vcmask (!%p174_p3), 523264  }
   0x7   : > { %177 = sbr.rel (%p174_p3) target bundleno = 297 (0x129), region = 32  ;;  %v324_v2 = vld [vmem:[%s1542_s1 + $0x180] sm:$0xff] (!%p174_p3)  ;;  %v1033_v3 = vpack.c.bf16 (!%p174_p3), %v293_v1, %v292_v0  ;;  %v325_v4 = vld [vmem:[%s1542_s1 + $0x188] sm:$0xff] (!%p174_p3)  ;;  %1147 = vset.pattern.permute.xlu0 (!%p174_p3), %v1173_v7  ;;  %1148 = vset.pattern.permute.xlu1 (!%p174_p3), %v1173_v7  ;;  %v295_v14 = vld [vmem:[%s1542_s1 + $0x98] sm:$0xff] (!%p174_p3)  ;;  %p1280_p4 = scmp.lt.s32.totalorder (!%p174_p3), %s861_s17, 15  ;;  %vm744_vm1 = vcmask (!%p174_p3), 146432  }
   0x8   : > { %v276_v5 = vld [vmem:[%s1542_s1] sm:$0xff] (!%p174_p3)  ;;  %v277_v6 = vld [vmem:[%s1542_s1 + $0x8] sm:$0xff] (!%p174_p3)  ;;  %v1065_v8 = vpack.c.bf16 (!%p174_p3), %v325_v4, %v324_v2  ;;  %v326_v15 = vld [vmem:[%s1542_s1 + $0x190] sm:$0xff] (!%p174_p3)  ;;  %v1037_v17 = vpack.c.bf16 (!%p174_p3), %v295_v14, %v294_v12 }
   0x9   : > { %v1035_v9 = vpack.c.bf16 (!%p174_p3), %v277_v6, %v276_v5  ;;  %v308_v10 = vld [vmem:[%s1542_s1 + $0x100] sm:$0xff] (!%p174_p3)  ;;  %v309_v11 = vld [vmem:[%s1542_s1 + $0x108] sm:$0xff] (!%p174_p3)  ;;  %1034 = vmatprep.subr.bf16.mxu0 (!%p174_p3), %v1033_v3  ;;  %v327_v16 = vld [vmem:[%s1542_s1 + $0x198] sm:$0xff] (!%p174_p3) }
   0xa   : > { %v1067_v13 = vpack.c.bf16 (!%p174_p3), %v309_v11, %v308_v10  ;;  %1066 = vmatprep.subr.bf16.mxu1 (!%p174_p3), %v1065_v8  ;;  %v1069_v18 = vpack.c.bf16 (!%p174_p3), %v327_v16, %v326_v15  ;;  %v278_v19 = vld [vmem:[%s1542_s1 + $0x10] sm:$0xff] (!%p174_p3)  ;;  %v279_v20 = vld [vmem:[%s1542_s1 + $0x18] sm:$0xff] (!%p174_p3)  ;;  %v296_v24 = vld [vmem:[%s1542_s1 + $0xa0] sm:$0xff] (!%p174_p3) }
   0xb   : > { %1036 = vmatpush3.bf16.msra.mxu0 (!%p174_p3), %v1035_v9  ;;  %v310_v21 = vld [vmem:[%s1542_s1 + $0x110] sm:$0xff] (!%p174_p3)  ;;  %v1039_v22 = vpack.c.bf16 (!%p174_p3), %v279_v20, %v278_v19  ;;  %v311_v23 = vld [vmem:[%s1542_s1 + $0x118] sm:$0xff] (!%p174_p3)  ;;  %v297_v25 = vld [vmem:[%s1542_s1 + $0xa8] sm:$0xff] (!%p174_p3) }
   0xc   : > { %1068 = vmatpush3.bf16.msra.mxu1 (!%p174_p3), %v1067_v13  ;;  %1038 = vmatprep.subr.bf16.mxu0 (!%p174_p3), %v1037_v17  ;;  %v1071_v26 = vpack.c.bf16 (!%p174_p3), %v311_v23, %v310_v21  ;;  %v1041_v27 = vpack.c.bf16 (!%p174_p3), %v297_v25, %v296_v24  ;;  %v328_v28 = vld [vmem:[%s1542_s1 + $0x1a0] sm:$0xff] (!%p174_p3)  ;;  %v329_v29 = vld [vmem:[%s1542_s1 + $0x1a8] sm:$0xff] (!%p174_p3)  ;;  %v298_v36 = vld [vmem:[%s1542_s1 + $0xb0] sm:$0xff] (!%p174_p3) }
   0xd   : > { %1070 = vmatprep.subr.bf16.mxu1 (!%p174_p3), %v1069_v18  ;;  %v280_v30 = vld [vmem:[%s1542_s1 + $0x20] sm:$0xff] (!%p174_p3)  ;;  %v1073_v31 = vpack.c.bf16 (!%p174_p3), %v329_v29, %v328_v28  ;;  %v281_v32 = vld [vmem:[%s1542_s1 + $0x28] sm:$0xff] (!%p174_p3)  ;;  %v299_v37 = vld [vmem:[%s1542_s1 + $0xb8] sm:$0xff] (!%p174_p3) }
   0xe   : > { %v312_v33 = vld [vmem:[%s1542_s1 + $0x120] sm:$0xff]  ;;  %v313_v34 = vld [vmem:[%s1542_s1 + $0x128] sm:$0xff]  ;;  %v1043_v35 = vpack.c.bf16 %v281_v32, %v280_v30  ;;  %v330_v38 = vld [vmem:[%s1542_s1 + $0x1b0] sm:$0xff]  ;;  %v1045_v40 = vpack.c.bf16 %v299_v37, %v298_v36  ;;  %s1551_s17 = smov (!%p1280_p4, %s861_s17), 15 }
   0xf   : > { %1040 = vmatpush3.bf16.msra.mxu0 %v1039_v22  ;;  %v1075_v39 = vpack.c.bf16 %v313_v34, %v312_v33  ;;  %v331_v41 = vld [vmem:[%s1542_s1 + $0x1b8] sm:$0xff]  ;;  %v282_v42 = vld [vmem:[%s1542_s1 + $0x30] sm:$0xff]  ;;  %v300_v47 = vld [vmem:[%s1542_s1 + $0xc0] sm:$0xff]  ;;  %s1121_s7 = smul.u32 40, %s1551_s17  ;;  %s864_s4 = sshll.u32 %s1551_s17, 3 }
  0x10   : > { %1072 = vmatpush3.bf16.msra.mxu1 %v1071_v26  ;;  %1042 = vmatprep.subr.bf16.mxu0 %v1041_v27  ;;  %v283_v43 = vld [vmem:[%s1542_s1 + $0x38] sm:$0xff]  ;;  %v1077_v44 = vpack.c.bf16 %v331_v41, %v330_v38  ;;  %v314_v45 = vld [vmem:[%s1542_s1 + $0x130] sm:$0xff]  ;;  %v301_v48 = vld [vmem:[%s1542_s1 + $0xc8] sm:$0xff]  ;;  %s1470_s8 = scalar_lea.vmem %s1543_s2, %s864_s4  ;;  %s234_s11 = scalar_lea.vmem %s1544_s3, %s864_s4 }
  0x11   : > { %1074 = vmatprep.subr.bf16.mxu1 %v1073_v31  ;;  %v315_v46 = vld [vmem:[%s1542_s1 + $0x138] sm:$0xff]  ;;  %v332_v49 = vld [vmem:[%s1542_s1 + $0x1c0] sm:$0xff]  ;;  %v333_v50 = vld [vmem:[%s1542_s1 + $0x1c8] sm:$0xff]  ;;  %v1047_v51 = vpack.c.bf16 %v283_v43, %v282_v42  ;;  %v1049_v53 = vpack.c.bf16 %v301_v48, %v300_v47  ;;  %s1381_s30 = scalar_lea.vmem %s1541_s0, %s1121_s7 }
  0x12   : > { %v1079_v52 = vpack.c.bf16 %v315_v46, %v314_v45  ;;  %v284_v54 = vld [vmem:[%s1542_s1 + $0x40] sm:$0xff]  ;;  %v285_v55 = vld [vmem:[%s1542_s1 + $0x48] sm:$0xff]  ;;  %v1081_v57 = vpack.c.bf16 %v333_v50, %v332_v49  ;;  %v302_v59 = vld [vmem:[%s1542_s1 + $0xd0] sm:$0xff] }
  0x13   : > { %1044 = vmatpush3.bf16.msra.mxu0 %v1043_v35  ;;  %v316_v56 = vld [vmem:[%s1542_s1 + $0x140] sm:$0xff]  ;;  %v317_v58 = vld [vmem:[%s1542_s1 + $0x148] sm:$0xff]  ;;  %v303_v60 = vld [vmem:[%s1542_s1 + $0xd8] sm:$0xff]  ;;  %v1051_v63 = vpack.c.bf16 %v285_v55, %v284_v54 }
  0x14   : > { %1076 = vmatpush3.bf16.msra.mxu1 %v1075_v39  ;;  %1046 = vmatprep.subr.bf16.mxu0 %v1045_v40  ;;  %v334_v61 = vld [vmem:[%s1542_s1 + $0x1d0] sm:$0xff]  ;;  %v335_v62 = vld [vmem:[%s1542_s1 + $0x1d8] sm:$0xff]  ;;  %v1083_v0 = vpack.c.bf16 %v317_v58, %v316_v56  ;;  %v1053_v1 = vpack.c.bf16 %v303_v60, %v302_v59  ;;  %v304_v7 = vld [vmem:[%s1542_s1 + $0xe0] sm:$0xff] }
  0x15   : > { %1078 = vmatprep.subr.bf16.mxu1 %v1077_v44  ;;  %v286_v2 = vld [vmem:[%s1542_s1 + $0x50] sm:$0xff]  ;;  %v287_v3 = vld [vmem:[%s1542_s1 + $0x58] sm:$0xff]  ;;  %v1085_v5 = vpack.c.bf16 %v335_v62, %v334_v61  ;;  %v305_v8 = vld [vmem:[%s1542_s1 + $0xe8] sm:$0xff] }
  0x16   : > { %v318_v4 = vld [vmem:[%s1542_s1 + $0x150] sm:$0xff]  ;;  %v319_v6 = vld [vmem:[%s1542_s1 + $0x158] sm:$0xff]  ;;  %v336_v9 = vld [vmem:[%s1542_s1 + $0x1e0] sm:$0xff]  ;;  %v1055_v11 = vpack.c.bf16 %v287_v3, %v286_v2  ;;  %v1057_v15 = vpack.c.bf16 %v305_v8, %v304_v7 }
  0x17   : > { %1048 = vmatpush3.bf16.msra.mxu0 %v1047_v51  ;;  %v337_v10 = vld [vmem:[%s1542_s1 + $0x1e8] sm:$0xff]  ;;  %v288_v12 = vld [vmem:[%s1542_s1 + $0x60] sm:$0xff]  ;;  %v1087_v14 = vpack.c.bf16 %v319_v6, %v318_v4  ;;  %v239_v18 = vld [vmem:[%s1381_s30 + $0x18] sm:$0xff] }
  0x18   : > { %1080 = vmatpush3.bf16.msra.mxu1 %v1079_v52  ;;  %1050 = vmatprep.subr.bf16.mxu0 %v1049_v53  ;;  %v289_v13 = vld [vmem:[%s1542_s1 + $0x68] sm:$0xff]  ;;  %v320_v16 = vld [vmem:[%s1542_s1 + $0x160] sm:$0xff]  ;;  %v1089_v19 = vpack.c.bf16 %v337_v10, %v336_v9  ;;  %v306_v21 = vld [vmem:[%s1542_s1 + $0xf0] sm:$0xff] }
  0x19   : > { %1082 = vmatprep.subr.bf16.mxu1 %v1081_v57  ;;  %v237_v17 = vld [vmem:[%s1381_s30 + $0x8] sm:$0xff]  ;;  %v307_v22 = vld [vmem:[%s1542_s1 + $0xf8] sm:$0xff]  ;;  %v338_v23 = vld [vmem:[%s1542_s1 + $0x1f0] sm:$0xff]  ;;  %590 = vmatprep.mubr.f32.mxu1 %v239_v18  ;;  %v1059_v25 = vpack.c.bf16 %v289_v13, %v288_v12 }
  0x1a   : > { %v321_v20 = vld [vmem:[%s1542_s1 + $0x168] sm:$0xff]  ;;  %485 = vmatprep.mubr.f32.mxu0 %v237_v17  ;;  %v339_v24 = vld [vmem:[%s1542_s1 + $0x1f8] sm:$0xff]  ;;  %v1061_v27 = vpack.c.bf16 %v307_v22, %v306_v21  ;;  %v290_v28 = vld [vmem:[%s1542_s1 + $0x70] sm:$0xff] }
  0x1b   : > { %1052 = vmatpush3.bf16.msra.mxu0 %v1051_v63  ;;  %v1091_v26 = vpack.c.bf16 %v321_v20, %v320_v16  ;;  %v291_v29 = vld [vmem:[%s1542_s1 + $0x78] sm:$0xff]  ;;  %v322_v30 = vld [vmem:[%s1542_s1 + $0x170] sm:$0xff]  ;;  %v1093_v31 = vpack.c.bf16 %v339_v24, %v338_v23  ;;  %v340_v33 = vld [vmem:[%s1542_s1 + $0x200] sm:$0xff] }
  0x1c   : > { %1084 = vmatpush3.bf16.msra.mxu1 %v1083_v0  ;;  %1054 = vmatprep.subr.bf16.mxu0 %v1053_v1  ;;  %v323_v32 = vld [vmem:[%s1542_s1 + $0x178] sm:$0xff]  ;;  %v341_v34 = vld [vmem:[%s1542_s1 + $0x208] sm:$0xff]  ;;  %v1063_v35 = vpack.c.bf16 %v291_v29, %v290_v28  ;;  %v342_v38 = vld [vmem:[%s1542_s1 + $0x210] sm:$0xff] }
  0x1d   : > { %1086 = vmatprep.subr.bf16.mxu1 %v1085_v5  ;;  %v1095_v36 = vpack.c.bf16 %v323_v32, %v322_v30  ;;  %v1097_v37 = vpack.c.bf16 %v341_v34, %v340_v33  ;;  %v343_v39 = vld [vmem:[%s1542_s1 + $0x218] sm:$0xff]  ;;  %v236_v40 = vld [vmem:[%s1381_s30] sm:$0xff]  ;;  %v238_v41 = vld [vmem:[%s1381_s30 + $0x10] sm:$0xff] }
  0x1e   : > { %v242_v42 = vld [vmem:[%s1381_s30 + $0x30] sm:$0xff]  ;;  %v1101_v43 = vpack.c.bf16 %v343_v39, %v342_v38  ;;  %v244_v44 = vld [vmem:[%s1381_s30 + $0x40] sm:$0xff]  ;;  %v345_v46 = vld [vmem:[%s1542_s1 + $0x228] sm:$0xff] }
  0x1f   : > { %1056 = vmatpush3.bf16.msra.mxu0 %v1055_v11  ;;  %v344_v45 = vld [vmem:[%s1542_s1 + $0x220] sm:$0xff]  ;;  %v241_v47 = vld [vmem:[%s1381_s30 + $0x28] sm:$0xff]  ;;  %v243_v48 = vld [vmem:[%s1381_s30 + $0x38] sm:$0xff] }
  0x20   : > { %1088 = vmatpush3.bf16.msra.mxu1 %v1087_v14  ;;  %1058 = vmatprep.subr.bf16.mxu0 %v1057_v15  ;;  %v247_v49 = vld [vmem:[%s1381_s30 + $0x58] sm:$0xff]  ;;  %v249_v50 = vld [vmem:[%s1381_s30 + $0x68] sm:$0xff]  ;;  %v1105_v51 = vpack.c.bf16 %v345_v46, %v344_v45  ;;  %v346_v52 = vld [vmem:[%s1542_s1 + $0x230] sm:$0xff] }
  0x21   : > { %1090 = vmatprep.subr.bf16.mxu1 %v1089_v19  ;;  %v347_v53 = vld [vmem:[%s1542_s1 + $0x238] sm:$0xff]  ;;  %v246_v54 = vld [vmem:[%s1381_s30 + $0x50] sm:$0xff]  ;;  %v248_v55 = vld [vmem:[%s1381_s30 + $0x60] sm:$0xff] }
  0x22   : > { %v252_v56 = vld [vmem:[%s1381_s30 + $0x80] sm:$0xff]  ;;  %v254_v57 = vld [vmem:[%s1381_s30 + $0x90] sm:$0xff]  ;;  %v1109_v58 = vpack.c.bf16 %v347_v53, %v346_v52  ;;  %v251_v59 = vld [vmem:[%s1381_s30 + $0x78] sm:$0xff] }
  0x23   : > { %1060 = vmatpush3.bf16.msra.mxu0 %v1059_v25  ;;  %v253_v60 = vld [vmem:[%s1381_s30 + $0x88] sm:$0xff]  ;;  %v259_v62 = vld [vmem:[%s1381_s30 + $0xb8] sm:$0xff]  ;;  %v348_v63 = vld [vmem:[%s1470_s8] sm:$0xff] }
  0x24   : > { %1092 = vmatpush3.bf16.msra.mxu1 %v1091_v26  ;;  %1062 = vmatprep.subr.bf16.mxu0 %v1061_v27  ;;  %v257_v61 = vld [vmem:[%s1381_s30 + $0xa8] sm:$0xff]  ;;  %v256_v0 = vld [vmem:[%s1381_s30 + $0xa0] sm:$0xff]  ;;  %v350_v1 = vld [vmem:[%s1470_s8 + $0x10] sm:$0xff] }
  0x25   : > { %1094 = vmatprep.subr.bf16.mxu1 %v1093_v31  ;;  %v258_v2 = vld [vmem:[%s1381_s30 + $0xb0] sm:$0xff]  ;;  %v264_v4 = vld [vmem:[%s1381_s30 + $0xe0] sm:$0xff]  ;;  %358 = vperm.xlu0 %1147, %v348_v63   ;;  %v349_v5 = vld [vmem:[%s1470_s8 + $0x8] sm:$0xff] }
  0x26   : > { %v262_v3 = vld [vmem:[%s1381_s30 + $0xd0] sm:$0xff]  ;;  %368 = vperm.xlu1 %1148, %v350_v1   ;;  %v261_v6 = vld [vmem:[%s1381_s30 + $0xc8] sm:$0xff]  ;;  %v351_v7 = vld [vmem:[%s1470_s8 + $0x18] sm:$0xff] }
  0x27   : > { %1064 = vmatpush3.bf16.msra.mxu0 %v1063_v35  ;;  %v263_v8 = vld [vmem:[%s1381_s30 + $0xd8] sm:$0xff]  ;;  %v269_v10 = vld [vmem:[%s1381_s30 + $0x108] sm:$0xff]  ;;  %v352_v11 = vld [vmem:[%s1470_s8 + $0x20] sm:$0xff] }
  0x28   : > { %1096 = vmatpush3.bf16.msra.mxu1 %v1095_v36  ;;  %1098 = vmatprep.subr.bf16.mxu0 %v1097_v37  ;;  %v267_v9 = vld [vmem:[%s1381_s30 + $0xf8] sm:$0xff]  ;;  %v266_v12 = vld [vmem:[%s1381_s30 + $0xf0] sm:$0xff]  ;;  %v353_v13 = vld [vmem:[%s1470_s8 + $0x28] sm:$0xff] }
  0x29   : > { %1113 = vmatprep.subr.bf16.mxu1 %v1097_v37  ;;  %363 = vperm.xlu0 %1147, %v349_v5   ;;  %v268_v14 = vld [vmem:[%s1381_s30 + $0x100] sm:$0xff]  ;;  %v274_v16 = vld [vmem:[%s1381_s30 + $0x130] sm:$0xff]  ;;  %v271_v18 = vld [vmem:[%s1381_s30 + $0x118] sm:$0xff] }
  0x2a   : > { %486 = vmatmul.mubr.f32.vlgmr.msra.gmra.mrb[0].mxu0 %v236_v40  ;;  %373 = vperm.xlu1 %1148, %v351_v7   ;;  %v272_v15 = vld [vmem:[%s1381_s30 + $0x120] sm:$0xff]  ;;  %v354_v17 = vld [vmem:[%s1470_s8 + $0x30] sm:$0xff]  ;;  %v355_v19 = vld [vmem:[%s1470_s8 + $0x38] sm:$0xff] }
  0x2b   : > { %591 = vmatmul.mubr.f32.vlgmr.msra.gmra.mrb[0].mxu1 %v238_v41  ;;  %1100 = vmatpush3.bf16.msra.mxu0 %v1097_v37  ;;  %v273_v20 = vld [vmem:[%s1381_s30 + $0x128] sm:$0xff]  ;;  %v240_v21 = vld [vmem:[%s1381_s30 + $0x20] sm:$0xff]  ;;  %v250_v25 = vld [vmem:[%s1381_s30 + $0x70] sm:$0xff] }
  0x2c   : > { %1117 = vmatpush3.bf16.msra.mxu1 %v1097_v37  ;;  %490 = vmatprep.mubr.f32.mxu0 %v242_v42  ;;  %v260_v22 = vld [vmem:[%s1381_s30 + $0xc0] sm:$0xff]  ;;  %v245_v23 = vld [vmem:[%s1381_s30 + $0x48] sm:$0xff]  ;;  %v270_v26 = vld [vmem:[%s1381_s30 + $0x110] sm:$0xff] }
  0x2d   : > { %595 = vmatprep.mubr.f32.mxu1 %v244_v44  ;;  %1102 = vmatprep.subr.bf16.mxu0 %v1101_v43  ;;  %v265_v24 = vld [vmem:[%s1381_s30 + $0xe8] sm:$0xff]  ;;  %v255_v27 = vld [vmem:[%s1381_s30 + $0x98] sm:$0xff] }
  0x2e   : > { %491 = vmatmul.mubr.f32.gmra.mrb[2].mxu0 %v241_v47  ;;  %1114 = vmatprep.subr.bf16.mxu1 %v1101_v43  ;;  %v275_v28 = vld [vmem:[%s1381_s30 + $0x138] sm:$0xff] }
  0x2f   : > { %596 = vmatmul.mubr.f32.gmra.mrb[2].mxu1 %v243_v48  ;;  %495 = vmatprep.mubr.f32.mxu0 %v247_v49 }
  0x30   : > { %600 = vmatprep.mubr.f32.mxu1 %v249_v50  ;;  %1104 = vmatpush3.bf16.msra.mxu0 %v1101_v43 }
  0x31   : > { %1118 = vmatpush3.bf16.msra.mxu1 %v1101_v43  ;;  %1106 = vmatprep.subr.bf16.mxu0 %v1105_v51 }
  0x32   : > { %496 = vmatmul.mubr.f32.gmra.mrb[4].mxu0 %v246_v54  ;;  %1115 = vmatprep.subr.bf16.mxu1 %v1105_v51 }
  0x33   : > { %601 = vmatmul.mubr.f32.gmra.mrb[4].mxu1 %v248_v55  ;;  %500 = vmatprep.mubr.f32.mxu0 %v252_v56 }
  0x34   : > { %605 = vmatprep.mubr.f32.mxu1 %v254_v57  ;;  %1108 = vmatpush3.bf16.msra.mxu0 %v1105_v51 }
  0x35   : > { %1119 = vmatpush3.bf16.msra.mxu1 %v1105_v51  ;;  %1110 = vmatprep.subr.bf16.mxu0 %v1109_v58 }
  0x36   : > { %501 = vmatmul.mubr.f32.gmra.mrb[6].mxu0 %v251_v59  ;;  %1116 = vmatprep.subr.bf16.mxu1 %v1109_v58 }
  0x37   : > { %606 = vmatmul.mubr.f32.gmra.mrb[6].mxu1 %v253_v60  ;;  %505 = vmatprep.mubr.f32.mxu0 %v257_v61 }
  0x38   : > { %610 = vmatprep.mubr.f32.mxu1 %v259_v62  ;;  %1112 = vmatpush3.bf16.msra.mxu0 %v1109_v58 }
  0x39   : > { %1120 = vmatpush3.bf16.msra.mxu1 %v1109_v58  ;;  %378 = vperm.xlu0 %1147, %v352_v11  }
  0x3a   : > { %506 = vmatmul.mubr.f32.gmra.mrb[8].mxu0 %v256_v0  ;;  %383 = vperm.xlu1 %1148, %v353_v13  }
  0x3b   : > { %611 = vmatmul.mubr.f32.gmra.mrb[8].mxu1 %v258_v2  ;;  %510 = vmatprep.mubr.f32.mxu0 %v262_v3 }
  0x3c   : > { %615 = vmatprep.mubr.f32.mxu1 %v264_v4 }
  0x3d   : > { %388 = vperm.xlu0 %1147, %v354_v17  }
  0x3e   : > { %511 = vmatmul.mubr.f32.gmra.mrb[10].mxu0 %v261_v6  ;;  %393 = vperm.xlu1 %1148, %v355_v19  }
  0x3f   : > { %616 = vmatmul.mubr.f32.gmra.mrb[10].mxu1 %v263_v8  ;;  %515 = vmatprep.mubr.f32.mxu0 %v267_v9 }
  0x40   : > { %620 = vmatprep.mubr.f32.mxu1 %v269_v10 }
  0x42   : > { %516 = vmatmul.mubr.f32.gmra.mrb[12].mxu0 %v266_v12 }
  0x43   : > { %621 = vmatmul.mubr.f32.gmra.mrb[12].mxu1 %v268_v14  ;;  %520 = vmatprep.mubr.f32.mxu0 %v272_v15 }
  0x44   : > { %625 = vmatprep.mubr.f32.mxu1 %v274_v16 }
  0x46   : > { %521 = vmatmul.mubr.f32.gmra.mrb[14].mxu0 %v271_v18 }
  0x47   : > { %626 = vmatmul.mubr.f32.gmra.mrb[14].mxu1 %v273_v20  ;;  %1021 = vmatprep.mubr.msk.f32.mxu0 %vm396_vm0, %v240_v21 }
  0x48   : > { %1027 = vmatprep.mubr.msk.f32.mxu1 %vm396_vm0, %v260_v22 }
  0x4a   : > { %1022 = vmatmul.mubr.msk.f32.vlgmr.msra.gmra.mrb[16].mxu0 %vm396_vm0, %v245_v23 }
  0x4b   : > { %1028 = vmatmul.mubr.msk.f32.vlgmr.msra.gmra.mrb[16].mxu1 %vm396_vm0, %v265_v24  ;;  %1024 = vmatprep.mubr.msk.f32.mxu0 %vm396_vm0, %v250_v25 }
  0x4c   : > { %1030 = vmatprep.mubr.msk.f32.mxu1 %vm396_vm0, %v270_v26 }
  0x4e   : > { %1025 = vmatmul.mubr.msk.f32.gmra.mrb[18].mxu0 %vm396_vm0, %v255_v27 }
  0x4f   : > { %1031 = vmatmul.mubr.msk.f32.gmra.mrb[18].mxu1 %vm396_vm0, %v275_v28 }
  0xa4   : > { %v359_v29 = vpop.permute.xlu0 %358 }
  0xa5   : > { %v369_v47 = vpop.permute.xlu1 %368 }
  0xa8   : > { %v364_v38 = vpop.permute.xlu0 %363 }
  0xa9   : > { %v374_v62 = vpop.permute.xlu1 %373 }
  0xb8   : > { %v379_v7 = vpop.permute.xlu0 %378 }
  0xb9   : > { %v384_v15 = vpop.permute.xlu1 %383 }
  0xbc   : > { %v389_v24 = vpop.permute.xlu0 %388 }
  0xfd   : > { %v909_v30 = vpop.f32.mrb[0].mxu0 }
  0xfe   : > { %v965_v31 = vpop.f32.mrb[0].mxu1  ;;  %v910_v32 = vpop.f32.mrb[1].mxu0 }
  0xff   : > { %v911_v33 = vadd.f32 %v910_v32, %v909_v30  ;;  %v966_v34 = vpop.f32.mrb[1].mxu1 }
 0x100   : > { %v967_v35 = vadd.f32 %v966_v34, %v965_v31 }
 0x101   : > { %v488_v36 = vadd.f32 %v911_v33, %v359_v29  ;;  %v912_v37 = vpop.f32.mrb[2].mxu0  ;;  %v394_v33 = vpop.permute.xlu1 %393 }
 0x102   : > { %v968_v39 = vpop.f32.mrb[2].mxu1  ;;  %v913_v40 = vpop.f32.mrb[3].mxu0 }
 0x103   : > { %v914_v41 = vadd.f32 %v913_v40, %v912_v37  ;;  %v969_v42 = vpop.f32.mrb[3].mxu1  ;;  %v1513_v43 = vadd.f32 %v967_v35, %v488_v36 }
 0x104   : > { %v970_v44 = vadd.f32 %v969_v42, %v968_v39 }
 0x105   : > { %v493_v45 = vadd.f32 %v914_v41, %v364_v38  ;;  %v915_v46 = vpop.f32.mrb[4].mxu0 }
 0x106   : > { %v971_v48 = vpop.f32.mrb[4].mxu1  ;;  %v916_v49 = vpop.f32.mrb[5].mxu0 }
 0x107   : > { %v917_v50 = vadd.f32 %v916_v49, %v915_v46  ;;  %v972_v51 = vpop.f32.mrb[5].mxu1  ;;  %v598_v52 = vadd.f32 %v970_v44, %v493_v45 }
 0x108   : > { %v973_v53 = vadd.f32 %v972_v51, %v971_v48 }
 0x109   : > { %v498_v54 = vadd.f32 %v917_v50, %v369_v47  ;;  %v918_v55 = vpop.f32.mrb[6].mxu0 }
 0x10a   : > { %v974_v56 = vpop.f32.mrb[6].mxu1  ;;  %v919_v57 = vpop.f32.mrb[7].mxu0 }
 0x10b   : > { %v920_v58 = vadd.f32 %v919_v57, %v918_v55  ;;  %v975_v59 = vpop.f32.mrb[7].mxu1  ;;  %v1515_v60 = vadd.f32 %v973_v53, %v498_v54 }
 0x10c   : > { %v976_v61 = vadd.f32 %v975_v59, %v974_v56 }
 0x10d   : > { %v503_v63 = vadd.f32 %v920_v58, %v374_v62  ;;  %v921_v0 = vpop.f32.mrb[8].mxu0 }
 0x10e   : > { %v977_v1 = vpop.f32.mrb[8].mxu1  ;;  %v922_v2 = vpop.f32.mrb[9].mxu0 }
 0x10f   : > { %v923_v3 = vadd.f32 %v922_v2, %v921_v0  ;;  %v978_v4 = vpop.f32.mrb[9].mxu1  ;;  %v608_v5 = vadd.f32 %v976_v61, %v503_v63 }
 0x110   : > { %v979_v6 = vadd.f32 %v978_v4, %v977_v1 }
 0x111   : > { %v508_v8 = vadd.f32 %v923_v3, %v379_v7  ;;  %v924_v9 = vpop.f32.mrb[10].mxu0 }
 0x112   : > { %v980_v10 = vpop.f32.mrb[10].mxu1  ;;  %v925_v11 = vpop.f32.mrb[11].mxu0 }
 0x113   : > { %v926_v12 = vadd.f32 %v925_v11, %v924_v9  ;;  %v981_v13 = vpop.f32.mrb[11].mxu1  ;;  %v613_v14 = vadd.f32 %v979_v6, %v508_v8 }
 0x114   : > { %v982_v16 = vadd.f32 %v981_v13, %v980_v10 }
 0x115   : > { %v513_v17 = vadd.f32 %v926_v12, %v384_v15  ;;  %v927_v18 = vpop.f32.mrb[12].mxu0 }
 0x116   : > { %v983_v19 = vpop.f32.mrb[12].mxu1  ;;  %v928_v20 = vpop.f32.mrb[13].mxu0 }
 0x117   : > { %v929_v21 = vadd.f32 %v928_v20, %v927_v18  ;;  %v984_v22 = vpop.f32.mrb[13].mxu1  ;;  %v618_v23 = vadd.f32 %v982_v16, %v513_v17 }
 0x118   : > { %v985_v25 = vadd.f32 %v984_v22, %v983_v19 }
 0x119   : > { %v518_v26 = vadd.f32 %v929_v21, %v389_v24  ;;  %v930_v27 = vpop.f32.mrb[14].mxu0 }
 0x11a   : > { %v986_v28 = vpop.f32.mrb[14].mxu1  ;;  %v931_v29 = vpop.f32.mrb[15].mxu0 }
 0x11b   : > { %v932_v30 = vadd.f32 %v931_v29, %v930_v27  ;;  %v987_v31 = vpop.f32.mrb[15].mxu1  ;;  %v623_v32 = vadd.f32 %v985_v25, %v518_v26 }
 0x11c   : > { %v988_v34 = vadd.f32 %v987_v31, %v986_v28 }
 0x11d   : > { %v523_v35 = vadd.f32 %v932_v30, %v394_v33  ;;  %v1023_v36 = vpop.f32.mrb[16].mxu0 }
 0x11e   : > { %v703_v37 = vadd.f32 %v1023_v36, %v598_v52  ;;  %v1029_v38 = vpop.f32.mrb[16].mxu1  ;;  %v697_v39 = vpop.f32.mrb[17].mxu0 }
 0x11f   : > { %v723_v40 = vadd.f32 %v1029_v38, %v618_v23  ;;  %v698_v41 = vadd.f32 %v697_v39, %v1513_v43  ;;  %v717_v42 = vpop.f32.mrb[17].mxu1  ;;  %v628_v44 = vadd.f32 %v988_v34, %v523_v35 }
 0x120   : > { %v737_v45 = vmax.f32 %v703_v37, 0.0  ;;  %v718_v46 = vadd.f32 %v717_v42, %v613_v14 }
 0x121   : > { %v741_v47 = vmax.f32 %v723_v40, 0.0  ;;  %v736_v48 = vmax.f32 %v698_v41, 0.0  ;;  %v1026_v49 = vpop.f32.mrb[18].mxu0 }
 0x122   : > { %746 = vst.msk [vmem:[%s234_s11 + $0x8] sm:$0xff] %vm744_vm1, %v737_v45  ;;  %v740_v50 = vmax.f32 %v718_v46, 0.0  ;;  %v713_v51 = vadd.f32 %v1026_v49, %v608_v5  ;;  %v1032_v52 = vpop.f32.mrb[18].mxu1  ;;  %v707_v53 = vpop.f32.mrb[19].mxu0 }
 0x123   : > { %750 = vst.msk [vmem:[%s234_s11 + $0x28] sm:$0xff] %vm744_vm1, %v741_v47  ;;  %745 = vst.msk [vmem:[%s234_s11] sm:$0xff] %vm744_vm1, %v736_v48  ;;  %v733_v54 = vadd.f32 %v1032_v52, %v628_v44  ;;  %v708_v43 = vadd.f32 %v707_v53, %v1515_v60  ;;  %v727_v55 = vpop.f32.mrb[19].mxu1 }
 0x124   : > { %749 = vst.msk [vmem:[%s234_s11 + $0x20] sm:$0xff] %vm744_vm1, %v740_v50  ;;  %v739_v56 = vmax.f32 %v713_v51, 0.0  ;;  %v728_v57 = vadd.f32 %v727_v55, %v623_v32 }
 0x125   : > { %v743_v58 = vmax.f32 %v733_v54, 0.0  ;;  %v738_v59 = vmax.f32 %v708_v43, 0.0 }
 0x126   : > { %748 = vst.msk [vmem:[%s234_s11 + $0x18] sm:$0xff] %vm744_vm1, %v739_v56  ;;  %v742_v61 = vmax.f32 %v728_v57, 0.0 }
 0x127   : > { %752 = vst.msk [vmem:[%s234_s11 + $0x38] sm:$0xff] %vm744_vm1, %v743_v58  ;;  %747 = vst.msk [vmem:[%s234_s11 + $0x10] sm:$0xff] %vm744_vm1, %v738_v59 }
 0x128   : > { %751 = vst.msk [vmem:[%s234_s11 + $0x30] sm:$0xff] %vm744_vm1, %v742_v61 }
 0x129 PF: > { %s13_s14 = sadd.s32 1, %s1171_s14   ;;  %s1546_s12 = smov %s1167_s13 }
 0x12a   : > { %p10_p5 = scmp.ge.s32.totalorder %s13_s14, 4   ;;  %s1547_s13 = smov %s1549_s15 }
 0x12c   :  { %12 = sbr.rel (!%p10_p5) target bundleno = 2 (0x2), region = 68 }

// kernel: ae_cluster_forward.9
= control target key start
LH: loop header
LB: loop body
LE: loop exit
PB: predicated region body
PF: predicated region fallthrough
CT: control target
= control target key end

     0   :  { %s893_s12 = smov 0   ;;  %s895_s13 = smov 0   ;;  %s1069_s0 = inlined_call_operand.vmem [shape: f32[576,128], index: 0, kind: input, shape index: {}]   ;;  %s1070_s1 = inlined_call_operand.vmem [shape: f32[128,18], index: 1, kind: input, shape index: {}]   ;;  %s1071_s2 = inlined_call_operand.vmem [shape: f32[576,1], index: 2, kind: input, shape index: {}]   ;;  %s1072_s3 = inlined_call_operand.vmem [shape: f32[576,18], index: 3, kind: output, shape index: {}]  }
   0x1   :  { %s897_s14 = smov 0  }
   0x2 LB: > { %s25_s15 = sadd.s32 1, %s866_s13  ;;  %p674_p0 = scmp.ge.s32.totalorder %s870_s14, 1  ;;  %s870_s14 = sphi %s897_s14, %s13_s14   ;;  %s866_s13 = sphi %s895_s13, %s1074_s13   ;;  %s862_s12 = sphi %s893_s12, %s1073_s12  }
   0x3   : > { %p27_p1 = scmp.ge.s32.totalorder %s25_s15, 4  ;;  %p172_p2 = scmp.lt.s32.totalorder %s870_s14, 5 }
   0x5   : > { %s1076_s15 = smov (%p27_p1, %s25_s15), 0  ;;  %p173_p3 = pnand %p674_p0, %p172_p2 }
   0x6   : > { %v251_v0 = vld [vmem:[%s1070_s1] sm:$0xff] (!%p173_p3)  ;;  %v252_v1 = vld [vmem:[%s1070_s1 + $0x8] sm:$0xff] (!%p173_p3)  ;;  %v253_v2 = vld [vmem:[%s1070_s1 + $0x10] sm:$0xff] (!%p173_p3)  ;;  %s208_s22 = smul.u32 (!%p173_p3), 18, %s862_s12  ;;  %v872_v5 = vmov (!%p173_p3), 0   ;;  %vm548_vm0 = vcmask (!%p173_p3), 146432  }
   0x7   : > { %176 = sbr.rel (%p173_p3) target bundleno = 276 (0x114), region = 32  ;;  %v773_v3 = vpack.c.bf16 (!%p173_p3), %v252_v1, %v251_v0  ;;  %v254_v4 = vld [vmem:[%s1070_s1 + $0x18] sm:$0xff] (!%p173_p3)  ;;  %847 = vset.pattern.permute.xlu1 (!%p173_p3), %v872_v5  ;;  %846 = vset.pattern.permute.xlu0 (!%p173_p3), %v872_v5  ;;  %v255_v7 = vld [vmem:[%s1070_s1 + $0x20] sm:$0xff] (!%p173_p3)  ;;  %v256_v8 = vld [vmem:[%s1070_s1 + $0x28] sm:$0xff] (!%p173_p3) }
   0x8   : > { %v777_v6 = vpack.c.bf16 (!%p173_p3), %v254_v4, %v253_v2  ;;  %p209_p4 = scmp.lt.s32.totalorder (!%p173_p3), %s208_s22, 71  ;;  %v781_v9 = vpack.c.bf16 (!%p173_p3), %v256_v8, %v255_v7  ;;  %v257_v10 = vld [vmem:[%s1070_s1 + $0x30] sm:$0xff] (!%p173_p3)  ;;  %v258_v11 = vld [vmem:[%s1070_s1 + $0x38] sm:$0xff] (!%p173_p3)  ;;  %v259_v15 = vld [vmem:[%s1070_s1 + $0x40] sm:$0xff] (!%p173_p3) }
   0x9   : > { %774 = vmatprep.subr.bf16.mxu0 (!%p173_p3), %v773_v3  ;;  %805 = vmatprep.subr.bf16.mxu1 (!%p173_p3), %v773_v3  ;;  %v785_v14 = vpack.c.bf16 (!%p173_p3), %v258_v11, %v257_v10  ;;  %v260_v16 = vld [vmem:[%s1070_s1 + $0x48] sm:$0xff] (!%p173_p3)  ;;  %v261_v18 = vld [vmem:[%s1070_s1 + $0x50] sm:$0xff] (!%p173_p3)  ;;  %v262_v19 = vld [vmem:[%s1070_s1 + $0x58] sm:$0xff] (!%p173_p3) }
   0xa   : > { %776 = vmatpush3.bf16.msra.mxu0 (!%p173_p3), %v773_v3  ;;  %813 = vmatpush3.bf16.msra.mxu1 (!%p173_p3), %v773_v3  ;;  %v789_v17 = vpack.c.bf16 (!%p173_p3), %v260_v16, %v259_v15  ;;  %v793_v24 = vpack.c.bf16 (!%p173_p3), %v262_v19, %v261_v18  ;;  %v263_v25 = vld [vmem:[%s1070_s1 + $0x60] sm:$0xff] (!%p173_p3)  ;;  %v264_v26 = vld [vmem:[%s1070_s1 + $0x68] sm:$0xff] (!%p173_p3)  ;;  %v265_v30 = vld [vmem:[%s1070_s1 + $0x70] sm:$0xff] (!%p173_p3) }
   0xb   : > { %778 = vmatprep.subr.bf16.mxu0 (!%p173_p3), %v777_v6  ;;  %806 = vmatprep.subr.bf16.mxu1 (!%p173_p3), %v777_v6  ;;  %v797_v29 = vpack.c.bf16 (!%p173_p3), %v264_v26, %v263_v25  ;;  %v266_v31 = vld [vmem:[%s1070_s1 + $0x78] sm:$0xff] (!%p173_p3) }
   0xc   : > { %v801_v34 = vpack.c.bf16 (!%p173_p3), %v266_v31, %v265_v30 }
   0xe   : > { %s1078_s22 = smov (!%p209_p4, %s208_s22), 71  ;;  %780 = vmatpush3.bf16.msra.mxu0 %v777_v6  ;;  %814 = vmatpush3.bf16.msra.mxu1 %v777_v6 }
   0xf   : > { %s935_s6 = sshll.u32 %s1078_s22, 3  ;;  %782 = vmatprep.subr.bf16.mxu0 %v781_v9  ;;  %807 = vmatprep.subr.bf16.mxu1 %v781_v9 }
  0x10   : > { %s941_s9 = scalar_lea.vmem %s1069_s0, %s935_s6  ;;  %s955_s19 = scalar_lea.vmem %s1071_s2, %s935_s6 }
  0x11   : > { %v233_v12 = vld [vmem:[%s941_s9] sm:$0xff]  ;;  %v243_v13 = vld [vmem:[%s941_s9 + $0x50] sm:$0xff]  ;;  %v270_v22 = vld [vmem:[%s955_s19 + $0x18] sm:$0xff]  ;;  %s1019_s8 = scalar_lea.vmem %s1072_s3, %s935_s6 }
  0x12   : > { %746 = vmatprep.mubr.f32.mxu0 %v233_v12  ;;  %761 = vmatprep.mubr.f32.mxu1 %v243_v13  ;;  %v269_v20 = vld [vmem:[%s955_s19 + $0x10] sm:$0xff]  ;;  %v267_v21 = vld [vmem:[%s955_s19] sm:$0xff]  ;;  %v268_v23 = vld [vmem:[%s955_s19 + $0x8] sm:$0xff] }
  0x13   : > { %784 = vmatpush3.bf16.msra.mxu0 %v781_v9  ;;  %815 = vmatpush3.bf16.msra.mxu1 %v781_v9  ;;  %v272_v27 = vld [vmem:[%s955_s19 + $0x28] sm:$0xff]  ;;  %v271_v28 = vld [vmem:[%s955_s19 + $0x20] sm:$0xff]  ;;  %v274_v32 = vld [vmem:[%s955_s19 + $0x38] sm:$0xff] }
  0x14   : > { %786 = vmatprep.subr.bf16.mxu0 %v785_v14  ;;  %808 = vmatprep.subr.bf16.mxu1 %v785_v14  ;;  %v273_v33 = vld [vmem:[%s955_s19 + $0x30] sm:$0xff]  ;;  %v276_v35 = vld [vmem:[%s955_s19 + $0x48] sm:$0xff]  ;;  %v275_v36 = vld [vmem:[%s955_s19 + $0x40] sm:$0xff] }
  0x15   : > { %297 = vperm.xlu1 %847, %v269_v20   ;;  %287 = vperm.xlu0 %846, %v267_v21   ;;  %v234_v37 = vld [vmem:[%s941_s9 + $0x8] sm:$0xff]  ;;  %v244_v38 = vld [vmem:[%s941_s9 + $0x58] sm:$0xff]  ;;  %v235_v39 = vld [vmem:[%s941_s9 + $0x10] sm:$0xff] }
  0x16   : > { %v245_v40 = vld [vmem:[%s941_s9 + $0x60] sm:$0xff]  ;;  %v278_v41 = vld [vmem:[%s955_s19 + $0x58] sm:$0xff]  ;;  %v277_v42 = vld [vmem:[%s955_s19 + $0x50] sm:$0xff] }
  0x17   : > { %788 = vmatpush3.bf16.msra.mxu0 %v785_v14  ;;  %816 = vmatpush3.bf16.msra.mxu1 %v785_v14  ;;  %v236_v43 = vld [vmem:[%s941_s9 + $0x18] sm:$0xff]  ;;  %v246_v44 = vld [vmem:[%s941_s9 + $0x68] sm:$0xff]  ;;  %v237_v45 = vld [vmem:[%s941_s9 + $0x20] sm:$0xff] }
  0x18   : > { %790 = vmatprep.subr.bf16.mxu0 %v789_v17  ;;  %809 = vmatprep.subr.bf16.mxu1 %v789_v17  ;;  %v247_v46 = vld [vmem:[%s941_s9 + $0x70] sm:$0xff]  ;;  %v280_v47 = vld [vmem:[%s955_s19 + $0x68] sm:$0xff]  ;;  %v279_v48 = vld [vmem:[%s955_s19 + $0x60] sm:$0xff] }
  0x19   : > { %302 = vperm.xlu1 %847, %v270_v22   ;;  %292 = vperm.xlu0 %846, %v268_v23   ;;  %v238_v49 = vld [vmem:[%s941_s9 + $0x28] sm:$0xff]  ;;  %v248_v50 = vld [vmem:[%s941_s9 + $0x78] sm:$0xff]  ;;  %v239_v51 = vld [vmem:[%s941_s9 + $0x30] sm:$0xff] }
  0x1a   : > { %v249_v52 = vld [vmem:[%s941_s9 + $0x80] sm:$0xff]  ;;  %v282_v53 = vld [vmem:[%s955_s19 + $0x78] sm:$0xff]  ;;  %v281_v54 = vld [vmem:[%s955_s19 + $0x70] sm:$0xff] }
  0x1b   : > { %792 = vmatpush3.bf16.msra.mxu0 %v789_v17  ;;  %817 = vmatpush3.bf16.msra.mxu1 %v789_v17  ;;  %v240_v55 = vld [vmem:[%s941_s9 + $0x38] sm:$0xff]  ;;  %v250_v56 = vld [vmem:[%s941_s9 + $0x88] sm:$0xff]  ;;  %v241_v57 = vld [vmem:[%s941_s9 + $0x40] sm:$0xff] }
  0x1c   : > { %794 = vmatprep.subr.bf16.mxu0 %v793_v24  ;;  %810 = vmatprep.subr.bf16.mxu1 %v793_v24  ;;  %v284_v58 = vld [vmem:[%s955_s19 + $0x88] sm:$0xff]  ;;  %v283_v59 = vld [vmem:[%s955_s19 + $0x80] sm:$0xff] }
  0x1d   : > { %312 = vperm.xlu1 %847, %v272_v27   ;;  %307 = vperm.xlu0 %846, %v271_v28   ;;  %v242_v60 = vld [vmem:[%s941_s9 + $0x48] sm:$0xff] }
  0x1f   : > { %796 = vmatpush3.bf16.msra.mxu0 %v793_v24  ;;  %818 = vmatpush3.bf16.msra.mxu1 %v793_v24 }
  0x20   : > { %798 = vmatprep.subr.bf16.mxu0 %v797_v29  ;;  %811 = vmatprep.subr.bf16.mxu1 %v797_v29 }
  0x21   : > { %322 = vperm.xlu1 %847, %v274_v32   ;;  %317 = vperm.xlu0 %846, %v273_v33  }
  0x23   : > { %800 = vmatpush3.bf16.msra.mxu0 %v797_v29  ;;  %819 = vmatpush3.bf16.msra.mxu1 %v797_v29 }
  0x24   : > { %802 = vmatprep.subr.bf16.mxu0 %v801_v34  ;;  %812 = vmatprep.subr.bf16.mxu1 %v801_v34 }
  0x25   : > { %332 = vperm.xlu1 %847, %v276_v35   ;;  %327 = vperm.xlu0 %846, %v275_v36  }
  0x27   : > { %804 = vmatpush3.bf16.msra.mxu0 %v801_v34  ;;  %820 = vmatpush3.bf16.msra.mxu1 %v801_v34 }
  0x29   : > { %342 = vperm.xlu1 %847, %v278_v41   ;;  %337 = vperm.xlu0 %846, %v277_v42  }
  0x2a   : > { %747 = vmatmul.mubr.f32.vlgmr.msra.gmra.mrb[0].mxu0 %v234_v37  ;;  %762 = vmatmul.mubr.f32.vlgmr.msra.gmra.mrb[0].mxu1 %v244_v38 }
  0x2b   : > { %749 = vmatprep.mubr.f32.mxu0 %v235_v39  ;;  %764 = vmatprep.mubr.f32.mxu1 %v245_v40 }
  0x2d   : > { %352 = vperm.xlu1 %847, %v280_v47   ;;  %347 = vperm.xlu0 %846, %v279_v48  }
  0x2e   : > { %750 = vmatmul.mubr.f32.gmra.mrb[2].mxu0 %v236_v43  ;;  %765 = vmatmul.mubr.f32.gmra.mrb[2].mxu1 %v246_v44 }
  0x2f   : > { %752 = vmatprep.mubr.f32.mxu0 %v237_v45  ;;  %767 = vmatprep.mubr.f32.mxu1 %v247_v46 }
  0x31   : > { %362 = vperm.xlu1 %847, %v282_v53   ;;  %357 = vperm.xlu0 %846, %v281_v54  }
  0x32   : > { %753 = vmatmul.mubr.f32.gmra.mrb[4].mxu0 %v238_v49  ;;  %768 = vmatmul.mubr.f32.gmra.mrb[4].mxu1 %v248_v50 }
  0x33   : > { %755 = vmatprep.mubr.f32.mxu0 %v239_v51  ;;  %770 = vmatprep.mubr.f32.mxu1 %v249_v52 }
  0x35   : > { %372 = vperm.xlu1 %847, %v284_v58   ;;  %367 = vperm.xlu0 %846, %v283_v59  }
  0x36   : > { %756 = vmatmul.mubr.f32.gmra.mrb[6].mxu0 %v240_v55  ;;  %771 = vmatmul.mubr.f32.gmra.mrb[6].mxu1 %v250_v56 }
  0x37   : > { %758 = vmatprep.mubr.f32.mxu0 %v241_v57 }
  0x3a   : > { %759 = vmatmul.mubr.f32.gmra.mrb[8].mxu0 %v242_v60 }
  0x94   : > { %v298_v61 = vpop.permute.xlu1 %297  ;;  %v288_v62 = vpop.permute.xlu0 %287 }
  0x98   : > { %v303_v63 = vpop.permute.xlu1 %302  ;;  %v293_v0 = vpop.permute.xlu0 %292 }
  0x9c   : > { %v313_v1 = vpop.permute.xlu1 %312  ;;  %v308_v2 = vpop.permute.xlu0 %307 }
  0xa0   : > { %v323_v3 = vpop.permute.xlu1 %322  ;;  %v1009_v4 = vpop.permute.xlu0 %317 }
  0xa4   : > { %v1011_v5 = vpop.permute.xlu1 %332  ;;  %v1013_v6 = vpop.permute.xlu0 %327 }
  0xa8   : > { %v343_v7 = vpop.permute.xlu1 %342  ;;  %v338_v8 = vpop.permute.xlu0 %337 }
  0xac   : > { %v353_v9 = vpop.permute.xlu1 %352  ;;  %v348_v10 = vpop.permute.xlu0 %347 }
  0xb0   : > { %v363_v19 = vpop.permute.xlu1 %362  ;;  %v358_v20 = vpop.permute.xlu0 %357 }
  0xb4   : > { %v373_v45 = vpop.permute.xlu1 %372  ;;  %v368_v46 = vpop.permute.xlu0 %367 }
  0xfd   : > { %v748_v11 = vpop.f32.mrb[0].mxu0  ;;  %v763_v12 = vpop.f32.mrb[0].mxu1 }
  0xfe   : > { %v447_v13 = vadd.f32 %v748_v11, %v293_v0  ;;  %v497_v14 = vadd.f32 %v763_v12, %v343_v7  ;;  %v441_v15 = vpop.f32.mrb[1].mxu0  ;;  %v491_v16 = vpop.f32.mrb[1].mxu1 }
  0xff   : > { %v442_v17 = vadd.f32 %v441_v15, %v288_v62  ;;  %v492_v18 = vadd.f32 %v491_v16, %v338_v8 }
 0x100   : > { %v531_v21 = vmax.f32 %v447_v13, 0.0  ;;  %v541_v22 = vmax.f32 %v497_v14, 0.0 }
 0x101   : > { %v530_v23 = vmax.f32 %v442_v17, 0.0  ;;  %v540_v24 = vmax.f32 %v492_v18, 0.0  ;;  %v751_v25 = vpop.f32.mrb[2].mxu0  ;;  %v766_v26 = vpop.f32.mrb[2].mxu1 }
 0x102   : > { %550 = vst.msk [vmem:[%s1019_s8 + $0x8] sm:$0xff] %vm548_vm0, %v531_v21  ;;  %560 = vst.msk [vmem:[%s1019_s8 + $0x58] sm:$0xff] %vm548_vm0, %v541_v22  ;;  %v457_v27 = vadd.f32 %v751_v25, %v303_v63  ;;  %v507_v28 = vadd.f32 %v766_v26, %v353_v9  ;;  %v451_v29 = vpop.f32.mrb[3].mxu0  ;;  %v501_v30 = vpop.f32.mrb[3].mxu1 }
 0x103   : > { %549 = vst.msk [vmem:[%s1019_s8] sm:$0xff] %vm548_vm0, %v530_v23  ;;  %559 = vst.msk [vmem:[%s1019_s8 + $0x50] sm:$0xff] %vm548_vm0, %v540_v24  ;;  %v452_v31 = vadd.f32 %v451_v29, %v298_v61  ;;  %v502_v32 = vadd.f32 %v501_v30, %v348_v10 }
 0x104   : > { %v533_v33 = vmax.f32 %v457_v27, 0.0  ;;  %v543_v34 = vmax.f32 %v507_v28, 0.0 }
 0x105   : > { %v532_v35 = vmax.f32 %v452_v31, 0.0  ;;  %v542_v36 = vmax.f32 %v502_v32, 0.0  ;;  %v754_v37 = vpop.f32.mrb[4].mxu0  ;;  %v769_v38 = vpop.f32.mrb[4].mxu1 }
 0x106   : > { %552 = vst.msk [vmem:[%s1019_s8 + $0x18] sm:$0xff] %vm548_vm0, %v533_v33  ;;  %562 = vst.msk [vmem:[%s1019_s8 + $0x68] sm:$0xff] %vm548_vm0, %v543_v34  ;;  %v467_v39 = vadd.f32 %v754_v37, %v313_v1  ;;  %v517_v40 = vadd.f32 %v769_v38, %v363_v19  ;;  %v461_v41 = vpop.f32.mrb[5].mxu0  ;;  %v511_v42 = vpop.f32.mrb[5].mxu1 }
 0x107   : > { %551 = vst.msk [vmem:[%s1019_s8 + $0x10] sm:$0xff] %vm548_vm0, %v532_v35  ;;  %561 = vst.msk [vmem:[%s1019_s8 + $0x60] sm:$0xff] %vm548_vm0, %v542_v36  ;;  %v462_v43 = vadd.f32 %v461_v41, %v308_v2  ;;  %v512_v44 = vadd.f32 %v511_v42, %v358_v20 }
 0x108   : > { %v535_v47 = vmax.f32 %v467_v39, 0.0  ;;  %v545_v48 = vmax.f32 %v517_v40, 0.0 }
 0x109   : > { %v534_v49 = vmax.f32 %v462_v43, 0.0  ;;  %v544_v50 = vmax.f32 %v512_v44, 0.0  ;;  %v757_v51 = vpop.f32.mrb[6].mxu0  ;;  %v772_v52 = vpop.f32.mrb[6].mxu1 }
 0x10a   : > { %554 = vst.msk [vmem:[%s1019_s8 + $0x28] sm:$0xff] %vm548_vm0, %v535_v47  ;;  %564 = vst.msk [vmem:[%s1019_s8 + $0x78] sm:$0xff] %vm548_vm0, %v545_v48  ;;  %v477_v53 = vadd.f32 %v757_v51, %v323_v3  ;;  %v527_v54 = vadd.f32 %v772_v52, %v373_v45  ;;  %v471_v55 = vpop.f32.mrb[7].mxu0  ;;  %v521_v56 = vpop.f32.mrb[7].mxu1 }
 0x10b   : > { %553 = vst.msk [vmem:[%s1019_s8 + $0x20] sm:$0xff] %vm548_vm0, %v534_v49  ;;  %563 = vst.msk [vmem:[%s1019_s8 + $0x70] sm:$0xff] %vm548_vm0, %v544_v50  ;;  %v472_v57 = vadd.f32 %v471_v55, %v1009_v4  ;;  %v522_v58 = vadd.f32 %v521_v56, %v368_v46 }
 0x10c   : > { %v537_v59 = vmax.f32 %v477_v53, 0.0  ;;  %v547_v60 = vmax.f32 %v527_v54, 0.0 }
 0x10d   : > { %v536_v61 = vmax.f32 %v472_v57, 0.0  ;;  %v546_v62 = vmax.f32 %v522_v58, 0.0  ;;  %v760_v63 = vpop.f32.mrb[8].mxu0 }
 0x10e   : > { %556 = vst.msk [vmem:[%s1019_s8 + $0x38] sm:$0xff] %vm548_vm0, %v537_v59  ;;  %566 = vst.msk [vmem:[%s1019_s8 + $0x88] sm:$0xff] %vm548_vm0, %v547_v60  ;;  %v487_v0 = vadd.f32 %v760_v63, %v1011_v5  ;;  %v481_v1 = vpop.f32.mrb[9].mxu0 }
 0x10f   : > { %555 = vst.msk [vmem:[%s1019_s8 + $0x30] sm:$0xff] %vm548_vm0, %v536_v61  ;;  %565 = vst.msk [vmem:[%s1019_s8 + $0x80] sm:$0xff] %vm548_vm0, %v546_v62  ;;  %v482_v2 = vadd.f32 %v481_v1, %v1013_v6 }
 0x110   : > { %v539_v3 = vmax.f32 %v487_v0, 0.0 }
 0x111   : > { %v538_v4 = vmax.f32 %v482_v2, 0.0 }
 0x112   : > { %558 = vst.msk [vmem:[%s1019_s8 + $0x48] sm:$0xff] %vm548_vm0, %v539_v3 }
 0x113   : > { %557 = vst.msk [vmem:[%s1019_s8 + $0x40] sm:$0xff] %vm548_vm0, %v538_v4 }
 0x114 PF: > { %s13_s14 = sadd.s32 1, %s870_s14   ;;  %s1073_s12 = smov %s866_s13 }
 0x115   : > { %p10_p5 = scmp.ge.s32.totalorder %s13_s14, 6   ;;  %s1074_s13 = smov %s1076_s15 }
 0x117   :  { %12 = sbr.rel (!%p10_p5) target bundleno = 2 (0x2), region = 68 }

// kernel: mul.47
= control target key start
LH: loop header
LB: loop body
LE: loop exit
PB: predicated region body
PF: predicated region fallthrough
CT: control target
= control target key end

     0   :  { %s67_s8 = smov 112   ;;  %s68_s11 = smov 80   ;;  %vm3_vm0 = vcmask 130048   ;;  %vm9_vm1 = vcmask 1048448   ;;  %vm15_vm2 = vcmask 917248   ;;  %vm21_vm3 = vcmask 786048   ;;  %s111_s0 = inlined_call_operand.vmem [shape: f32[32,16], index: 0, kind: input, shape index: {}]   ;;  %s112_s1 = inlined_call_operand.vmem [shape: f32[512], index: 1, kind: output, shape index: {}]  }
   0x1   :  { %v53_v0 = vld [vmem:[%s111_s0 + $0x7] ss:$8 sm:$0xf]   ;;  %v55_v1 = vld [vmem:[%s111_s0 + $0x5] ss:$8 sm:$0xf]  }
   0x2   :  { %7 = vrot.lane.b32.xlu0 %v53_v0, %s67_s8  ;;  %19 = vrot.lane.b32.xlu1 %v55_v1, %s68_s11  ;;  %v54_v2 = vld [vmem:[%s111_s0 + $0x6] ss:$8 sm:$0xf]   ;;  %v56_v3 = vld [vmem:[%s111_s0 + $0x4] ss:$8 sm:$0xf]  }
   0x3   :  { %s69_s16 = smov 96   ;;  %v2_v4 = vld [vmem:[%s111_s0] ss:$8 sm:$0xf]   ;;  %s70_s19 = smov 64   ;;  %vm27_vm4 = vcmask 654848  }
   0x4   :  { %v57_v5 = vld [vmem:[%s111_s0 + $0x3] ss:$8 sm:$0xf]   ;;  %4 = vst.msk [vmem:[#allocation0] sm:$0xf] %vm3_vm0, %v2_v4   ;;  %s71_s24 = smov 48  }
   0x5   :  { %v58_v6 = vld [vmem:[%s111_s0 + $0x2] ss:$8 sm:$0xf]   ;;  %s72_s25 = smov 32   ;;  %vm33_vm5 = vcmask 523648   ;;  %vm39_vm6 = vcmask 392448  }
   0x6   :  { %13 = vrot.lane.b32.xlu0 %v54_v2, %s69_s16  ;;  %25 = vrot.lane.b32.xlu1 %v56_v3, %s70_s19  ;;  %v59_v7 = vld [vmem:[%s111_s0 + $0x1] ss:$8 sm:$0xf]   ;;  %s73_s0 = smov 16   ;;  %vm45_vm7 = vcmask 261248  }
   0xa   :  { %31 = vrot.lane.b32.xlu0 %v57_v5, %s71_s24  ;;  %37 = vrot.lane.b32.xlu1 %v58_v6, %s72_s25 }
   0xe   :  { %43 = vrot.lane.b32.xlu0 %v59_v7, %s73_s0 }
  0x74   :  { %v8_v8 = vpop.permute.xlu0 %7   ;;  %v20_v9 = vpop.permute.xlu1 %19  }
  0x75   :  { %10 = vst.msk [vmem:[#allocation0] sm:$0xf] %vm9_vm1, %v8_v8  }
  0x78   :  { %v14_v10 = vpop.permute.xlu0 %13   ;;  %v26_v11 = vpop.permute.xlu1 %25  }
  0x79   :  { %16 = vst.msk [vmem:[#allocation0] sm:$0xf] %vm15_vm2, %v14_v10  }
  0x7a   :  { %22 = vst.msk [vmem:[#allocation0] sm:$0xf] %vm21_vm3, %v20_v9  }
  0x7b   :  { %28 = vst.msk [vmem:[#allocation0] sm:$0xf] %vm27_vm4, %v26_v11  }
  0x7c   :  { %v32_v12 = vpop.permute.xlu0 %31   ;;  %v38_v13 = vpop.permute.xlu1 %37  }
  0x7d   :  { %34 = vst.msk [vmem:[#allocation0] sm:$0xf] %vm33_vm5, %v32_v12  }
  0x7e   :  { %40 = vst.msk [vmem:[#allocation0] sm:$0xf] %vm39_vm6, %v38_v13  }
  0x80   :  { %v44_v14 = vpop.permute.xlu0 %43  }
  0x81   :  { %46 = vst.msk [vmem:[#allocation0] sm:$0xf] %vm45_vm7, %v44_v14  }
  0x88   :  { %v50_v15 = vld [vmem:[#allocation0] sm:$0xf] }
  0x89   :  { %52 = vst [vmem:[%s112_s1] sm:$0xf] %v50_v15 }

// kernel: ae_cluster_forward.10
= control target key start
LH: loop header
LB: loop body
LE: loop exit
PB: predicated region body
PF: predicated region fallthrough
CT: control target
= control target key end

     0   :  { %s1482_s12 = smov 0   ;;  %s1484_s13 = smov 0   ;;  %s1837_s0 = inlined_call_operand.vmem [shape: f32[512,64], index: 0, kind: input, shape index: {}]   ;;  %s1838_s1 = inlined_call_operand.vmem [shape: f32[64,162], index: 1, kind: input, shape index: {}]   ;;  %s1839_s2 = inlined_call_operand.vmem [shape: f32[512,1], index: 2, kind: input, shape index: {}]   ;;  %s1840_s3 = inlined_call_operand.vmem [shape: f32[512,162], index: 3, kind: output, shape index: {}]  }
   0x1   :  { %s1486_s14 = smov 0   ;;  %s1488_s15 = smov 0  }
   0x2   :  { %s1490_s16 = smov 0   ;;  %s1492_s17 = smov 0  }
   0x3   :  { %s1494_s18 = smov 0   ;;  %s1496_s19 = smov 0  }
   0x4   :  { %s1498_s20 = smov 0  }
   0x5 LB: > { %s1134_s21 = sadd.s32 4294967295, %s1459_s20   ;;  %s22_s22 = sadd.s32 1, %s1451_s18  ;;  %s1459_s20 = sphi %s1498_s20, %s13_s20   ;;  %s1455_s19 = sphi %s1496_s19, %s1849_s19   ;;  %s1451_s18 = sphi %s1494_s18, %s1848_s18   ;;  %s1447_s17 = sphi %s1492_s17, %s1847_s17   ;;  %s1443_s16 = sphi %s1490_s16, %s1846_s16   ;;  %s1439_s15 = sphi %s1488_s15, %s1845_s15   ;;  %s1435_s14 = sphi %s1486_s14, %s1844_s14   ;;  %s1431_s13 = sphi %s1484_s13, %s1843_s13   ;;  %s1427_s12 = sphi %s1482_s12, %s1842_s12  }
   0x6   : > { %p23_p0 = scmp.ge.s32.totalorder %s22_s22, 2  ;;  %s25_s23 = sadd.s32 1, %s1455_s19 }
   0x7   : > { %s58_s24 = sadd.s32 1, %s1439_s15  ;;  %p65_p1 = scmp.ne.s32.totalorder %s1439_s15, %s1435_s14 }
   0x8   : > { %s1851_s22 = smov (%p23_p0, %s22_s22), 0  ;;  %s1853_s23 = smov (!%p23_p0, %s25_s23), %s1455_s19 }
   0x9   : > { %s55_s25 = ssub.s32 %s1451_s18, %s1851_s22  ;;  %p66_p2 = scmp.eq.s32.totalorder %s1459_s20, 0 }
   0xa   : > { %p27_p3 = scmp.ge.s32.totalorder %s1853_s23, 2  ;;  %p56_p4 = scmp.eq.s32.totalorder %s55_s25, 0 }
   0xb   : > { %p67_p5 = por %p66_p2, %p65_p1  ;;  %s112_s26 = sadd.s32 1, %s1431_s13 }
   0xc   : > { %s1855_s23 = smov (%p27_p3, %s1853_s23), 0  ;;  %p122_p6 = scmp.ne.s32.totalorder %s1431_s13, %s1427_s12 }
   0xd   : > { %s1543_s27 = scalar_select %p56_p4, %s1439_s15, %s58_s24  }
   0xe   : > { %s107_s28 = ssub.s32 %s1455_s19, %s1855_s23  ;;  %p123_p7 = scmp.eq.s32.totalorder %s1134_s21, 3 }
   0xf   : > { %s109_s29 = sor.u32 %s107_s28, %s55_s25  ;;  %p1137_p10 = scmp.ge.s32.totalorder %s1459_s20, 4 }
  0x10   : > { %p110_p8 = scmp.eq.s32.totalorder %s109_s29, 0  ;;  %p1549_p9 = por %p123_p7, %p122_p6 }
  0x11   : > { %145 = sbr.rel (%p1137_p10) target bundleno = 32 (0x20), region = 16 }
  0x12   : > { %s1554_s4 = scalar_select %p110_p8, %s1431_s13, %s112_s26  }
  0x18   : > { %157 = sbr.rel (!%p67_p5) target bundleno = 32 (0x20), region = 24  ;;  %s159_s5 = sand.u32 (%p67_p5), 1, %s1439_s15  }
  0x19   : > { %s1139_s6 = sshll.u32 (%p67_p5), %s1451_s18, 3  ;;  %s1138_s7 = sshll.u32 (%p67_p5), %s159_s5, 6 }
  0x1a   : > { %s163_s10 = scalar_lea.vmem (%p67_p5), %s1838_s1, %s1139_s6  ;;  %s161_s11 = scalar_lea.vmem (%p67_p5), [#allocation2], %s1138_s7 }
  0x1b   : > { %v205_v0 = vld [vmem:[%s163_s10] sm:$0xff] (%p67_p5)  ;;  %v207_v1 = vld [vmem:[%s163_s10 + $0x10] sm:$0xff] (%p67_p5) }
  0x1c   : > { %v209_v2 = vld [vmem:[%s163_s10 + $0x20] sm:$0xff] (%p67_p5)  ;;  %206 = vst [vmem:[%s161_s11] sm:$0xff] (%p67_p5), %v205_v0  ;;  %208 = vst [vmem:[%s161_s11 + $0x8] sm:$0xff] (%p67_p5), %v207_v1  ;;  %v211_v3 = vld [vmem:[%s163_s10 + $0x30] sm:$0xff] (%p67_p5) }
  0x1d   : > { %210 = vst [vmem:[%s161_s11 + $0x10] sm:$0xff] (%p67_p5), %v209_v2  ;;  %v213_v4 = vld [vmem:[%s163_s10 + $0x40] sm:$0xff] (%p67_p5)  ;;  %v215_v5 = vld [vmem:[%s163_s10 + $0x50] sm:$0xff] (%p67_p5)  ;;  %212 = vst [vmem:[%s161_s11 + $0x18] sm:$0xff] (%p67_p5), %v211_v3 }
  0x1e   : > { %214 = vst [vmem:[%s161_s11 + $0x20] sm:$0xff] (%p67_p5), %v213_v4  ;;  %216 = vst [vmem:[%s161_s11 + $0x28] sm:$0xff] (%p67_p5), %v215_v5  ;;  %v217_v6 = vld [vmem:[%s163_s10 + $0x60] sm:$0xff] (%p67_p5)  ;;  %v219_v7 = vld [vmem:[%s163_s10 + $0x70] sm:$0xff] (%p67_p5) }
  0x1f   : > { %218 = vst [vmem:[%s161_s11 + $0x30] sm:$0xff] %v217_v6  ;;  %220 = vst [vmem:[%s161_s11 + $0x38] sm:$0xff] %v219_v7 }
  0x20 PF: > { %p1140_p11 = scmp.ge.s32.totalorder %s1459_s20, 1  ;;  %p234_p12 = scmp.lt.s32.totalorder %s1459_s20, 5 }
  0x22   : > { %p235_p13 = pnand %p1140_p11, %p234_p12 }
  0x23   : > { %s241_s21 = sand.u32 (!%p235_p13), 1, %s1435_s14   ;;  %s1143_s24 = sshll.u32 (!%p235_p13), %s1447_s17, 5  ;;  %v1461_v8 = vmov (!%p235_p13), 0   ;;  %vm518_vm0 = vcmask (!%p235_p13), 523264  }
  0x24   : > { %238 = sbr.rel (%p235_p13) target bundleno = 310 (0x136), region = 66  ;;  %s1141_s25 = sshll.u32 (!%p235_p13), %s241_s21, 6  ;;  %1388 = vset.pattern.permute.xlu1 (!%p235_p13), %v1461_v8  ;;  %1387 = vset.pattern.permute.xlu0 (!%p235_p13), %v1461_v8 }
  0x25   : > { %p274_p0 = scmp.lt.s32.totalorder (!%p235_p13), %s1143_s24, 63  ;;  %s243_s26 = scalar_lea.vmem (!%p235_p13), [#allocation2], %s1141_s25 }
  0x26   : > { %v318_v9 = vld [vmem:[%s243_s26] sm:$0xff] (!%p235_p13)  ;;  %v319_v10 = vld [vmem:[%s243_s26 + $0x8] sm:$0xff] (!%p235_p13)  ;;  %v320_v11 = vld [vmem:[%s243_s26 + $0x10] sm:$0xff] (!%p235_p13)  ;;  %s270_s9 = sand.u32 (!%p235_p13), 1, %s1427_s12  }
  0x27   : > { %v1290_v12 = vpack.c.bf16 (!%p235_p13), %v319_v10, %v318_v9  ;;  %v321_v13 = vld [vmem:[%s243_s26 + $0x18] sm:$0xff] (!%p235_p13)  ;;  %v322_v15 = vld [vmem:[%s243_s26 + $0x20] sm:$0xff] (!%p235_p13)  ;;  %v323_v16 = vld [vmem:[%s243_s26 + $0x28] sm:$0xff] (!%p235_p13)  ;;  %s1142_s10 = sshll.u32 (!%p235_p13), %s270_s9, 8 }
  0x28   : > { %v1294_v14 = vpack.c.bf16 (!%p235_p13), %v321_v13, %v320_v11  ;;  %v1298_v19 = vpack.c.bf16 (!%p235_p13), %v323_v16, %v322_v15  ;;  %v324_v22 = vld [vmem:[%s243_s26 + $0x30] sm:$0xff] (!%p235_p13)  ;;  %v325_v23 = vld [vmem:[%s243_s26 + $0x38] sm:$0xff] (!%p235_p13)  ;;  %s1693_s11 = scalar_lea.vmem (!%p235_p13), [#allocation3], %s1142_s10 }
  0x29   : > { %1291 = vmatprep.subr.bf16.mxu0 (!%p235_p13), %v1290_v12  ;;  %1306 = vmatprep.subr.bf16.mxu1 (!%p235_p13), %v1290_v12  ;;  %v1302_v26 = vpack.c.bf16 (!%p235_p13), %v325_v23, %v324_v22 }
  0x2a   : > { %1293 = vmatpush3.bf16.msra.mxu0 (!%p235_p13), %v1290_v12  ;;  %1310 = vmatpush3.bf16.msra.mxu1 (!%p235_p13), %v1290_v12 }
  0x2b   : > { %s1857_s24 = smov (!%p274_p0, %s1143_s24), 63  ;;  %1295 = vmatprep.subr.bf16.mxu0 %v1294_v14  ;;  %1307 = vmatprep.subr.bf16.mxu1 %v1294_v14  ;;  %s1185_s12 = sshll.u32 (%p1549_p9), %s1447_s17, 6 }
  0x2c   : > { %s1144_s28 = sshll.u32 %s1857_s24, 3  ;;  %s881_s30 = sadd.s32 (%p1549_p9), %s1443_s16, %s1185_s12 }
  0x2d   : > { %s1569_s5 = scalar_lea.vmem %s1839_s2, %s1144_s28  ;;  %s1574_s8 = scalar_lea.vmem %s1837_s0, %s1144_s28 }
  0x2e   : > { %v328_v17 = vld [vmem:[%s1569_s5 + $0x10] sm:$0xff]  ;;  %v326_v18 = vld [vmem:[%s1569_s5] sm:$0xff]  ;;  %v329_v24 = vld [vmem:[%s1569_s5 + $0x18] sm:$0xff]  ;;  %1297 = vmatpush3.bf16.msra.mxu0 %v1294_v14  ;;  %1311 = vmatpush3.bf16.msra.mxu1 %v1294_v14  ;;  %s1182_s21 = sshll.u32 (%p1549_p9), %s881_s30, 3 }
  0x2f   : > { %v286_v20 = vld [vmem:[%s1574_s8] sm:$0xff]  ;;  %370 = vperm.xlu1 %1388, %v328_v17   ;;  %360 = vperm.xlu0 %1387, %v326_v18   ;;  %v327_v25 = vld [vmem:[%s1569_s5 + $0x8] sm:$0xff]  ;;  %v333_v29 = vld [vmem:[%s1569_s5 + $0x38] sm:$0xff]  ;;  %s1753_s26 = scalar_lea.vmem (%p1549_p9), %s1840_s3, %s1182_s21 }
  0x30   : > { %v302_v21 = vld [vmem:[%s1574_s8 + $0x80] sm:$0xff]  ;;  %1242 = vmatprep.mubr.msk.f32.mxu0 %vm518_vm0, %v286_v20  ;;  %1299 = vmatprep.subr.bf16.mxu0 %v1298_v19  ;;  %v331_v27 = vld [vmem:[%s1569_s5 + $0x28] sm:$0xff]  ;;  %v332_v30 = vld [vmem:[%s1569_s5 + $0x30] sm:$0xff] }
  0x31   : > { %1266 = vmatprep.mubr.msk.f32.mxu1 %vm518_vm0, %v302_v21  ;;  %1308 = vmatprep.subr.bf16.mxu1 %v1298_v19  ;;  %v330_v28 = vld [vmem:[%s1569_s5 + $0x20] sm:$0xff]  ;;  %v287_v31 = vld [vmem:[%s1574_s8 + $0x8] sm:$0xff]  ;;  %v288_v33 = vld [vmem:[%s1574_s8 + $0x10] sm:$0xff] }
  0x32   : > { %1301 = vmatpush3.bf16.msra.mxu0 %v1298_v19  ;;  %1312 = vmatpush3.bf16.msra.mxu1 %v1298_v19  ;;  %v303_v32 = vld [vmem:[%s1574_s8 + $0x88] sm:$0xff]  ;;  %v304_v34 = vld [vmem:[%s1574_s8 + $0x90] sm:$0xff]  ;;  %v334_v36 = vld [vmem:[%s1569_s5 + $0x40] sm:$0xff] }
  0x33   : > { %375 = vperm.xlu1 %1388, %v329_v24   ;;  %365 = vperm.xlu0 %1387, %v327_v25   ;;  %v335_v35 = vld [vmem:[%s1569_s5 + $0x48] sm:$0xff]  ;;  %v289_v37 = vld [vmem:[%s1574_s8 + $0x18] sm:$0xff]  ;;  %v290_v39 = vld [vmem:[%s1574_s8 + $0x20] sm:$0xff] }
  0x34   : > { %1303 = vmatprep.subr.bf16.mxu0 %v1302_v26  ;;  %1309 = vmatprep.subr.bf16.mxu1 %v1302_v26  ;;  %v305_v38 = vld [vmem:[%s1574_s8 + $0x98] sm:$0xff]  ;;  %v306_v40 = vld [vmem:[%s1574_s8 + $0xa0] sm:$0xff]  ;;  %v336_v42 = vld [vmem:[%s1569_s5 + $0x50] sm:$0xff] }
  0x35   : > { %v337_v41 = vld [vmem:[%s1569_s5 + $0x58] sm:$0xff]  ;;  %v291_v43 = vld [vmem:[%s1574_s8 + $0x28] sm:$0xff]  ;;  %v292_v45 = vld [vmem:[%s1574_s8 + $0x30] sm:$0xff] }
  0x36   : > { %1305 = vmatpush3.bf16.msra.mxu0 %v1302_v26  ;;  %1313 = vmatpush3.bf16.msra.mxu1 %v1302_v26  ;;  %v307_v44 = vld [vmem:[%s1574_s8 + $0xa8] sm:$0xff]  ;;  %v308_v46 = vld [vmem:[%s1574_s8 + $0xb0] sm:$0xff]  ;;  %v338_v48 = vld [vmem:[%s1569_s5 + $0x60] sm:$0xff] }
  0x37   : > { %385 = vperm.xlu1 %1388, %v331_v27   ;;  %380 = vperm.xlu0 %1387, %v330_v28   ;;  %v339_v47 = vld [vmem:[%s1569_s5 + $0x68] sm:$0xff]  ;;  %v293_v49 = vld [vmem:[%s1574_s8 + $0x38] sm:$0xff]  ;;  %v294_v51 = vld [vmem:[%s1574_s8 + $0x40] sm:$0xff] }
  0x38   : > { %v309_v50 = vld [vmem:[%s1574_s8 + $0xb8] sm:$0xff]  ;;  %v310_v52 = vld [vmem:[%s1574_s8 + $0xc0] sm:$0xff]  ;;  %v340_v54 = vld [vmem:[%s1569_s5 + $0x70] sm:$0xff] }
  0x39   : > { %1243 = vmatmul.mubr.msk.f32.vlgmr.msra.gmra.mrb[0].mxu0 %vm518_vm0, %v287_v31  ;;  %1267 = vmatmul.mubr.msk.f32.vlgmr.msra.gmra.mrb[0].mxu1 %vm518_vm0, %v303_v32  ;;  %v341_v53 = vld [vmem:[%s1569_s5 + $0x78] sm:$0xff]  ;;  %v295_v55 = vld [vmem:[%s1574_s8 + $0x48] sm:$0xff]  ;;  %v296_v57 = vld [vmem:[%s1574_s8 + $0x50] sm:$0xff] }
  0x3a   : > { %1245 = vmatprep.mubr.msk.f32.mxu0 %vm518_vm0, %v288_v33  ;;  %1269 = vmatprep.mubr.msk.f32.mxu1 %vm518_vm0, %v304_v34  ;;  %v311_v56 = vld [vmem:[%s1574_s8 + $0xc8] sm:$0xff]  ;;  %v312_v58 = vld [vmem:[%s1574_s8 + $0xd0] sm:$0xff]  ;;  %v342_v60 = vld [vmem:[%s1569_s5 + $0x80] sm:$0xff] }
  0x3b   : > { %395 = vperm.xlu1 %1388, %v333_v29   ;;  %390 = vperm.xlu0 %1387, %v332_v30   ;;  %v343_v59 = vld [vmem:[%s1569_s5 + $0x88] sm:$0xff]  ;;  %v297_v61 = vld [vmem:[%s1574_s8 + $0x58] sm:$0xff]  ;;  %v298_v63 = vld [vmem:[%s1574_s8 + $0x60] sm:$0xff] }
  0x3c   : > { %v313_v62 = vld [vmem:[%s1574_s8 + $0xd8] sm:$0xff]  ;;  %v314_v0 = vld [vmem:[%s1574_s8 + $0xe0] sm:$0xff]  ;;  %v344_v2 = vld [vmem:[%s1569_s5 + $0x90] sm:$0xff] }
  0x3d   : > { %1246 = vmatmul.mubr.msk.f32.gmra.mrb[2].mxu0 %vm518_vm0, %v289_v37  ;;  %1270 = vmatmul.mubr.msk.f32.gmra.mrb[2].mxu1 %vm518_vm0, %v305_v38  ;;  %v345_v1 = vld [vmem:[%s1569_s5 + $0x98] sm:$0xff]  ;;  %v299_v3 = vld [vmem:[%s1574_s8 + $0x68] sm:$0xff]  ;;  %v300_v5 = vld [vmem:[%s1574_s8 + $0x70] sm:$0xff] }
  0x3e   : > { %1248 = vmatprep.mubr.msk.f32.mxu0 %vm518_vm0, %v290_v39  ;;  %1272 = vmatprep.mubr.msk.f32.mxu1 %vm518_vm0, %v306_v40  ;;  %v315_v4 = vld [vmem:[%s1574_s8 + $0xe8] sm:$0xff]  ;;  %v316_v6 = vld [vmem:[%s1574_s8 + $0xf0] sm:$0xff]  ;;  %v346_v8 = vld [vmem:[%s1569_s5 + $0xa0] sm:$0xff] }
  0x3f   : > { %405 = vperm.xlu1 %1388, %v335_v35   ;;  %400 = vperm.xlu0 %1387, %v334_v36   ;;  %v347_v7 = vld [vmem:[%s1569_s5 + $0xa8] sm:$0xff]  ;;  %v301_v9 = vld [vmem:[%s1574_s8 + $0x78] sm:$0xff]  ;;  %v348_v12 = vld [vmem:[%s1569_s5 + $0xb0] sm:$0xff] }
  0x40   : > { %v317_v10 = vld [vmem:[%s1574_s8 + $0xf8] sm:$0xff]  ;;  %v351_v13 = vld [vmem:[%s1569_s5 + $0xc8] sm:$0xff]  ;;  %v350_v14 = vld [vmem:[%s1569_s5 + $0xc0] sm:$0xff] }
  0x41   : > { %1249 = vmatmul.mubr.msk.f32.gmra.mrb[4].mxu0 %vm518_vm0, %v291_v43  ;;  %1273 = vmatmul.mubr.msk.f32.gmra.mrb[4].mxu1 %vm518_vm0, %v307_v44  ;;  %v349_v11 = vld [vmem:[%s1569_s5 + $0xb8] sm:$0xff]  ;;  %v352_v16 = vld [vmem:[%s1569_s5 + $0xd0] sm:$0xff]  ;;  %v355_v17 = vld [vmem:[%s1569_s5 + $0xe8] sm:$0xff] }
  0x42   : > { %1251 = vmatprep.mubr.msk.f32.mxu0 %vm518_vm0, %v292_v45  ;;  %1275 = vmatprep.mubr.msk.f32.mxu1 %vm518_vm0, %v308_v46  ;;  %v353_v15 = vld [vmem:[%s1569_s5 + $0xd8] sm:$0xff]  ;;  %v354_v18 = vld [vmem:[%s1569_s5 + $0xe0] sm:$0xff]  ;;  %v356_v20 = vld [vmem:[%s1569_s5 + $0xf0] sm:$0xff] }
  0x43   : > { %415 = vperm.xlu1 %1388, %v337_v41   ;;  %410 = vperm.xlu0 %1387, %v336_v42   ;;  %v357_v19 = vld [vmem:[%s1569_s5 + $0xf8] sm:$0xff] }
  0x45   : > { %1252 = vmatmul.mubr.msk.f32.gmra.mrb[6].mxu0 %vm518_vm0, %v293_v49  ;;  %1276 = vmatmul.mubr.msk.f32.gmra.mrb[6].mxu1 %vm518_vm0, %v309_v50 }
  0x46   : > { %1254 = vmatprep.mubr.msk.f32.mxu0 %vm518_vm0, %v294_v51  ;;  %1278 = vmatprep.mubr.msk.f32.mxu1 %vm518_vm0, %v310_v52 }
  0x47   : > { %425 = vperm.xlu1 %1388, %v339_v47   ;;  %420 = vperm.xlu0 %1387, %v338_v48  }
  0x49   : > { %1255 = vmatmul.mubr.msk.f32.gmra.mrb[8].mxu0 %vm518_vm0, %v295_v55  ;;  %1279 = vmatmul.mubr.msk.f32.gmra.mrb[8].mxu1 %vm518_vm0, %v311_v56 }
  0x4a   : > { %1257 = vmatprep.mubr.msk.f32.mxu0 %vm518_vm0, %v296_v57  ;;  %1281 = vmatprep.mubr.msk.f32.mxu1 %vm518_vm0, %v312_v58 }
  0x4b   : > { %435 = vperm.xlu1 %1388, %v341_v53   ;;  %430 = vperm.xlu0 %1387, %v340_v54  }
  0x4d   : > { %1258 = vmatmul.mubr.msk.f32.gmra.mrb[10].mxu0 %vm518_vm0, %v297_v61  ;;  %1282 = vmatmul.mubr.msk.f32.gmra.mrb[10].mxu1 %vm518_vm0, %v313_v62 }
  0x4e   : > { %1260 = vmatprep.mubr.msk.f32.mxu0 %vm518_vm0, %v298_v63  ;;  %1284 = vmatprep.mubr.msk.f32.mxu1 %vm518_vm0, %v314_v0 }
  0x4f   : > { %445 = vperm.xlu1 %1388, %v343_v59   ;;  %440 = vperm.xlu0 %1387, %v342_v60  }
  0x51   : > { %1261 = vmatmul.mubr.msk.f32.gmra.mrb[12].mxu0 %vm518_vm0, %v299_v3  ;;  %1285 = vmatmul.mubr.msk.f32.gmra.mrb[12].mxu1 %vm518_vm0, %v315_v4 }
  0x52   : > { %1263 = vmatprep.mubr.msk.f32.mxu0 %vm518_vm0, %v300_v5  ;;  %1287 = vmatprep.mubr.msk.f32.mxu1 %vm518_vm0, %v316_v6 }
  0x53   : > { %455 = vperm.xlu1 %1388, %v345_v1   ;;  %450 = vperm.xlu0 %1387, %v344_v2  }
  0x55   : > { %1264 = vmatmul.mubr.msk.f32.gmra.mrb[14].mxu0 %vm518_vm0, %v301_v9  ;;  %1288 = vmatmul.mubr.msk.f32.gmra.mrb[14].mxu1 %vm518_vm0, %v317_v10 }
  0x57   : > { %465 = vperm.xlu1 %1388, %v347_v7   ;;  %460 = vperm.xlu0 %1387, %v346_v8  }
  0x5b   : > { %475 = vperm.xlu1 %1388, %v349_v11   ;;  %470 = vperm.xlu0 %1387, %v348_v12  }
  0x5f   : > { %485 = vperm.xlu1 %1388, %v351_v13   ;;  %480 = vperm.xlu0 %1387, %v350_v14  }
  0x63   : > { %495 = vperm.xlu1 %1388, %v353_v15   ;;  %490 = vperm.xlu0 %1387, %v352_v16  }
  0x67   : > { %505 = vperm.xlu1 %1388, %v355_v17   ;;  %500 = vperm.xlu0 %1387, %v354_v18  }
  0x6b   : > { %515 = vperm.xlu1 %1388, %v357_v19   ;;  %510 = vperm.xlu0 %1387, %v356_v20  }
  0xae   : > { %v371_v21 = vpop.permute.xlu1 %370  ;;  %v361_v22 = vpop.permute.xlu0 %360 }
  0xb2   : > { %v376_v23 = vpop.permute.xlu1 %375  ;;  %v366_v24 = vpop.permute.xlu0 %365 }
  0xb6   : > { %v386_v25 = vpop.permute.xlu1 %385  ;;  %v381_v26 = vpop.permute.xlu0 %380 }
  0xba   : > { %v1672_v27 = vpop.permute.xlu1 %395  ;;  %v1674_v28 = vpop.permute.xlu0 %390 }
  0xbe   : > { %v1676_v29 = vpop.permute.xlu1 %405  ;;  %v1678_v30 = vpop.permute.xlu0 %400 }
  0xc2   : > { %v1680_v31 = vpop.permute.xlu1 %415  ;;  %v1682_v32 = vpop.permute.xlu0 %410 }
  0xc6   : > { %v1684_v33 = vpop.permute.xlu1 %425  ;;  %v1686_v34 = vpop.permute.xlu0 %420 }
  0xca   : > { %v1688_v35 = vpop.permute.xlu1 %435  ;;  %v1690_v36 = vpop.permute.xlu0 %430 }
  0xce   : > { %v446_v37 = vpop.permute.xlu1 %445  ;;  %v441_v38 = vpop.permute.xlu0 %440 }
  0xd2   : > { %v456_v39 = vpop.permute.xlu1 %455  ;;  %v451_v40 = vpop.permute.xlu0 %450 }
  0xd6   : > { %v466_v41 = vpop.permute.xlu1 %465  ;;  %v461_v42 = vpop.permute.xlu0 %460 }
  0xda   : > { %v476_v43 = vpop.permute.xlu1 %475  ;;  %v471_v44 = vpop.permute.xlu0 %470 }
  0xde   : > { %v486_v53 = vpop.permute.xlu1 %485  ;;  %v481_v54 = vpop.permute.xlu0 %480 }
  0xe2   : > { %v496_v7 = vpop.permute.xlu1 %495  ;;  %v491_v8 = vpop.permute.xlu0 %490 }
 0x10c   : > { %v1244_v45 = vpop.f32.mrb[0].mxu0  ;;  %v1268_v46 = vpop.f32.mrb[0].mxu1 }
 0x10d   : > { %v687_v47 = vadd.f32 %v1244_v45, %v366_v24  ;;  %v767_v48 = vadd.f32 %v1268_v46, %v446_v37  ;;  %v681_v49 = vpop.f32.mrb[1].mxu0  ;;  %v761_v50 = vpop.f32.mrb[1].mxu1 }
 0x10e   : > { %v682_v51 = vadd.f32 %v681_v49, %v361_v22  ;;  %v762_v52 = vadd.f32 %v761_v50, %v441_v38 }
 0x10f   : > { %841 = vst [vmem:[%s1693_s11 + $0x8] sm:$0xff] %v687_v47  ;;  %857 = vst [vmem:[%s1693_s11 + $0x88] sm:$0xff] %v767_v48 }
 0x110   : > { %840 = vst [vmem:[%s1693_s11] sm:$0xff] %v682_v51  ;;  %856 = vst [vmem:[%s1693_s11 + $0x80] sm:$0xff] %v762_v52  ;;  %v1247_v55 = vpop.f32.mrb[2].mxu0  ;;  %v1271_v56 = vpop.f32.mrb[2].mxu1 }
 0x111   : > { %v697_v57 = vadd.f32 %v1247_v55, %v376_v23  ;;  %v777_v58 = vadd.f32 %v1271_v56, %v456_v39  ;;  %v691_v59 = vpop.f32.mrb[3].mxu0  ;;  %v771_v60 = vpop.f32.mrb[3].mxu1 }
 0x112   : > { %v692_v61 = vadd.f32 %v691_v59, %v371_v21  ;;  %v772_v62 = vadd.f32 %v771_v60, %v451_v40 }
 0x113   : > { %843 = vst [vmem:[%s1693_s11 + $0x18] sm:$0xff] %v697_v57  ;;  %859 = vst [vmem:[%s1693_s11 + $0x98] sm:$0xff] %v777_v58 }
 0x114   : > { %842 = vst [vmem:[%s1693_s11 + $0x10] sm:$0xff] %v692_v61  ;;  %858 = vst [vmem:[%s1693_s11 + $0x90] sm:$0xff] %v772_v62  ;;  %v1250_v63 = vpop.f32.mrb[4].mxu0  ;;  %v1274_v0 = vpop.f32.mrb[4].mxu1 }
 0x115   : > { %v707_v1 = vadd.f32 %v1250_v63, %v386_v25  ;;  %v787_v2 = vadd.f32 %v1274_v0, %v466_v41  ;;  %v701_v3 = vpop.f32.mrb[5].mxu0  ;;  %v781_v4 = vpop.f32.mrb[5].mxu1 }
 0x116   : > { %v702_v5 = vadd.f32 %v701_v3, %v381_v26  ;;  %v782_v6 = vadd.f32 %v781_v4, %v461_v42  ;;  %v506_v25 = vpop.permute.xlu1 %505  ;;  %v501_v26 = vpop.permute.xlu0 %500 }
 0x117   : > { %845 = vst [vmem:[%s1693_s11 + $0x28] sm:$0xff] %v707_v1  ;;  %861 = vst [vmem:[%s1693_s11 + $0xa8] sm:$0xff] %v787_v2 }
 0x118   : > { %844 = vst [vmem:[%s1693_s11 + $0x20] sm:$0xff] %v702_v5  ;;  %860 = vst [vmem:[%s1693_s11 + $0xa0] sm:$0xff] %v782_v6  ;;  %v1253_v9 = vpop.f32.mrb[6].mxu0  ;;  %v1277_v10 = vpop.f32.mrb[6].mxu1  ;;  %v1005_v5 = vld [vmem:[%s1693_s11 + $0x80] sm:$0xff] (%p1549_p9)  ;;  %v1007_v6 = vld [vmem:[%s1693_s11 + $0x88] sm:$0xff] (%p1549_p9) }
 0x119   : > { %v717_v11 = vadd.f32 %v1253_v9, %v1672_v27  ;;  %v797_v12 = vadd.f32 %v1277_v10, %v476_v43  ;;  %v711_v13 = vpop.f32.mrb[7].mxu0  ;;  %v791_v14 = vpop.f32.mrb[7].mxu1  ;;  %1006 = vst [vmem:[%s1753_s26 + $0x100] sm:$0xff] (%p1549_p9), %v1005_v5  ;;  %1008 = vst [vmem:[%s1753_s26 + $0x110] sm:$0xff] (%p1549_p9), %v1007_v6 }
 0x11a   : > { %v712_v15 = vadd.f32 %v711_v13, %v1674_v28  ;;  %v792_v16 = vadd.f32 %v791_v14, %v471_v44  ;;  %v516_v47 = vpop.permute.xlu1 %515  ;;  %v511_v48 = vpop.permute.xlu0 %510  ;;  %v979_v56 = vld [vmem:[%s1693_s11 + $0x18] sm:$0xff] (%p1549_p9) }
 0x11b   : > { %847 = vst [vmem:[%s1693_s11 + $0x38] sm:$0xff] %v717_v11  ;;  %863 = vst [vmem:[%s1693_s11 + $0xb8] sm:$0xff] %v797_v12  ;;  %v977_v55 = vld [vmem:[%s1693_s11 + $0x10] sm:$0xff] (%p1549_p9) }
 0x11c   : > { %846 = vst [vmem:[%s1693_s11 + $0x30] sm:$0xff] %v712_v15  ;;  %862 = vst [vmem:[%s1693_s11 + $0xb0] sm:$0xff] %v792_v16  ;;  %v1256_v17 = vpop.f32.mrb[8].mxu0  ;;  %v1280_v18 = vpop.f32.mrb[8].mxu1 }
 0x11d   : > { %v727_v19 = vadd.f32 %v1256_v17, %v1676_v29  ;;  %v807_v20 = vadd.f32 %v1280_v18, %v486_v53  ;;  %v721_v21 = vpop.f32.mrb[9].mxu0  ;;  %v801_v22 = vpop.f32.mrb[9].mxu1  ;;  %978 = vst [vmem:[%s1753_s26 + $0x20] sm:$0xff] (%p1549_p9), %v977_v55  ;;  %980 = vst [vmem:[%s1753_s26 + $0x30] sm:$0xff] (%p1549_p9), %v979_v56 }
 0x11e   : > { %v722_v23 = vadd.f32 %v721_v21, %v1678_v30  ;;  %v802_v24 = vadd.f32 %v801_v22, %v481_v54  ;;  %v983_v58 = vld [vmem:[%s1693_s11 + $0x28] sm:$0xff] (%p1549_p9) }
 0x11f   : > { %849 = vst [vmem:[%s1693_s11 + $0x48] sm:$0xff] %v727_v19  ;;  %865 = vst [vmem:[%s1693_s11 + $0xc8] sm:$0xff] %v807_v20  ;;  %v981_v57 = vld [vmem:[%s1693_s11 + $0x20] sm:$0xff] (%p1549_p9)  ;;  %v1015_v10 = vld [vmem:[%s1693_s11 + $0xa8] sm:$0xff] (%p1549_p9) }
 0x120   : > { %848 = vst [vmem:[%s1693_s11 + $0x40] sm:$0xff] %v722_v23  ;;  %864 = vst [vmem:[%s1693_s11 + $0xc0] sm:$0xff] %v802_v24  ;;  %v1259_v27 = vpop.f32.mrb[10].mxu0  ;;  %v1283_v28 = vpop.f32.mrb[10].mxu1  ;;  %v1013_v9 = vld [vmem:[%s1693_s11 + $0xa0] sm:$0xff] (%p1549_p9) }
 0x121   : > { %v737_v29 = vadd.f32 %v1259_v27, %v1680_v31  ;;  %v817_v37 = vadd.f32 %v1283_v28, %v496_v7  ;;  %v731_v38 = vpop.f32.mrb[11].mxu0  ;;  %v811_v39 = vpop.f32.mrb[11].mxu1  ;;  %982 = vst [vmem:[%s1753_s26 + $0x40] sm:$0xff] (%p1549_p9), %v981_v57  ;;  %984 = vst [vmem:[%s1753_s26 + $0x50] sm:$0xff] (%p1549_p9), %v983_v58  ;;  %v1009_v7 = vld [vmem:[%s1693_s11 + $0x90] sm:$0xff] (%p1549_p9) }
 0x122   : > { %v732_v30 = vadd.f32 %v731_v38, %v1682_v32  ;;  %v812_v40 = vadd.f32 %v811_v39, %v491_v8  ;;  %v987_v60 = vld [vmem:[%s1693_s11 + $0x38] sm:$0xff] (%p1549_p9)  ;;  %1010 = vst [vmem:[%s1753_s26 + $0x120] sm:$0xff] (%p1549_p9), %v1009_v7  ;;  %1014 = vst [vmem:[%s1753_s26 + $0x140] sm:$0xff] (%p1549_p9), %v1013_v9 }
 0x123   : > { %851 = vst [vmem:[%s1693_s11 + $0x58] sm:$0xff] %v737_v29  ;;  %867 = vst [vmem:[%s1693_s11 + $0xd8] sm:$0xff] %v817_v37  ;;  %v985_v59 = vld [vmem:[%s1693_s11 + $0x30] sm:$0xff] (%p1549_p9)  ;;  %v1011_v8 = vld [vmem:[%s1693_s11 + $0x98] sm:$0xff] (%p1549_p9) }
 0x124   : > { %850 = vst [vmem:[%s1693_s11 + $0x50] sm:$0xff] %v732_v30  ;;  %866 = vst [vmem:[%s1693_s11 + $0xd0] sm:$0xff] %v812_v40  ;;  %v1262_v41 = vpop.f32.mrb[12].mxu0  ;;  %v1286_v42 = vpop.f32.mrb[12].mxu1  ;;  %v1017_v11 = vld [vmem:[%s1693_s11 + $0xb0] sm:$0xff] (%p1549_p9)  ;;  %v1019_v12 = vld [vmem:[%s1693_s11 + $0xb8] sm:$0xff] (%p1549_p9) }
 0x125   : > { %v747_v43 = vadd.f32 %v1262_v41, %v1684_v33  ;;  %v827_v44 = vadd.f32 %v1286_v42, %v506_v25  ;;  %v741_v31 = vpop.f32.mrb[13].mxu0  ;;  %v821_v45 = vpop.f32.mrb[13].mxu1  ;;  %986 = vst [vmem:[%s1753_s26 + $0x60] sm:$0xff] (%p1549_p9), %v985_v59  ;;  %988 = vst [vmem:[%s1753_s26 + $0x70] sm:$0xff] (%p1549_p9), %v987_v60 }
 0x126   : > { %v742_v46 = vadd.f32 %v741_v31, %v1686_v34  ;;  %v822_v32 = vadd.f32 %v821_v45, %v501_v26  ;;  %878 = sbr.rel (!%p1549_p9) target bundleno = 310 (0x136), region = 74  ;;  %v991_v62 = vld [vmem:[%s1693_s11 + $0x48] sm:$0xff] (%p1549_p9)  ;;  %1012 = vst [vmem:[%s1753_s26 + $0x130] sm:$0xff] (%p1549_p9), %v1011_v8  ;;  %1016 = vst [vmem:[%s1753_s26 + $0x150] sm:$0xff] (%p1549_p9), %v1015_v10 }
 0x127   : > { %853 = vst [vmem:[%s1693_s11 + $0x68] sm:$0xff] %v747_v43  ;;  %869 = vst [vmem:[%s1693_s11 + $0xe8] sm:$0xff] %v827_v44  ;;  %v989_v61 = vld [vmem:[%s1693_s11 + $0x40] sm:$0xff] (%p1549_p9)  ;;  %v1023_v14 = vld [vmem:[%s1693_s11 + $0xc8] sm:$0xff] (%p1549_p9) }
 0x128   : > { %852 = vst [vmem:[%s1693_s11 + $0x60] sm:$0xff] %v742_v46  ;;  %868 = vst [vmem:[%s1693_s11 + $0xe0] sm:$0xff] %v822_v32  ;;  %v1265_v49 = vpop.f32.mrb[14].mxu0  ;;  %v1289_v50 = vpop.f32.mrb[14].mxu1  ;;  %v1021_v13 = vld [vmem:[%s1693_s11 + $0xc0] sm:$0xff] (%p1549_p9) }
 0x129   : > { %v757_v33 = vadd.f32 %v1265_v49, %v1688_v35  ;;  %v837_v51 = vadd.f32 %v1289_v50, %v516_v47  ;;  %v751_v52 = vpop.f32.mrb[15].mxu0  ;;  %v831_v53 = vpop.f32.mrb[15].mxu1  ;;  %v973_v35 = vld [vmem:[%s1693_s11] sm:$0xff] (%p1549_p9)  ;;  %990 = vst [vmem:[%s1753_s26 + $0x80] sm:$0xff] (%p1549_p9), %v989_v61  ;;  %992 = vst [vmem:[%s1753_s26 + $0x90] sm:$0xff] (%p1549_p9), %v991_v62 }
 0x12a   : > { %v752_v34 = vadd.f32 %v751_v52, %v1690_v36  ;;  %v832_v54 = vadd.f32 %v831_v53, %v511_v48  ;;  %v975_v36 = vld [vmem:[%s1693_s11 + $0x8] sm:$0xff] (%p1549_p9)  ;;  %v995_v0 = vld [vmem:[%s1693_s11 + $0x58] sm:$0xff] (%p1549_p9)  ;;  %974 = vst [vmem:[%s1753_s26] sm:$0xff] (%p1549_p9), %v973_v35  ;;  %1018 = vst [vmem:[%s1753_s26 + $0x160] sm:$0xff] (%p1549_p9), %v1017_v11 }
 0x12b   : > { %855 = vst [vmem:[%s1693_s11 + $0x78] sm:$0xff] %v757_v33  ;;  %871 = vst [vmem:[%s1693_s11 + $0xf8] sm:$0xff] %v837_v51  ;;  %v993_v63 = vld [vmem:[%s1693_s11 + $0x50] sm:$0xff] (%p1549_p9)  ;;  %v1027_v16 = vld [vmem:[%s1693_s11 + $0xd8] sm:$0xff] (%p1549_p9) }
 0x12c   : > { %854 = vst [vmem:[%s1693_s11 + $0x70] sm:$0xff] %v752_v34  ;;  %870 = vst [vmem:[%s1693_s11 + $0xf0] sm:$0xff] %v832_v54  ;;  %v1025_v15 = vld [vmem:[%s1693_s11 + $0xd0] sm:$0xff] (%p1549_p9) }
 0x12d   : > { %976 = vst [vmem:[%s1753_s26 + $0x10] sm:$0xff] %v975_v36  ;;  %994 = vst [vmem:[%s1753_s26 + $0xa0] sm:$0xff] %v993_v63 }
 0x12e   : > { %996 = vst [vmem:[%s1753_s26 + $0xb0] sm:$0xff] %v995_v0  ;;  %v999_v2 = vld [vmem:[%s1693_s11 + $0x68] sm:$0xff]  ;;  %1020 = vst [vmem:[%s1753_s26 + $0x170] sm:$0xff] %v1019_v12 }
 0x12f   : > { %v997_v1 = vld [vmem:[%s1693_s11 + $0x60] sm:$0xff]  ;;  %1000 = vst [vmem:[%s1753_s26 + $0xd0] sm:$0xff] %v999_v2  ;;  %1022 = vst [vmem:[%s1753_s26 + $0x180] sm:$0xff] %v1021_v13  ;;  %v1031_v18 = vld [vmem:[%s1693_s11 + $0xe8] sm:$0xff] }
 0x130   : > { %998 = vst [vmem:[%s1753_s26 + $0xc0] sm:$0xff] %v997_v1  ;;  %1024 = vst [vmem:[%s1753_s26 + $0x190] sm:$0xff] %v1023_v14  ;;  %v1029_v17 = vld [vmem:[%s1693_s11 + $0xe0] sm:$0xff] }
 0x131   : > { %1026 = vst [vmem:[%s1753_s26 + $0x1a0] sm:$0xff] %v1025_v15  ;;  %1028 = vst [vmem:[%s1753_s26 + $0x1b0] sm:$0xff] %v1027_v16 }
 0x132   : > { %v1003_v4 = vld [vmem:[%s1693_s11 + $0x78] sm:$0xff]  ;;  %1030 = vst [vmem:[%s1753_s26 + $0x1c0] sm:$0xff] %v1029_v17  ;;  %1032 = vst [vmem:[%s1753_s26 + $0x1d0] sm:$0xff] %v1031_v18 }
 0x133   : > { %v1001_v3 = vld [vmem:[%s1693_s11 + $0x70] sm:$0xff]  ;;  %1004 = vst [vmem:[%s1753_s26 + $0xf0] sm:$0xff] %v1003_v4  ;;  %v1035_v20 = vld [vmem:[%s1693_s11 + $0xf8] sm:$0xff] }
 0x134   : > { %1002 = vst [vmem:[%s1753_s26 + $0xe0] sm:$0xff] %v1001_v3  ;;  %v1033_v19 = vld [vmem:[%s1693_s11 + $0xf0] sm:$0xff]  ;;  %1036 = vst [vmem:[%s1753_s26 + $0x1f0] sm:$0xff] %v1035_v20 }
 0x135   : > { %1034 = vst [vmem:[%s1753_s26 + $0x1e0] sm:$0xff] %v1033_v19 }
 0x136 PF: > { %s13_s20 = sadd.s32 1, %s1459_s20   ;;  %s1842_s12 = smov %s1431_s13 }
 0x137   : > { %p10_p1 = scmp.ge.s32.totalorder %s13_s20, 6   ;;  %s1843_s13 = smov %s1554_s4 }
 0x138   : > { %s1844_s14 = smov %s1439_s15  ;;  %s1845_s15 = smov %s1543_s27 }
 0x139   : > { %s1846_s16 = smov %s1451_s18  ;;  %s1847_s17 = smov %s1455_s19 }
 0x13a   : > { %s1848_s18 = smov %s1851_s22  ;;  %s1849_s19 = smov %s1855_s23 }
 0x13b   :  { %12 = sbr.rel (!%p10_p1) target bundleno = 5 (0x5), region = 149 }

// kernel: ae_cluster_forward.11
= control target key start
LH: loop header
LB: loop body
LE: loop exit
PB: predicated region body
PF: predicated region fallthrough
CT: control target
= control target key end

     0   :  { %s2427_s12 = smov 0   ;;  %s2429_s13 = smov 0   ;;  %s3185_s0 = inlined_call_operand.vmem [shape: f32[75,32], index: 0, kind: input, shape index: {}]   ;;  %s3186_s1 = inlined_call_operand.vmem [shape: f32[32,1568], index: 1, kind: input, shape index: {}]   ;;  %s3187_s2 = inlined_call_operand.vmem [shape: f32[75,1], index: 2, kind: input, shape index: {}]   ;;  %s3188_s3 = inlined_call_operand.vmem [shape: f32[75,1568], index: 3, kind: output, shape index: {}]  }
   0x1   :  { %s2431_s14 = smov 0   ;;  %s2433_s15 = smov 0  }
   0x2   :  { %s2435_s16 = smov 0  }
   0x3 LB: > { %s22_s17 = sadd.s32 1, %s2299_s15  ;;  %s1738_s18 = sadd.s32 4294967295, %s2303_s16   ;;  %s2303_s16 = sphi %s2435_s16, %s13_s16   ;;  %s2299_s15 = sphi %s2433_s15, %s3217_s15   ;;  %s2295_s14 = sphi %s2431_s14, %s3216_s14   ;;  %s2291_s13 = sphi %s2429_s13, %s3215_s13   ;;  %s2287_s12 = sphi %s2427_s12, %s3214_s12  }
   0x4   : > { %p23_p0 = scmp.ge.s32.totalorder %s22_s17, 7  ;;  %p65_p1 = scmp.ne.s32.totalorder %s2291_s13, %s2287_s12 }
   0x5   : > { %p66_p2 = scmp.eq.s32.totalorder %s2303_s16, 0  ;;  %p123_p4 = scmp.eq.s32.totalorder %s1738_s18, 6 }
   0x6   : > { %s3219_s17 = smov (%p23_p0, %s22_s17), 0  ;;  %s58_s20 = sadd.s32 1, %s2291_s13 }
   0x7   : > { %p67_p3 = por %p66_p2, %p65_p1  ;;  %s55_s19 = ssub.s32 %s2299_s15, %s3219_s17 }
   0x8   : > { %p56_p5 = scmp.eq.s32.totalorder %s55_s19, 0  ;;  %p2462_p6 = por %p123_p4, %p65_p1 }
   0x9   : > { %p1743_p7 = scmp.ge.s32.totalorder %s2303_s16, 7 }
   0xa   : > { %s2467_s22 = scalar_select %p56_p5, %s2291_s13, %s58_s20  }
   0xb   : > { %163 = sbr.rel (%p1743_p7) target bundleno = 106 (0x6a), region = 24 }
  0x12   : > { %166 = sbr.rel (!%p67_p3) target bundleno = 106 (0x6a), region = 28  ;;  %s168_s23 = sand.u32 (%p67_p3), 1, %s2291_s13  }
  0x13   : > { %s1745_s24 = sshll.u32 (%p67_p3), %s2299_s15, 1  ;;  %s1744_s25 = sshll.u32 (%p67_p3), %s168_s23, 6 }
  0x14   : > { %s172_s26 = ssub.s32 (%p67_p3), 13, %s1745_s24  ;;  %s1810_s27 = sshll.u32 (%p67_p3), %s2299_s15, 4 }
  0x15   : > { %p173_p8 = scmp.lt.s32.totalorder (%p67_p3), %s172_s26, 2  ;;  %s2476_s30 = scalar_lea.vmem (%p67_p3), %s3186_s1, %s1810_s27  }
  0x16   : > { %s2480_s6 = scalar_lea.vmem (%p67_p3), [#allocation2], %s1744_s25  }
  0x19   : > { %s3221_s26 = smov (!%p173_p8, %s172_s26), 2 }
  0x1a   : > { %s1746_s4 = sshll.u32 %s3221_s26, 9  ;;  %s2478_s5 = sshll.u32 %s3221_s26, 3 }
  0x1b   : > { %p1750_p9 = scmp.eq.s32.totalorder %s1746_s4, 0 }
  0x1c   : > { %p183_p10 = scmp.lt.u32.totalorder (!%p1750_p9), %s2478_s5, 8 }
  0x1d   : > { %182 = sbr.rel (%p1750_p9) target bundleno = 106 (0x6a), region = 32 }
  0x24   : > { %186 = sbr.rel (%p183_p10) target bundleno = 97 (0x61), region = 36  ;;  %s2484_s7 = sand.u32 (!%p183_p10), 7, %s2478_s5  }
  0x25   : > { %p208_p11 = scmp.eq.s32.totalorder (!%p183_p10), %s2484_s7, 0  ;;  %p1751_p12 = scmp.ne.s32.totalorder (!%p183_p10), %s2484_s7, 0 }
  0x2b   : > { %211 = sbr.rel (%p1751_p12) target bundleno = 67 (0x43), region = 51  ;;  %s212_s8 = sshrl.u32 (!%p1751_p12), %s2478_s5, 3 }
  0x2c   : > { %s213_s9 = sshrl.u32 (!%p1751_p12), %s212_s8, 4  ;;  %s2489_s10 = sand.u32 (!%p1751_p12), 15, %s212_s8  }
  0x2d   : > { %s1811_s11 = sshll.u32 (!%p1751_p12), %s213_s9, 11  ;;  %p1758_p13 = scmp.le.s32.totalorder (!%p1751_p12), %s2489_s10, 0 }
  0x2e   : > { %s364_s18 = sshra.s32 (!%p1751_p12), %s1811_s11, 4 }
  0x2f   : > { %s2492_s19 = scalar_lea.vmem (!%p1751_p12), %s2476_s30, %s364_s18   ;;  %s2495_s20 = scalar_lea.vmem (!%p1751_p12), %s2480_s6, %s364_s18 [#allocation2]  }
  0x32   : > { %1598 = sbr.rel (%p1758_p13) target bundleno = 67 (0x43), region = 246  ;;  %s3190_s23 = smov (!%p1758_p13), %s2495_s20 }
  0x33   : > { %s3191_s24 = smov (!%p1758_p13), %s2492_s19  ;;  %s2504_s25 = smov (!%p1758_p13), 0  }
  0x34   : > { %s2317_s26 = smov (!%p1758_p13), 0  }
  0x39 LB: >> { %v380_v0 = vld [vmem:[%s2311_s24] sm:$0xff]  ;;  %v382_v1 = vld [vmem:[%s2311_s24 + $0x68] sm:$0xff]  ;;  %v384_v2 = vld [vmem:[%s2311_s24 + $0xd0] sm:$0xff]  ;;  %s388_s27 = sadd.s32 1, %s2315_s25  ;;  %s374_s26 = sadd.s32 1, %s2319_s26   ;;  %s2319_s26 = sphi %s2317_s26, %s374_s26   ;;  %s2315_s25 = sphi %s2504_s25, %s3192_s25   ;;  %s2311_s24 = sphi %s3191_s24, %s393_s24   ;;  %s2307_s23 = sphi %s3190_s23, %s394_s23  }
  0x3a   : >> { %381 = vst [vmem:[%s2307_s23] sm:$0xff] %v380_v0  ;;  %383 = vst [vmem:[%s2307_s23 + $0x10] sm:$0xff] %v382_v1  ;;  %v386_v3 = vld [vmem:[%s2311_s24 + $0x138] sm:$0xff]  ;;  %p389_p0 = scmp.ge.s32.totalorder %s388_s27, %s2489_s10  ;;  %p373_p1 = scmp.ge.s32.totalorder %s374_s26, %s2489_s10 }
  0x3b   : >> { %385 = vst [vmem:[%s2307_s23 + $0x20] sm:$0xff] %v384_v2  ;;  %387 = vst [vmem:[%s2307_s23 + $0x30] sm:$0xff] %v386_v3 }
  0x3c   : >> { %s3223_s27 = smov (%p389_p0, %s388_s27), 0  ;;  %376 = sbr.rel (!%p373_p1) target bundleno = 57 (0x39), region = 252 }
  0x3d   : >> { %s1759_s28 = sshll.u32 %s3223_s27, 3  ;;  %s3192_s25 = smov %s3223_s27 }
  0x3e   : >> { %s393_s24 = scalar_lea.vmem %s2492_s19, %s1759_s28   ;;  %s394_s23 = scalar_lea.vmem %s2495_s20, %s1759_s28 [#allocation2]  }
  0x43 PF: > { %397 = sbr.rel (%p208_p11) target bundleno = 97 (0x61), region = 69  ;;  %s399_s29 = ssub.s32 (!%p208_p11), %s2478_s5, %s2484_s7 }
  0x44   : > { %s403_s4 = sshrl.u32 (!%p208_p11), %s2478_s5, 3  ;;  %s2525_s8 = scalar_lea.vmem (!%p208_p11), %s2476_s30, %s399_s29 }
  0x45   : > { %s2528_s9 = scalar_lea.vmem (!%p208_p11), %s2480_s6, %s399_s29 [#allocation2]  ;;  %s404_s11 = sshrl.u32 (!%p208_p11), %s403_s4, 4 }
  0x46   : > { %s2530_s18 = sand.u32 (!%p208_p11), 15, %s403_s4   ;;  %s1813_s10 = sshll.u32 (!%p208_p11), %s404_s11, 11 }
  0x47   : > { %s555_s19 = sshra.s32 (!%p208_p11), %s1813_s10, 4  ;;  %p1767_p2 = scmp.le.s32.totalorder (!%p208_p11), %s2530_s18, 0 }
  0x48   : > { %s2533_s20 = scalar_lea.vmem (!%p208_p11), %s2476_s30, %s555_s19   ;;  %s2536_s23 = scalar_lea.vmem (!%p208_p11), %s2480_s6, %s555_s19 [#allocation2]  }
  0x4a   : > { %1626 = sbr.rel (%p1767_p2) target bundleno = 91 (0x5b), region = 268  ;;  %s3193_s24 = smov (!%p1767_p2), %s2536_s23 }
  0x4b   : > { %s3194_s25 = smov (!%p1767_p2), %s2533_s20  ;;  %s2545_s26 = smov (!%p1767_p2), 0  }
  0x4c   : > { %s2333_s27 = smov (!%p1767_p2), 0  }
  0x51 LB: >> { %v571_v4 = vld [vmem:[%s2327_s25] sm:$0xff]  ;;  %v573_v5 = vld [vmem:[%s2327_s25 + $0x68] sm:$0xff]  ;;  %v575_v6 = vld [vmem:[%s2327_s25 + $0xd0] sm:$0xff]  ;;  %s579_s28 = sadd.s32 1, %s2331_s26  ;;  %s565_s27 = sadd.s32 1, %s2335_s27   ;;  %s2335_s27 = sphi %s2333_s27, %s565_s27   ;;  %s2331_s26 = sphi %s2545_s26, %s3195_s26   ;;  %s2327_s25 = sphi %s3194_s25, %s584_s25   ;;  %s2323_s24 = sphi %s3193_s24, %s585_s24  }
  0x52   : >> { %572 = vst [vmem:[%s2323_s24] sm:$0xff] %v571_v4  ;;  %574 = vst [vmem:[%s2323_s24 + $0x10] sm:$0xff] %v573_v5  ;;  %v577_v7 = vld [vmem:[%s2327_s25 + $0x138] sm:$0xff]  ;;  %p580_p3 = scmp.ge.s32.totalorder %s579_s28, %s2530_s18  ;;  %p564_p4 = scmp.ge.s32.totalorder %s565_s27, %s2530_s18 }
  0x53   : >> { %576 = vst [vmem:[%s2323_s24 + $0x20] sm:$0xff] %v575_v6  ;;  %578 = vst [vmem:[%s2323_s24 + $0x30] sm:$0xff] %v577_v7 }
  0x54   : >> { %s3225_s28 = smov (%p580_p3, %s579_s28), 0  ;;  %567 = sbr.rel (!%p564_p4) target bundleno = 81 (0x51), region = 274 }
  0x55   : >> { %s1768_s29 = sshll.u32 %s3225_s28, 3  ;;  %s3195_s26 = smov %s3225_s28 }
  0x56   : >> { %s584_s25 = scalar_lea.vmem %s2533_s20, %s1768_s29   ;;  %s585_s24 = scalar_lea.vmem %s2536_s23, %s1768_s29 [#allocation2]  }
  0x5b PF: > { %s2401_s4 = smov 0  }
  0x5c   : > { %s586_s11 = sshllo.u32 %s2401_s4, %s2484_s7 }
  0x5d   : > { %v595_v8 = vld [vmem:[%s2525_s8] sm:%s586_s11]  ;;  %v597_v9 = vld [vmem:[%s2525_s8 + $0x68] sm:%s586_s11] }
  0x5e   : > { %596 = vst [vmem:[%s2528_s9] sm:%s586_s11] %v595_v8  ;;  %598 = vst [vmem:[%s2528_s9 + $0x10] sm:%s586_s11] %v597_v9 }
  0x5f   : > { %v599_v10 = vld [vmem:[%s2525_s8 + $0xd0] sm:%s586_s11]  ;;  %v601_v11 = vld [vmem:[%s2525_s8 + $0x138] sm:%s586_s11] }
  0x60   : > { %600 = vst [vmem:[%s2528_s9 + $0x20] sm:%s586_s11] %v599_v10  ;;  %602 = vst [vmem:[%s2528_s9 + $0x30] sm:%s586_s11] %v601_v11 }
  0x61 PF: > { %p1770_p5 = scmp.ge.u32.totalorder %s2478_s5, 8 }
  0x62   : > { %s2402_s18 = smov (!%p1770_p5), 0  }
  0x63   : > { %189 = sbr.rel (%p1770_p5) target bundleno = 106 (0x6a), region = 40  ;;  %s190_s7 = sshllo.u32 (!%p1770_p5), %s2402_s18, %s2478_s5 }
  0x64   : > { %v199_v12 = vld [vmem:[%s2476_s30] sm:%s190_s7] (!%p1770_p5)  ;;  %v201_v13 = vld [vmem:[%s2476_s30 + $0x68] sm:%s190_s7] (!%p1770_p5) }
  0x65   : > { %200 = vst [vmem:[%s2480_s6] sm:%s190_s7] (!%p1770_p5), %v199_v12  ;;  %202 = vst [vmem:[%s2480_s6 + $0x10] sm:%s190_s7] (!%p1770_p5), %v201_v13 }
  0x66   : > { %v203_v14 = vld [vmem:[%s2476_s30 + $0xd0] sm:%s190_s7] (!%p1770_p5)  ;;  %v205_v15 = vld [vmem:[%s2476_s30 + $0x138] sm:%s190_s7] (!%p1770_p5) }
  0x67   : > { %204 = vst [vmem:[%s2480_s6 + $0x20] sm:%s190_s7] (!%p1770_p5), %v203_v14  ;;  %206 = vst [vmem:[%s2480_s6 + $0x30] sm:%s190_s7] (!%p1770_p5), %v205_v15 }
  0x6a PF: > { %p1771_p7 = scmp.ge.s32.totalorder %s2303_s16, 1  ;;  %p605_p8 = scmp.lt.s32.totalorder %s2303_s16, 8 }
  0x6c   : > { %p606_p9 = pnand %p1771_p7, %p605_p8 }
  0x6d   : > { %s612_s5 = sand.u32 (!%p606_p9), 1, %s2287_s12   ;;  %v2403_v16 = vmov (!%p606_p9), 0.0   ;;  %v2404_v17 = vmov (!%p606_p9), 0   ;;  %v687_v29 = vld [vmem:[%s3187_s2 + $0x10] sm:$0xff] (!%p606_p9)  ;;  %v685_v30 = vld [vmem:[%s3187_s2] sm:$0xff] (!%p606_p9)  ;;  %v688_v32 = vld [vmem:[%s3187_s2 + $0x18] sm:$0xff] (!%p606_p9) }
  0x6e   : > { %609 = sbr.rel (%p606_p9) target bundleno = 549 (0x225), region = 94  ;;  %s1772_s8 = sshll.u32 (!%p606_p9), %s612_s5, 6  ;;  %840 = vmatprep.mubr.f32.mxu0 (!%p606_p9), %v2403_v16  ;;  %870 = vmatprep.mubr.f32.mxu1 (!%p606_p9), %v2403_v16  ;;  %v686_v33 = vld [vmem:[%s3187_s2 + $0x8] sm:$0xff] (!%p606_p9)  ;;  %v667_v34 = vld [vmem:[%s3185_s0] sm:$0xff] (!%p606_p9)  ;;  %vm745_vm0 = vcmask (!%p606_p9), 261120   ;;  %v673_v39 = vld [vmem:[%s3185_s0 + $0x30] sm:$0xff] (!%p606_p9) }
  0x6f   : > { %2136 = vset.pattern.permute.xlu1 (!%p606_p9), %v2404_v17  ;;  %2135 = vset.pattern.permute.xlu0 (!%p606_p9), %v2404_v17  ;;  %s614_s30 = scalar_lea.vmem (!%p606_p9), [#allocation2], %s1772_s8  ;;  %v672_v35 = vld [vmem:[%s3185_s0 + $0x28] sm:$0xff] (!%p606_p9)  ;;  %v689_v37 = vld [vmem:[%s3187_s2 + $0x20] sm:$0xff] (!%p606_p9)  ;;  %v692_v40 = vld [vmem:[%s3187_s2 + $0x38] sm:$0xff] (!%p606_p9)  ;;  %s1832_s20 = smul.u32 (!%p606_p9), 160, %s612_s5 }
  0x70   : > { %v678_v18 = vld [vmem:[%s614_s30 + $0x8] sm:$0xff] (!%p606_p9)  ;;  %v680_v19 = vld [vmem:[%s614_s30 + $0x18] sm:$0xff] (!%p606_p9)  ;;  %v677_v20 = vld [vmem:[%s614_s30] sm:$0xff] (!%p606_p9)  ;;  %707 = vperm.xlu1 (!%p606_p9), %2136, %v687_v29   ;;  %697 = vperm.xlu0 (!%p606_p9), %2135, %v685_v30  }
  0x71   : > { %v1820_v21 = vpack.c.bf16 (!%p606_p9), %v680_v19, %v678_v18  ;;  %v679_v22 = vld [vmem:[%s614_s30 + $0x10] sm:$0xff] (!%p606_p9)  ;;  %v682_v23 = vld [vmem:[%s614_s30 + $0x28] sm:$0xff] (!%p606_p9)  ;;  %v684_v24 = vld [vmem:[%s614_s30 + $0x38] sm:$0xff] (!%p606_p9)  ;;  %s2666_s23 = scalar_lea.vmem (!%p606_p9), [#allocation3], %s1832_s20  }
  0x72   : > { %v1822_v25 = vpack.c.bf16 (!%p606_p9), %v679_v22, %v677_v20  ;;  %v1824_v26 = vpack.c.bf16 (!%p606_p9), %v684_v24, %v682_v23  ;;  %v681_v27 = vld [vmem:[%s614_s30 + $0x20] sm:$0xff] (!%p606_p9)  ;;  %v683_v28 = vld [vmem:[%s614_s30 + $0x30] sm:$0xff] (!%p606_p9)  ;;  %v690_v36 = vld [vmem:[%s3187_s2 + $0x28] sm:$0xff] (!%p606_p9) }
  0x73   : > { %1821 = vmatprep.subr.bf16.mxu0 (!%p606_p9), %v1820_v21  ;;  %1828 = vmatprep.subr.bf16.mxu1 (!%p606_p9), %v1820_v21  ;;  %v1826_v31 = vpack.c.bf16 (!%p606_p9), %v683_v28, %v681_v27  ;;  %v668_v38 = vld [vmem:[%s3185_s0 + $0x8] sm:$0xff] (!%p606_p9)  ;;  %v691_v41 = vld [vmem:[%s3187_s2 + $0x30] sm:$0xff] (!%p606_p9)  ;;  %v674_v43 = vld [vmem:[%s3185_s0 + $0x38] sm:$0xff] (!%p606_p9) }
  0x74   : > { %1823 = vmatpush1.bf16.msra.mxu0 (!%p606_p9), %v1822_v25  ;;  %1830 = vmatpush1.bf16.msra.mxu1 (!%p606_p9), %v1822_v25  ;;  %v669_v42 = vld [vmem:[%s3185_s0 + $0x10] sm:$0xff] (!%p606_p9)  ;;  %v694_v44 = vld [vmem:[%s3187_s2 + $0x48] sm:$0x7] (!%p606_p9)  ;;  %v693_v45 = vld [vmem:[%s3187_s2 + $0x40] sm:$0xff] (!%p606_p9) }
  0x75   : > { %1825 = vmatprep.subr.bf16.mxu0 %v1824_v26  ;;  %1829 = vmatprep.subr.bf16.mxu1 %v1824_v26  ;;  %v670_v46 = vld [vmem:[%s3185_s0 + $0x18] sm:$0xff]  ;;  %v675_v47 = vld [vmem:[%s3185_s0 + $0x40] sm:$0xff]  ;;  %v676_v49 = vld [vmem:[%s3185_s0 + $0x48] sm:$0x7]  ;;  %s1783_s12 = sshll.u32 (%p2462_p6), %s2295_s14, 1  ;;  %s1815_s5 = sshll.u32 (%p2462_p6), %s2295_s14, 4 }
  0x76   : > { %712 = vperm.xlu1 %2136, %v688_v32   ;;  %702 = vperm.xlu0 %2135, %v686_v33   ;;  %v671_v48 = vld [vmem:[%s3185_s0 + $0x20] sm:$0xff]  ;;  %s930_s24 = ssub.s32 (%p2462_p6), 13, %s1783_s12  ;;  %s2695_s27 = scalar_lea.vmem (%p2462_p6), %s3188_s3, %s1815_s5  }
  0x77   : > { %p931_p10 = scmp.lt.s32.totalorder (%p2462_p6), %s930_s24, 2 }
  0x78   : > { %1827 = vmatpush1.bf16.msra.mxu0 %v1826_v31  ;;  %1831 = vmatpush1.bf16.msra.mxu1 %v1826_v31 }
  0x7a   : > { %722 = vperm.xlu1 %2136, %v690_v36   ;;  %717 = vperm.xlu0 %2135, %v689_v37  }
  0x7b   : > { %1773 = vmatmul.mubr.msk.f32.vlgmr.msra.gmra.mrb[0].mxu0 %vm745_vm0, %v667_v34  ;;  %1778 = vmatmul.mubr.msk.f32.vlgmr.msra.gmra.mrb[0].mxu1 %vm745_vm0, %v672_v35 }
  0x7c   : > { %846 = vmatprep.mubr.f32.mxu0 %v2403_v16  ;;  %876 = vmatprep.mubr.f32.mxu1 %v2403_v16 }
  0x7e   : > { %732 = vperm.xlu1 %2136, %v692_v40   ;;  %727 = vperm.xlu0 %2135, %v691_v41  }
  0x7f   : > { %1774 = vmatmul.mubr.msk.f32.gmra.mrb[2].mxu0 %vm745_vm0, %v668_v38  ;;  %1779 = vmatmul.mubr.msk.f32.gmra.mrb[2].mxu1 %vm745_vm0, %v673_v39 }
  0x80   : > { %852 = vmatprep.mubr.f32.mxu0 %v2403_v16  ;;  %882 = vmatprep.mubr.f32.mxu1 %v2403_v16 }
  0x82   : > { %742 = vperm.xlu1 %2136, %v694_v44   ;;  %737 = vperm.xlu0 %2135, %v693_v45  }
  0x83   : > { %1775 = vmatmul.mubr.msk.f32.gmra.mrb[4].mxu0 %vm745_vm0, %v669_v42  ;;  %1780 = vmatmul.mubr.msk.f32.gmra.mrb[4].mxu1 %vm745_vm0, %v674_v43 }
  0x84   : > { %858 = vmatprep.mubr.f32.mxu0 %v2403_v16  ;;  %888 = vmatprep.mubr.f32.mxu1 %v2403_v16 }
  0x87   : > { %1776 = vmatmul.mubr.msk.f32.gmra.mrb[6].mxu0 %vm745_vm0, %v670_v46  ;;  %1781 = vmatmul.mubr.msk.f32.gmra.mrb[6].mxu1 %vm745_vm0, %v675_v47 }
  0x88   : > { %864 = vmatprep.mubr.f32.mxu0 %v2403_v16  ;;  %894 = vmatprep.mubr.f32.mxu1 %v2403_v16 }
  0x8b   : > { %1777 = vmatmul.mubr.msk.f32.gmra.mrb[8].mxu0 %vm745_vm0, %v671_v48  ;;  %1782 = vmatmul.mubr.msk.f32.gmra.mrb[8].mxu1 %vm745_vm0, %v676_v49 }
  0xef   : > { %v698_v50 = vpop.permute.xlu0 %697  ;;  %v708_v51 = vpop.permute.xlu1 %707 }
  0xf5   : > { %v703_v52 = vpop.permute.xlu0 %702  ;;  %v713_v53 = vpop.permute.xlu1 %712 }
  0xf9   : > { %v718_v54 = vpop.permute.xlu0 %717  ;;  %v723_v55 = vpop.permute.xlu1 %722 }
  0xfd   : > { %v728_v0 = vpop.permute.xlu0 %727  ;;  %v733_v9 = vpop.permute.xlu1 %732 }
 0x101   : > { %v738_v18 = vpop.permute.xlu0 %737  ;;  %v743_v27 = vpop.permute.xlu1 %742 }
 0x14e   : > { %v842_v56 = vpop.f32.mrb[0].mxu0  ;;  %v872_v57 = vpop.f32.mrb[0].mxu1 }
 0x14f   : > { %v843_v58 = vadd.f32 %v842_v56, %v698_v50  ;;  %v873_v59 = vadd.f32 %v872_v57, %v723_v55  ;;  %v844_v60 = vpop.f32.mrb[1].mxu0  ;;  %v874_v61 = vpop.f32.mrb[1].mxu1 }
 0x150   : > { %v845_v62 = vadd.f32 %v844_v60, %v698_v50  ;;  %v875_v63 = vadd.f32 %v874_v61, %v723_v55 }
 0x151   : > { %901 = vst [vmem:[%s2666_s23] sm:$0xff] %v843_v58  ;;  %911 = vst [vmem:[%s2666_s23 + $0x50] sm:$0xff] %v873_v59 }
 0x152   : > { %902 = vst [vmem:[%s2666_s23 + $0x8] sm:$0xff] %v845_v62  ;;  %912 = vst [vmem:[%s2666_s23 + $0x58] sm:$0xff] %v875_v63  ;;  %v848_v1 = vpop.f32.mrb[2].mxu0  ;;  %v878_v2 = vpop.f32.mrb[2].mxu1 }
 0x153   : > { %v849_v3 = vadd.f32 %v848_v1, %v703_v52  ;;  %v879_v4 = vadd.f32 %v878_v2, %v728_v0  ;;  %v850_v5 = vpop.f32.mrb[3].mxu0  ;;  %v880_v6 = vpop.f32.mrb[3].mxu1 }
 0x154   : > { %v851_v7 = vadd.f32 %v850_v5, %v703_v52  ;;  %v881_v8 = vadd.f32 %v880_v6, %v728_v0 }
 0x155   : > { %903 = vst [vmem:[%s2666_s23 + $0x10] sm:$0xff] %v849_v3  ;;  %913 = vst [vmem:[%s2666_s23 + $0x60] sm:$0xff] %v879_v4 }
 0x156   : > { %904 = vst [vmem:[%s2666_s23 + $0x18] sm:$0xff] %v851_v7  ;;  %914 = vst [vmem:[%s2666_s23 + $0x68] sm:$0xff] %v881_v8  ;;  %v854_v10 = vpop.f32.mrb[4].mxu0  ;;  %v884_v11 = vpop.f32.mrb[4].mxu1 }
 0x157   : > { %v855_v12 = vadd.f32 %v854_v10, %v708_v51  ;;  %v885_v13 = vadd.f32 %v884_v11, %v733_v9  ;;  %v856_v14 = vpop.f32.mrb[5].mxu0  ;;  %v886_v15 = vpop.f32.mrb[5].mxu1 }
 0x158   : > { %v857_v16 = vadd.f32 %v856_v14, %v708_v51  ;;  %v887_v17 = vadd.f32 %v886_v15, %v733_v9 }
 0x159   : > { %905 = vst [vmem:[%s2666_s23 + $0x20] sm:$0xff] %v855_v12  ;;  %915 = vst [vmem:[%s2666_s23 + $0x70] sm:$0xff] %v885_v13 }
 0x15a   : > { %906 = vst [vmem:[%s2666_s23 + $0x28] sm:$0xff] %v857_v16  ;;  %916 = vst [vmem:[%s2666_s23 + $0x78] sm:$0xff] %v887_v17  ;;  %v860_v19 = vpop.f32.mrb[6].mxu0  ;;  %v890_v20 = vpop.f32.mrb[6].mxu1 }
 0x15b   : > { %v861_v21 = vadd.f32 %v860_v19, %v713_v53  ;;  %v891_v22 = vadd.f32 %v890_v20, %v738_v18  ;;  %v862_v23 = vpop.f32.mrb[7].mxu0  ;;  %v892_v24 = vpop.f32.mrb[7].mxu1 }
 0x15c   : > { %v863_v25 = vadd.f32 %v862_v23, %v713_v53  ;;  %v893_v26 = vadd.f32 %v892_v24, %v738_v18  ;;  %927 = sbr.rel (!%p2462_p6) target bundleno = 549 (0x225), region = 102 }
 0x15d   : > { %907 = vst [vmem:[%s2666_s23 + $0x30] sm:$0xff] %v861_v21  ;;  %917 = vst [vmem:[%s2666_s23 + $0x80] sm:$0xff] %v891_v22 }
 0x15e   : > { %908 = vst [vmem:[%s2666_s23 + $0x38] sm:$0xff] %v863_v25  ;;  %918 = vst [vmem:[%s2666_s23 + $0x88] sm:$0xff] %v893_v26  ;;  %v866_v28 = vpop.f32.mrb[8].mxu0  ;;  %v896_v29 = vpop.f32.mrb[8].mxu1 }
 0x15f   : > { %v867_v30 = vadd.f32 %v866_v28, %v718_v54  ;;  %v897_v31 = vadd.f32 %v896_v29, %v743_v27  ;;  %v868_v32 = vpop.f32.mrb[9].mxu0  ;;  %v898_v33 = vpop.f32.mrb[9].mxu1 }
 0x160   : > { %v869_v34 = vadd.f32 %v868_v32, %v718_v54  ;;  %v899_v35 = vadd.f32 %v898_v33, %v743_v27 }
 0x161   : > { %909 = vst [vmem:[%s2666_s23 + $0x40] sm:$0xff] %v867_v30  ;;  %919 = vst [vmem:[%s2666_s23 + $0x90] sm:$0x7] %v897_v31 }
 0x162   : > { %910 = vst [vmem:[%s2666_s23 + $0x48] sm:$0xff] %v869_v34  ;;  %920 = vst [vmem:[%s2666_s23 + $0x98] sm:$0x7] %v899_v35 }
 0x163   : > { %s3227_s24 = smov (!%p931_p10, %s930_s24), 2 }
 0x164   : > { %s933_s28 = smul.u32 1280, %s3227_s24  ;;  %s2697_s29 = sshll.u32 %s3227_s24, 3 }
 0x166   : > { %p1787_p11 = scmp.eq.s32.totalorder %s933_s28, 0 }
 0x167   : > { %p943_p12 = scmp.lt.u32.totalorder (!%p1787_p11), %s2697_s29, 8 }
 0x168   : > { %942 = sbr.rel (%p1787_p11) target bundleno = 549 (0x225), region = 106 }
 0x16f   : > { %946 = sbr.rel (%p943_p12) target bundleno = 536 (0x218), region = 110  ;;  %s2701_s21 = sand.u32 (!%p943_p12), 7, %s2697_s29  }
 0x170   : > { %p980_p6 = scmp.eq.s32.totalorder (!%p943_p12), %s2701_s21, 0  ;;  %p1788_p13 = scmp.ne.s32.totalorder (!%p943_p12), %s2701_s21, 0 }
 0x176   : > { %983 = sbr.rel (%p1788_p13) target bundleno = 449 (0x1c1), region = 125  ;;  %s984_s14 = sshrl.u32 (!%p1788_p13), %s2697_s29, 3 }
 0x177   : > { %s2708_s4 = sshrl.u32 (!%p1788_p13), %s984_s14, 3 }
 0x178   : > { %p1789_p0 = scmp.le.s32.totalorder (!%p1788_p13), %s2708_s4, 0 }
 0x17d   : > { %1640 = sbr.rel (%p1789_p0) target bundleno = 429 (0x1ad), region = 279  ;;  %s3196_s11 = smov (!%p1789_p0), %s2695_s27 }
 0x17e   : > { %s3197_s18 = smov (!%p1789_p0), %s2666_s23  ;;  %s2717_s7 = smov (!%p1789_p0), 0  }
 0x17f   : > { %s2719_s8 = smov (!%p1789_p0), 0  }
 0x184 LB: >> { %v997_v36 = vld [vmem:[%s2343_s18] sm:$0xff]  ;;  %v999_v37 = vld [vmem:[%s2343_s18 + $0x8] sm:$0xff]  ;;  %v1001_v38 = vld [vmem:[%s2343_s18 + $0x10] sm:$0xff]  ;;  %s1157_s30 = sadd.s32 1, %s2347_s7  ;;  %s991_s8 = sadd.s32 1, %s2351_s8   ;;  %s2351_s8 = sphi %s2719_s8, %s991_s8   ;;  %s2347_s7 = sphi %s2717_s7, %s3201_s7   ;;  %s2343_s18 = sphi %s3197_s18, %s3200_s18   ;;  %s2339_s11 = sphi %s3196_s11, %s3199_s11  }
 0x185   : >> { %998 = vst [vmem:[%s2339_s11] sm:$0xff] %v997_v36  ;;  %1000 = vst [vmem:[%s2339_s11 + $0x8] sm:$0xff] %v999_v37  ;;  %v1003_v39 = vld [vmem:[%s2343_s18 + $0x18] sm:$0xff]  ;;  %v1005_v40 = vld [vmem:[%s2343_s18 + $0x20] sm:$0xff]  ;;  %p2747_p1 = scmp.ge.s32.totalorder %s1157_s30, %s2708_s4  ;;  %p990_p2 = scmp.ge.s32.totalorder %s991_s8, %s2708_s4 }
 0x186   : >> { %1002 = vst [vmem:[%s2339_s11 + $0x10] sm:$0xff] %v1001_v38  ;;  %v1007_v41 = vld [vmem:[%s2343_s18 + $0x28] sm:$0xff]  ;;  %1014 = vst [vmem:[%s2339_s11 + $0x68] sm:$0xff] %v1001_v38  ;;  %v1009_v42 = vld [vmem:[%s2343_s18 + $0x30] sm:$0xff] }
 0x187   : >> { %1004 = vst [vmem:[%s2339_s11 + $0x18] sm:$0xff] %v1003_v39  ;;  %1006 = vst [vmem:[%s2339_s11 + $0x20] sm:$0xff] %v1005_v40  ;;  %v1011_v43 = vld [vmem:[%s2343_s18 + $0x38] sm:$0xff]  ;;  %v1025_v44 = vld [vmem:[%s2343_s18 + $0x40] sm:$0xff]  ;;  %s3229_s30 = smov (%p2747_p1, %s1157_s30), 0 }
 0x188   : >> { %1008 = vst [vmem:[%s2339_s11 + $0x28] sm:$0xff] %v1007_v41  ;;  %1016 = vst [vmem:[%s2339_s11 + $0x70] sm:$0xff] %v1003_v39  ;;  %v1027_v45 = vld [vmem:[%s2343_s18 + $0x48] sm:$0xff]  ;;  %v1041_v46 = vld [vmem:[%s2343_s18 + $0x50] sm:$0xff]  ;;  %s1790_s9 = sshll.u32 %s3229_s30, 6  ;;  %s3201_s7 = smov %s3229_s30 }
 0x189   : >> { %1018 = vst [vmem:[%s2339_s11 + $0x78] sm:$0xff] %v1005_v40  ;;  %1020 = vst [vmem:[%s2339_s11 + $0x80] sm:$0xff] %v1007_v41  ;;  %v1043_v47 = vld [vmem:[%s2343_s18 + $0x58] sm:$0xff]  ;;  %v1057_v48 = vld [vmem:[%s2343_s18 + $0x60] sm:$0xff]  ;;  %s2830_s10 = scalar_lea.vmem %s2666_s23, %s1790_s9 [#allocation3]   ;;  %s1163_s19 = scalar_lea.vmem %s2695_s27, %s1790_s9  }
 0x18a   : >> { %1030 = vst [vmem:[%s2339_s11 + $0xd0] sm:$0xff] %v1005_v40  ;;  %1032 = vst [vmem:[%s2339_s11 + $0xd8] sm:$0xff] %v1007_v41  ;;  %v1059_v49 = vld [vmem:[%s2343_s18 + $0x68] sm:$0xff]  ;;  %v1073_v50 = vld [vmem:[%s2343_s18 + $0x70] sm:$0xff] }
 0x18b   : >> { %1010 = vst [vmem:[%s2339_s11 + $0x30] sm:$0xff] %v1009_v42  ;;  %1012 = vst [vmem:[%s2339_s11 + $0x38] sm:$0xff] %v1011_v43  ;;  %v1075_v51 = vld [vmem:[%s2343_s18 + $0x78] sm:$0xff]  ;;  %v1089_v52 = vld [vmem:[%s2343_s18 + $0x80] sm:$0xff] }
 0x18c   : >> { %1022 = vst [vmem:[%s2339_s11 + $0x88] sm:$0xff] %v1009_v42  ;;  %1024 = vst [vmem:[%s2339_s11 + $0x90] sm:$0xff] %v1011_v43  ;;  %v1091_v53 = vld [vmem:[%s2343_s18 + $0x88] sm:$0xff]  ;;  %v1105_v54 = vld [vmem:[%s2343_s18 + $0x90] sm:$0xff] }
 0x18d   : >> { %1026 = vst [vmem:[%s2339_s11 + $0x98] sm:$0xff] %v1025_v44  ;;  %1034 = vst [vmem:[%s2339_s11 + $0xe0] sm:$0xff] %v1009_v42  ;;  %v1107_v55 = vld [vmem:[%s2343_s18 + $0x98] sm:$0xff]  ;;  %v1121_v56 = vld [vmem:[%s2343_s18 + $0xa0] sm:$0xff] }
 0x18e   : >> { %1036 = vst [vmem:[%s2339_s11 + $0xe8] sm:$0xff] %v1011_v43  ;;  %1038 = vst [vmem:[%s2339_s11 + $0xf0] sm:$0xff] %v1025_v44  ;;  %v1123_v57 = vld [vmem:[%s2343_s18 + $0xa8] sm:$0xff]  ;;  %v1137_v58 = vld [vmem:[%s2343_s18 + $0xb0] sm:$0xff] }
 0x18f   : >> { %1046 = vst [vmem:[%s2339_s11 + $0x138] sm:$0xff] %v1009_v42  ;;  %1048 = vst [vmem:[%s2339_s11 + $0x140] sm:$0xff] %v1011_v43  ;;  %v1139_v59 = vld [vmem:[%s2343_s18 + $0xb8] sm:$0xff]  ;;  %v1153_v60 = vld [vmem:[%s2343_s18 + $0xc0] sm:$0xff] }
 0x190   : >> { %1050 = vst [vmem:[%s2339_s11 + $0x148] sm:$0xff] %v1025_v44  ;;  %1062 = vst [vmem:[%s2339_s11 + $0x1a0] sm:$0xff] %v1025_v44  ;;  %v1155_v61 = vld [vmem:[%s2343_s18 + $0xc8] sm:$0xff]  ;;  %s3200_s18 = smov %s2830_s10 }
 0x191   : >> { %1028 = vst [vmem:[%s2339_s11 + $0xa0] sm:$0xff] %v1027_v45  ;;  %1040 = vst [vmem:[%s2339_s11 + $0xf8] sm:$0xff] %v1027_v45 }
 0x192   : >> { %1042 = vst [vmem:[%s2339_s11 + $0x100] sm:$0xff] %v1041_v46  ;;  %1044 = vst [vmem:[%s2339_s11 + $0x108] sm:$0xff] %v1043_v47 }
 0x193   : >> { %1052 = vst [vmem:[%s2339_s11 + $0x150] sm:$0xff] %v1027_v45  ;;  %1054 = vst [vmem:[%s2339_s11 + $0x158] sm:$0xff] %v1041_v46 }
 0x194   : >> { %1056 = vst [vmem:[%s2339_s11 + $0x160] sm:$0xff] %v1043_v47  ;;  %1064 = vst [vmem:[%s2339_s11 + $0x1a8] sm:$0xff] %v1027_v45 }
 0x195   : >> { %1066 = vst [vmem:[%s2339_s11 + $0x1b0] sm:$0xff] %v1041_v46  ;;  %1068 = vst [vmem:[%s2339_s11 + $0x1b8] sm:$0xff] %v1043_v47 }
 0x196   : >> { %1078 = vst [vmem:[%s2339_s11 + $0x208] sm:$0xff] %v1041_v46  ;;  %1080 = vst [vmem:[%s2339_s11 + $0x210] sm:$0xff] %v1043_v47 }
 0x197   : >> { %1058 = vst [vmem:[%s2339_s11 + $0x168] sm:$0xff] %v1057_v48  ;;  %1060 = vst [vmem:[%s2339_s11 + $0x170] sm:$0xff] %v1059_v49 }
 0x198   : >> { %1070 = vst [vmem:[%s2339_s11 + $0x1c0] sm:$0xff] %v1057_v48  ;;  %1072 = vst [vmem:[%s2339_s11 + $0x1c8] sm:$0xff] %v1059_v49 }
 0x199   : >> { %1074 = vst [vmem:[%s2339_s11 + $0x1d0] sm:$0xff] %v1073_v50  ;;  %1082 = vst [vmem:[%s2339_s11 + $0x218] sm:$0xff] %v1057_v48 }
 0x19a   : >> { %1084 = vst [vmem:[%s2339_s11 + $0x220] sm:$0xff] %v1059_v49  ;;  %1086 = vst [vmem:[%s2339_s11 + $0x228] sm:$0xff] %v1073_v50 }
 0x19b   : >> { %1094 = vst [vmem:[%s2339_s11 + $0x270] sm:$0xff] %v1057_v48  ;;  %1096 = vst [vmem:[%s2339_s11 + $0x278] sm:$0xff] %v1059_v49 }
 0x19c   : >> { %1098 = vst [vmem:[%s2339_s11 + $0x280] sm:$0xff] %v1073_v50  ;;  %1110 = vst [vmem:[%s2339_s11 + $0x2d8] sm:$0xff] %v1073_v50 }
 0x19d   : >> { %1076 = vst [vmem:[%s2339_s11 + $0x1d8] sm:$0xff] %v1075_v51  ;;  %1088 = vst [vmem:[%s2339_s11 + $0x230] sm:$0xff] %v1075_v51 }
 0x19e   : >> { %1090 = vst [vmem:[%s2339_s11 + $0x238] sm:$0xff] %v1089_v52  ;;  %1092 = vst [vmem:[%s2339_s11 + $0x240] sm:$0xff] %v1091_v53 }
 0x19f   : >> { %1100 = vst [vmem:[%s2339_s11 + $0x288] sm:$0xff] %v1075_v51  ;;  %1102 = vst [vmem:[%s2339_s11 + $0x290] sm:$0xff] %v1089_v52 }
 0x1a0   : >> { %1104 = vst [vmem:[%s2339_s11 + $0x298] sm:$0xff] %v1091_v53  ;;  %1112 = vst [vmem:[%s2339_s11 + $0x2e0] sm:$0xff] %v1075_v51 }
 0x1a1   : >> { %1114 = vst [vmem:[%s2339_s11 + $0x2e8] sm:$0xff] %v1089_v52  ;;  %1116 = vst [vmem:[%s2339_s11 + $0x2f0] sm:$0xff] %v1091_v53 }
 0x1a2   : >> { %1126 = vst [vmem:[%s2339_s11 + $0x340] sm:$0xff] %v1089_v52  ;;  %1128 = vst [vmem:[%s2339_s11 + $0x348] sm:$0xff] %v1091_v53 }
 0x1a3   : >> { %1106 = vst [vmem:[%s2339_s11 + $0x2a0] sm:$0xff] %v1105_v54  ;;  %1108 = vst [vmem:[%s2339_s11 + $0x2a8] sm:$0xff] %v1107_v55 }
 0x1a4   : >> { %1118 = vst [vmem:[%s2339_s11 + $0x2f8] sm:$0xff] %v1105_v54  ;;  %1120 = vst [vmem:[%s2339_s11 + $0x300] sm:$0xff] %v1107_v55 }
 0x1a5   : >> { %1122 = vst [vmem:[%s2339_s11 + $0x308] sm:$0xff] %v1121_v56  ;;  %1130 = vst [vmem:[%s2339_s11 + $0x350] sm:$0xff] %v1105_v54 }
 0x1a6   : >> { %1132 = vst [vmem:[%s2339_s11 + $0x358] sm:$0xff] %v1107_v55  ;;  %1134 = vst [vmem:[%s2339_s11 + $0x360] sm:$0xff] %v1121_v56  ;;  %993 = sbr.rel (!%p990_p2) target bundleno = 388 (0x184), region = 285 }
 0x1a7   : >> { %1142 = vst [vmem:[%s2339_s11 + $0x3a8] sm:$0xff] %v1105_v54  ;;  %1144 = vst [vmem:[%s2339_s11 + $0x3b0] sm:$0xff] %v1107_v55 }
 0x1a8   : >> { %1146 = vst [vmem:[%s2339_s11 + $0x3b8] sm:$0xff] %v1121_v56  ;;  %1124 = vst [vmem:[%s2339_s11 + $0x310] sm:$0xff] %v1123_v57 }
 0x1a9   : >> { %1136 = vst [vmem:[%s2339_s11 + $0x368] sm:$0xff] %v1123_v57  ;;  %1138 = vst [vmem:[%s2339_s11 + $0x370] sm:$0xff] %v1137_v58 }
 0x1aa   : >> { %1140 = vst [vmem:[%s2339_s11 + $0x378] sm:$0xff] %v1139_v59  ;;  %1148 = vst [vmem:[%s2339_s11 + $0x3c0] sm:$0xff] %v1123_v57 }
 0x1ab   : >> { %1150 = vst [vmem:[%s2339_s11 + $0x3c8] sm:$0xff] %v1137_v58  ;;  %1152 = vst [vmem:[%s2339_s11 + $0x3d0] sm:$0xff] %v1139_v59 }
 0x1ac   : >> { %1154 = vst [vmem:[%s2339_s11 + $0x3d8] sm:$0xff] %v1153_v60  ;;  %1156 = vst [vmem:[%s2339_s11 + $0x3e0] sm:$0xff] %v1155_v61  ;;  %s3199_s11 = smov %s1163_s19 }
 0x1ad PF: > { %s2872_s20 = sand.u32 7, %s984_s14   ;;  %s1816_s12 = sshll.u32 %s2708_s4, 10 }
 0x1ae   : > { %s1168_s5 = sshra.s32 %s1816_s12, 4  ;;  %p1795_p3 = scmp.le.s32.totalorder %s2872_s20, 0 }
 0x1af   : > { %s2876_s24 = scalar_lea.vmem %s2666_s23, %s1168_s5 [#allocation3]   ;;  %s2879_s25 = scalar_lea.vmem %s2695_s27, %s1168_s5  }
 0x1b0   : > { %1654 = sbr.rel (%p1795_p3) target bundleno = 449 (0x1c1), region = 290  ;;  %s3202_s26 = smov (!%p1795_p3), %s2879_s25 }
 0x1b1   : > { %s3203_s28 = smov (!%p1795_p3), %s2876_s24  ;;  %s2888_s11 = smov (!%p1795_p3), 0  }
 0x1b2   : > { %s2890_s18 = smov (!%p1795_p3), 0  }
 0x1b7 LB: >> { %v1184_v62 = vld [vmem:[%s2359_s28] sm:$0xff]  ;;  %v1186_v63 = vld [vmem:[%s2359_s28 + $0x10] sm:$0xff]  ;;  %s1204_s14 = sadd.s32 1, %s2363_s11  ;;  %s1178_s18 = sadd.s32 1, %s2367_s18   ;;  %s2367_s18 = sphi %s2890_s18, %s1178_s18   ;;  %s2363_s11 = sphi %s2888_s11, %s3204_s11   ;;  %s2359_s28 = sphi %s3203_s28, %s1209_s28   ;;  %s2355_s26 = sphi %s3202_s26, %s1210_s26  }
 0x1b8   : >> { %v1188_v0 = vld [vmem:[%s2359_s28 + $0x20] sm:$0xff]  ;;  %1185 = vst [vmem:[%s2355_s26] sm:$0xff] %v1184_v62  ;;  %1187 = vst [vmem:[%s2355_s26 + $0x68] sm:$0xff] %v1186_v63  ;;  %v1190_v1 = vld [vmem:[%s2359_s28 + $0x30] sm:$0xff]  ;;  %p1205_p4 = scmp.ge.s32.totalorder %s1204_s14, %s2872_s20  ;;  %p1177_p5 = scmp.ge.s32.totalorder %s1178_s18, %s2872_s20 }
 0x1b9   : >> { %1189 = vst [vmem:[%s2355_s26 + $0xd0] sm:$0xff] %v1188_v0  ;;  %v1192_v2 = vld [vmem:[%s2359_s28 + $0x40] sm:$0xff]  ;;  %v1194_v3 = vld [vmem:[%s2359_s28 + $0x50] sm:$0xff]  ;;  %1191 = vst [vmem:[%s2355_s26 + $0x138] sm:$0xff] %v1190_v1 }
 0x1ba   : >> { %1193 = vst [vmem:[%s2355_s26 + $0x1a0] sm:$0xff] %v1192_v2  ;;  %1195 = vst [vmem:[%s2355_s26 + $0x208] sm:$0xff] %v1194_v3  ;;  %v1196_v4 = vld [vmem:[%s2359_s28 + $0x60] sm:$0xff]  ;;  %v1198_v5 = vld [vmem:[%s2359_s28 + $0x70] sm:$0xff]  ;;  %s3231_s14 = smov (%p1205_p4, %s1204_s14), 0  ;;  %1180 = sbr.rel (!%p1177_p5) target bundleno = 439 (0x1b7), region = 296 }
 0x1bb   : >> { %v1200_v6 = vld [vmem:[%s2359_s28 + $0x80] sm:$0xff]  ;;  %1197 = vst [vmem:[%s2355_s26 + $0x270] sm:$0xff] %v1196_v4  ;;  %1199 = vst [vmem:[%s2355_s26 + $0x2d8] sm:$0xff] %v1198_v5  ;;  %v1202_v7 = vld [vmem:[%s2359_s28 + $0x90] sm:$0xff]  ;;  %s1796_s4 = sshll.u32 %s3231_s14, 3  ;;  %s3204_s11 = smov %s3231_s14 }
 0x1bc   : >> { %1201 = vst [vmem:[%s2355_s26 + $0x340] sm:$0xff] %v1200_v6  ;;  %1203 = vst [vmem:[%s2355_s26 + $0x3a8] sm:$0xff] %v1202_v7  ;;  %s1209_s28 = scalar_lea.vmem %s2876_s24, %s1796_s4 [#allocation3]   ;;  %s1210_s26 = scalar_lea.vmem %s2879_s25, %s1796_s4  }
 0x1c1 PF: > { %1213 = sbr.rel (%p980_p6) target bundleno = 536 (0x218), region = 143  ;;  %s1215_s7 = ssub.s32 (!%p980_p6), %s2697_s29, %s2701_s21 }
 0x1c2   : > { %s1219_s8 = sshrl.u32 (!%p980_p6), %s2697_s29, 3  ;;  %s2917_s30 = scalar_lea.vmem (!%p980_p6), %s2666_s23, %s1215_s7 [#allocation3] }
 0x1c3   : > { %s2920_s6 = scalar_lea.vmem (!%p980_p6), %s2695_s27, %s1215_s7  ;;  %s2924_s9 = sshrl.u32 (!%p980_p6), %s1219_s8, 3 }
 0x1c4   : > { %p1798_p7 = scmp.le.s32.totalorder (!%p980_p6), %s2924_s9, 0 }
 0x1c8   : > { %1668 = sbr.rel (%p1798_p7) target bundleno = 504 (0x1f8), region = 301  ;;  %s3205_s10 = smov (!%p1798_p7), %s2695_s27 }
 0x1c9   : > { %s3206_s19 = smov (!%p1798_p7), %s2666_s23  ;;  %s2933_s20 = smov (!%p1798_p7), 0  }
 0x1ca   : > { %s2935_s12 = smov (!%p1798_p7), 0  }
 0x1cf LB: >> { %v1232_v8 = vld [vmem:[%s2375_s19] sm:$0xff]  ;;  %v1234_v9 = vld [vmem:[%s2375_s19 + $0x8] sm:$0xff]  ;;  %v1236_v10 = vld [vmem:[%s2375_s19 + $0x10] sm:$0xff]  ;;  %s1392_s5 = sadd.s32 1, %s2379_s20  ;;  %s1226_s12 = sadd.s32 1, %s2383_s12   ;;  %s2383_s12 = sphi %s2935_s12, %s1226_s12   ;;  %s2379_s20 = sphi %s2933_s20, %s3210_s20   ;;  %s2375_s19 = sphi %s3206_s19, %s3209_s19   ;;  %s2371_s10 = sphi %s3205_s10, %s3208_s10  }
 0x1d0   : >> { %1233 = vst [vmem:[%s2371_s10] sm:$0xff] %v1232_v8  ;;  %1235 = vst [vmem:[%s2371_s10 + $0x8] sm:$0xff] %v1234_v9  ;;  %v1238_v11 = vld [vmem:[%s2375_s19 + $0x18] sm:$0xff]  ;;  %v1240_v12 = vld [vmem:[%s2375_s19 + $0x20] sm:$0xff]  ;;  %p2963_p8 = scmp.ge.s32.totalorder %s1392_s5, %s2924_s9  ;;  %p1225_p9 = scmp.ge.s32.totalorder %s1226_s12, %s2924_s9 }
 0x1d1   : >> { %1237 = vst [vmem:[%s2371_s10 + $0x10] sm:$0xff] %v1236_v10  ;;  %v1242_v13 = vld [vmem:[%s2375_s19 + $0x28] sm:$0xff]  ;;  %1249 = vst [vmem:[%s2371_s10 + $0x68] sm:$0xff] %v1236_v10  ;;  %v1244_v14 = vld [vmem:[%s2375_s19 + $0x30] sm:$0xff] }
 0x1d2   : >> { %1239 = vst [vmem:[%s2371_s10 + $0x18] sm:$0xff] %v1238_v11  ;;  %1241 = vst [vmem:[%s2371_s10 + $0x20] sm:$0xff] %v1240_v12  ;;  %v1246_v15 = vld [vmem:[%s2375_s19 + $0x38] sm:$0xff]  ;;  %v1260_v16 = vld [vmem:[%s2375_s19 + $0x40] sm:$0xff]  ;;  %s3233_s5 = smov (%p2963_p8, %s1392_s5), 0 }
 0x1d3   : >> { %1243 = vst [vmem:[%s2371_s10 + $0x28] sm:$0xff] %v1242_v13  ;;  %1251 = vst [vmem:[%s2371_s10 + $0x70] sm:$0xff] %v1238_v11  ;;  %v1262_v17 = vld [vmem:[%s2375_s19 + $0x48] sm:$0xff]  ;;  %v1276_v18 = vld [vmem:[%s2375_s19 + $0x50] sm:$0xff]  ;;  %s1799_s25 = sshll.u32 %s3233_s5, 6  ;;  %s3210_s20 = smov %s3233_s5 }
 0x1d4   : >> { %1253 = vst [vmem:[%s2371_s10 + $0x78] sm:$0xff] %v1240_v12  ;;  %1255 = vst [vmem:[%s2371_s10 + $0x80] sm:$0xff] %v1242_v13  ;;  %v1278_v19 = vld [vmem:[%s2375_s19 + $0x58] sm:$0xff]  ;;  %v1292_v20 = vld [vmem:[%s2375_s19 + $0x60] sm:$0xff]  ;;  %s3046_s26 = scalar_lea.vmem %s2666_s23, %s1799_s25 [#allocation3]   ;;  %s1398_s28 = scalar_lea.vmem %s2695_s27, %s1799_s25  }
 0x1d5   : >> { %1265 = vst [vmem:[%s2371_s10 + $0xd0] sm:$0xff] %v1240_v12  ;;  %1267 = vst [vmem:[%s2371_s10 + $0xd8] sm:$0xff] %v1242_v13  ;;  %v1294_v21 = vld [vmem:[%s2375_s19 + $0x68] sm:$0xff]  ;;  %v1308_v22 = vld [vmem:[%s2375_s19 + $0x70] sm:$0xff] }
 0x1d6   : >> { %1245 = vst [vmem:[%s2371_s10 + $0x30] sm:$0xff] %v1244_v14  ;;  %1247 = vst [vmem:[%s2371_s10 + $0x38] sm:$0xff] %v1246_v15  ;;  %v1310_v23 = vld [vmem:[%s2375_s19 + $0x78] sm:$0xff]  ;;  %v1324_v24 = vld [vmem:[%s2375_s19 + $0x80] sm:$0xff] }
 0x1d7   : >> { %1257 = vst [vmem:[%s2371_s10 + $0x88] sm:$0xff] %v1244_v14  ;;  %1259 = vst [vmem:[%s2371_s10 + $0x90] sm:$0xff] %v1246_v15  ;;  %v1326_v25 = vld [vmem:[%s2375_s19 + $0x88] sm:$0xff]  ;;  %v1340_v26 = vld [vmem:[%s2375_s19 + $0x90] sm:$0xff] }
 0x1d8   : >> { %1261 = vst [vmem:[%s2371_s10 + $0x98] sm:$0xff] %v1260_v16  ;;  %1269 = vst [vmem:[%s2371_s10 + $0xe0] sm:$0xff] %v1244_v14  ;;  %v1342_v27 = vld [vmem:[%s2375_s19 + $0x98] sm:$0xff]  ;;  %v1356_v28 = vld [vmem:[%s2375_s19 + $0xa0] sm:$0xff] }
 0x1d9   : >> { %1271 = vst [vmem:[%s2371_s10 + $0xe8] sm:$0xff] %v1246_v15  ;;  %1273 = vst [vmem:[%s2371_s10 + $0xf0] sm:$0xff] %v1260_v16  ;;  %v1358_v29 = vld [vmem:[%s2375_s19 + $0xa8] sm:$0xff]  ;;  %v1372_v30 = vld [vmem:[%s2375_s19 + $0xb0] sm:$0xff] }
 0x1da   : >> { %1281 = vst [vmem:[%s2371_s10 + $0x138] sm:$0xff] %v1244_v14  ;;  %1283 = vst [vmem:[%s2371_s10 + $0x140] sm:$0xff] %v1246_v15  ;;  %v1374_v31 = vld [vmem:[%s2375_s19 + $0xb8] sm:$0xff]  ;;  %v1388_v32 = vld [vmem:[%s2375_s19 + $0xc0] sm:$0xff] }
 0x1db   : >> { %1285 = vst [vmem:[%s2371_s10 + $0x148] sm:$0xff] %v1260_v16  ;;  %1297 = vst [vmem:[%s2371_s10 + $0x1a0] sm:$0xff] %v1260_v16  ;;  %v1390_v33 = vld [vmem:[%s2375_s19 + $0xc8] sm:$0xff]  ;;  %s3209_s19 = smov %s3046_s26 }
 0x1dc   : >> { %1263 = vst [vmem:[%s2371_s10 + $0xa0] sm:$0xff] %v1262_v17  ;;  %1275 = vst [vmem:[%s2371_s10 + $0xf8] sm:$0xff] %v1262_v17 }
 0x1dd   : >> { %1277 = vst [vmem:[%s2371_s10 + $0x100] sm:$0xff] %v1276_v18  ;;  %1279 = vst [vmem:[%s2371_s10 + $0x108] sm:$0xff] %v1278_v19 }
 0x1de   : >> { %1287 = vst [vmem:[%s2371_s10 + $0x150] sm:$0xff] %v1262_v17  ;;  %1289 = vst [vmem:[%s2371_s10 + $0x158] sm:$0xff] %v1276_v18 }
 0x1df   : >> { %1291 = vst [vmem:[%s2371_s10 + $0x160] sm:$0xff] %v1278_v19  ;;  %1299 = vst [vmem:[%s2371_s10 + $0x1a8] sm:$0xff] %v1262_v17 }
 0x1e0   : >> { %1301 = vst [vmem:[%s2371_s10 + $0x1b0] sm:$0xff] %v1276_v18  ;;  %1303 = vst [vmem:[%s2371_s10 + $0x1b8] sm:$0xff] %v1278_v19 }
 0x1e1   : >> { %1313 = vst [vmem:[%s2371_s10 + $0x208] sm:$0xff] %v1276_v18  ;;  %1315 = vst [vmem:[%s2371_s10 + $0x210] sm:$0xff] %v1278_v19 }
 0x1e2   : >> { %1293 = vst [vmem:[%s2371_s10 + $0x168] sm:$0xff] %v1292_v20  ;;  %1295 = vst [vmem:[%s2371_s10 + $0x170] sm:$0xff] %v1294_v21 }
 0x1e3   : >> { %1305 = vst [vmem:[%s2371_s10 + $0x1c0] sm:$0xff] %v1292_v20  ;;  %1307 = vst [vmem:[%s2371_s10 + $0x1c8] sm:$0xff] %v1294_v21 }
 0x1e4   : >> { %1309 = vst [vmem:[%s2371_s10 + $0x1d0] sm:$0xff] %v1308_v22  ;;  %1317 = vst [vmem:[%s2371_s10 + $0x218] sm:$0xff] %v1292_v20 }
 0x1e5   : >> { %1319 = vst [vmem:[%s2371_s10 + $0x220] sm:$0xff] %v1294_v21  ;;  %1321 = vst [vmem:[%s2371_s10 + $0x228] sm:$0xff] %v1308_v22 }
 0x1e6   : >> { %1329 = vst [vmem:[%s2371_s10 + $0x270] sm:$0xff] %v1292_v20  ;;  %1331 = vst [vmem:[%s2371_s10 + $0x278] sm:$0xff] %v1294_v21 }
 0x1e7   : >> { %1333 = vst [vmem:[%s2371_s10 + $0x280] sm:$0xff] %v1308_v22  ;;  %1345 = vst [vmem:[%s2371_s10 + $0x2d8] sm:$0xff] %v1308_v22 }
 0x1e8   : >> { %1311 = vst [vmem:[%s2371_s10 + $0x1d8] sm:$0xff] %v1310_v23  ;;  %1323 = vst [vmem:[%s2371_s10 + $0x230] sm:$0xff] %v1310_v23 }
 0x1e9   : >> { %1325 = vst [vmem:[%s2371_s10 + $0x238] sm:$0xff] %v1324_v24  ;;  %1327 = vst [vmem:[%s2371_s10 + $0x240] sm:$0xff] %v1326_v25 }
 0x1ea   : >> { %1335 = vst [vmem:[%s2371_s10 + $0x288] sm:$0xff] %v1310_v23  ;;  %1337 = vst [vmem:[%s2371_s10 + $0x290] sm:$0xff] %v1324_v24 }
 0x1eb   : >> { %1339 = vst [vmem:[%s2371_s10 + $0x298] sm:$0xff] %v1326_v25  ;;  %1347 = vst [vmem:[%s2371_s10 + $0x2e0] sm:$0xff] %v1310_v23 }
 0x1ec   : >> { %1349 = vst [vmem:[%s2371_s10 + $0x2e8] sm:$0xff] %v1324_v24  ;;  %1351 = vst [vmem:[%s2371_s10 + $0x2f0] sm:$0xff] %v1326_v25 }
 0x1ed   : >> { %1361 = vst [vmem:[%s2371_s10 + $0x340] sm:$0xff] %v1324_v24  ;;  %1363 = vst [vmem:[%s2371_s10 + $0x348] sm:$0xff] %v1326_v25 }
 0x1ee   : >> { %1341 = vst [vmem:[%s2371_s10 + $0x2a0] sm:$0xff] %v1340_v26  ;;  %1343 = vst [vmem:[%s2371_s10 + $0x2a8] sm:$0xff] %v1342_v27 }
 0x1ef   : >> { %1353 = vst [vmem:[%s2371_s10 + $0x2f8] sm:$0xff] %v1340_v26  ;;  %1355 = vst [vmem:[%s2371_s10 + $0x300] sm:$0xff] %v1342_v27 }
 0x1f0   : >> { %1357 = vst [vmem:[%s2371_s10 + $0x308] sm:$0xff] %v1356_v28  ;;  %1365 = vst [vmem:[%s2371_s10 + $0x350] sm:$0xff] %v1340_v26 }
 0x1f1   : >> { %1367 = vst [vmem:[%s2371_s10 + $0x358] sm:$0xff] %v1342_v27  ;;  %1369 = vst [vmem:[%s2371_s10 + $0x360] sm:$0xff] %v1356_v28  ;;  %1228 = sbr.rel (!%p1225_p9) target bundleno = 463 (0x1cf), region = 307 }
 0x1f2   : >> { %1377 = vst [vmem:[%s2371_s10 + $0x3a8] sm:$0xff] %v1340_v26  ;;  %1379 = vst [vmem:[%s2371_s10 + $0x3b0] sm:$0xff] %v1342_v27 }
 0x1f3   : >> { %1381 = vst [vmem:[%s2371_s10 + $0x3b8] sm:$0xff] %v1356_v28  ;;  %1359 = vst [vmem:[%s2371_s10 + $0x310] sm:$0xff] %v1358_v29 }
 0x1f4   : >> { %1371 = vst [vmem:[%s2371_s10 + $0x368] sm:$0xff] %v1358_v29  ;;  %1373 = vst [vmem:[%s2371_s10 + $0x370] sm:$0xff] %v1372_v30 }
 0x1f5   : >> { %1375 = vst [vmem:[%s2371_s10 + $0x378] sm:$0xff] %v1374_v31  ;;  %1383 = vst [vmem:[%s2371_s10 + $0x3c0] sm:$0xff] %v1358_v29 }
 0x1f6   : >> { %1385 = vst [vmem:[%s2371_s10 + $0x3c8] sm:$0xff] %v1372_v30  ;;  %1387 = vst [vmem:[%s2371_s10 + $0x3d0] sm:$0xff] %v1374_v31 }
 0x1f7   : >> { %1389 = vst [vmem:[%s2371_s10 + $0x3d8] sm:$0xff] %v1388_v32  ;;  %1391 = vst [vmem:[%s2371_s10 + $0x3e0] sm:$0xff] %v1390_v33  ;;  %s3208_s10 = smov %s1398_s28 }
 0x1f8 PF: > { %s3088_s11 = sand.u32 7, %s1219_s8   ;;  %s1818_s18 = sshll.u32 %s2924_s9, 10 }
 0x1f9   : > { %s1403_s14 = sshra.s32 %s1818_s18, 4  ;;  %p1804_p10 = scmp.le.s32.totalorder %s3088_s11, 0 }
 0x1fa   : > { %s3092_s4 = scalar_lea.vmem %s2666_s23, %s1403_s14 [#allocation3]   ;;  %s3095_s7 = scalar_lea.vmem %s2695_s27, %s1403_s14  }
 0x1fb   : > { %1682 = sbr.rel (%p1804_p10) target bundleno = 524 (0x20c), region = 312  ;;  %s3211_s10 = smov (!%p1804_p10), %s3095_s7 }
 0x1fc   : > { %s3212_s19 = smov (!%p1804_p10), %s3092_s4  ;;  %s3104_s20 = smov (!%p1804_p10), 0  }
 0x1fd   : > { %s3106_s12 = smov (!%p1804_p10), 0  }
 0x202 LB: >> { %v1419_v34 = vld [vmem:[%s2391_s19] sm:$0xff]  ;;  %v1421_v35 = vld [vmem:[%s2391_s19 + $0x10] sm:$0xff]  ;;  %s1439_s8 = sadd.s32 1, %s2395_s20  ;;  %s1413_s12 = sadd.s32 1, %s2399_s12   ;;  %s2399_s12 = sphi %s3106_s12, %s1413_s12   ;;  %s2395_s20 = sphi %s3104_s20, %s3213_s20   ;;  %s2391_s19 = sphi %s3212_s19, %s1444_s19   ;;  %s2387_s10 = sphi %s3211_s10, %s1445_s10  }
 0x203   : >> { %v1423_v36 = vld [vmem:[%s2391_s19 + $0x20] sm:$0xff]  ;;  %1420 = vst [vmem:[%s2387_s10] sm:$0xff] %v1419_v34  ;;  %1422 = vst [vmem:[%s2387_s10 + $0x68] sm:$0xff] %v1421_v35  ;;  %v1425_v37 = vld [vmem:[%s2391_s19 + $0x30] sm:$0xff]  ;;  %p1440_p11 = scmp.ge.s32.totalorder %s1439_s8, %s3088_s11  ;;  %p1412_p12 = scmp.ge.s32.totalorder %s1413_s12, %s3088_s11 }
 0x204   : >> { %1424 = vst [vmem:[%s2387_s10 + $0xd0] sm:$0xff] %v1423_v36  ;;  %v1427_v38 = vld [vmem:[%s2391_s19 + $0x40] sm:$0xff]  ;;  %v1429_v39 = vld [vmem:[%s2391_s19 + $0x50] sm:$0xff]  ;;  %1426 = vst [vmem:[%s2387_s10 + $0x138] sm:$0xff] %v1425_v37 }
 0x205   : >> { %1428 = vst [vmem:[%s2387_s10 + $0x1a0] sm:$0xff] %v1427_v38  ;;  %1430 = vst [vmem:[%s2387_s10 + $0x208] sm:$0xff] %v1429_v39  ;;  %v1431_v40 = vld [vmem:[%s2391_s19 + $0x60] sm:$0xff]  ;;  %v1433_v41 = vld [vmem:[%s2391_s19 + $0x70] sm:$0xff]  ;;  %s3235_s8 = smov (%p1440_p11, %s1439_s8), 0  ;;  %1415 = sbr.rel (!%p1412_p12) target bundleno = 514 (0x202), region = 318 }
 0x206   : >> { %v1435_v42 = vld [vmem:[%s2391_s19 + $0x80] sm:$0xff]  ;;  %1432 = vst [vmem:[%s2387_s10 + $0x270] sm:$0xff] %v1431_v40  ;;  %1434 = vst [vmem:[%s2387_s10 + $0x2d8] sm:$0xff] %v1433_v41  ;;  %v1437_v43 = vld [vmem:[%s2391_s19 + $0x90] sm:$0xff]  ;;  %s1805_s9 = sshll.u32 %s3235_s8, 3  ;;  %s3213_s20 = smov %s3235_s8 }
 0x207   : >> { %1436 = vst [vmem:[%s2387_s10 + $0x340] sm:$0xff] %v1435_v42  ;;  %1438 = vst [vmem:[%s2387_s10 + $0x3a8] sm:$0xff] %v1437_v43  ;;  %s1444_s19 = scalar_lea.vmem %s3092_s4, %s1805_s9 [#allocation3]   ;;  %s1445_s10 = scalar_lea.vmem %s3095_s7, %s1805_s9  }
 0x20c PF: > { %s2405_s5 = smov 0  }
 0x20d   : > { %s1446_s24 = sshllo.u32 %s2405_s5, %s2701_s21 }
 0x20e   : > { %v1455_v44 = vld [vmem:[%s2917_s30] sm:%s1446_s24]  ;;  %v1457_v45 = vld [vmem:[%s2917_s30 + $0x10] sm:%s1446_s24] }
 0x20f   : > { %1456 = vst [vmem:[%s2920_s6] sm:%s1446_s24] %v1455_v44  ;;  %1458 = vst [vmem:[%s2920_s6 + $0x68] sm:%s1446_s24] %v1457_v45 }
 0x210   : > { %v1459_v46 = vld [vmem:[%s2917_s30 + $0x20] sm:%s1446_s24]  ;;  %v1461_v47 = vld [vmem:[%s2917_s30 + $0x30] sm:%s1446_s24] }
 0x211   : > { %1460 = vst [vmem:[%s2920_s6 + $0xd0] sm:%s1446_s24] %v1459_v46  ;;  %1462 = vst [vmem:[%s2920_s6 + $0x138] sm:%s1446_s24] %v1461_v47 }
 0x212   : > { %v1463_v48 = vld [vmem:[%s2917_s30 + $0x40] sm:%s1446_s24]  ;;  %v1465_v49 = vld [vmem:[%s2917_s30 + $0x50] sm:%s1446_s24] }
 0x213   : > { %1464 = vst [vmem:[%s2920_s6 + $0x1a0] sm:%s1446_s24] %v1463_v48  ;;  %1466 = vst [vmem:[%s2920_s6 + $0x208] sm:%s1446_s24] %v1465_v49 }
 0x214   : > { %v1467_v50 = vld [vmem:[%s2917_s30 + $0x60] sm:%s1446_s24]  ;;  %v1469_v51 = vld [vmem:[%s2917_s30 + $0x70] sm:%s1446_s24] }
 0x215   : > { %1468 = vst [vmem:[%s2920_s6 + $0x270] sm:%s1446_s24] %v1467_v50  ;;  %1470 = vst [vmem:[%s2920_s6 + $0x2d8] sm:%s1446_s24] %v1469_v51 }
 0x216   : > { %v1471_v52 = vld [vmem:[%s2917_s30 + $0x80] sm:%s1446_s24]  ;;  %v1473_v53 = vld [vmem:[%s2917_s30 + $0x90] sm:%s1446_s24] }
 0x217   : > { %1472 = vst [vmem:[%s2920_s6 + $0x340] sm:%s1446_s24] %v1471_v52  ;;  %1474 = vst [vmem:[%s2920_s6 + $0x3a8] sm:%s1446_s24] %v1473_v53 }
 0x218 PF: > { %p1807_p6 = scmp.ge.u32.totalorder %s2697_s29, 8 }
 0x219   : > { %s2406_s21 = smov (!%p1807_p6), 0  }
 0x21a   : > { %949 = sbr.rel (%p1807_p6) target bundleno = 549 (0x225), region = 114  ;;  %s950_s30 = sshllo.u32 (!%p1807_p6), %s2406_s21, %s2697_s29 }
 0x21b   : > { %v959_v54 = vld [vmem:[%s2666_s23] sm:%s950_s30] (!%p1807_p6)  ;;  %v961_v55 = vld [vmem:[%s2666_s23 + $0x10] sm:%s950_s30] (!%p1807_p6) }
 0x21c   : > { %960 = vst [vmem:[%s2695_s27] sm:%s950_s30] (!%p1807_p6), %v959_v54  ;;  %962 = vst [vmem:[%s2695_s27 + $0x68] sm:%s950_s30] (!%p1807_p6), %v961_v55 }
 0x21d   : > { %v963_v56 = vld [vmem:[%s2666_s23 + $0x20] sm:%s950_s30] (!%p1807_p6)  ;;  %v965_v57 = vld [vmem:[%s2666_s23 + $0x30] sm:%s950_s30] (!%p1807_p6) }
 0x21e   : > { %964 = vst [vmem:[%s2695_s27 + $0xd0] sm:%s950_s30] (!%p1807_p6), %v963_v56  ;;  %966 = vst [vmem:[%s2695_s27 + $0x138] sm:%s950_s30] (!%p1807_p6), %v965_v57 }
 0x21f   : > { %v967_v58 = vld [vmem:[%s2666_s23 + $0x40] sm:%s950_s30] (!%p1807_p6)  ;;  %v969_v59 = vld [vmem:[%s2666_s23 + $0x50] sm:%s950_s30] (!%p1807_p6) }
 0x220   : > { %968 = vst [vmem:[%s2695_s27 + $0x1a0] sm:%s950_s30] (!%p1807_p6), %v967_v58  ;;  %970 = vst [vmem:[%s2695_s27 + $0x208] sm:%s950_s30] (!%p1807_p6), %v969_v59 }
 0x221   : > { %v971_v60 = vld [vmem:[%s2666_s23 + $0x60] sm:%s950_s30]  ;;  %v973_v61 = vld [vmem:[%s2666_s23 + $0x70] sm:%s950_s30] }
 0x222   : > { %972 = vst [vmem:[%s2695_s27 + $0x270] sm:%s950_s30] %v971_v60  ;;  %974 = vst [vmem:[%s2695_s27 + $0x2d8] sm:%s950_s30] %v973_v61 }
 0x223   : > { %v975_v62 = vld [vmem:[%s2666_s23 + $0x80] sm:%s950_s30]  ;;  %v977_v63 = vld [vmem:[%s2666_s23 + $0x90] sm:%s950_s30] }
 0x224   : > { %976 = vst [vmem:[%s2695_s27 + $0x340] sm:%s950_s30] %v975_v62  ;;  %978 = vst [vmem:[%s2695_s27 + $0x3a8] sm:%s950_s30] %v977_v63 }
 0x225 PF: > { %s13_s16 = sadd.s32 1, %s2303_s16   ;;  %s3214_s12 = smov %s2291_s13 }
 0x226   : > { %p10_p13 = scmp.ge.s32.totalorder %s13_s16, 9   ;;  %s3215_s13 = smov %s2467_s22 }
 0x227   : > { %s3216_s14 = smov %s2299_s15  ;;  %s3217_s15 = smov %s3219_s17 }
 0x228   :  { %12 = sbr.rel (!%p10_p13) target bundleno = 3 (0x3), region = 329 }

</bundles_post_ra>
